<compile_context>
chip_gen: v5e
topology: v5e:2x2
jax: 0.10.0
libtpu: 0.0.40
codegen_flags: <defaults>
</compile_context>

<pallas_src>
import functools
import math

import jax
import jax.numpy as jnp
from jax.experimental import pallas as pl
from jax.experimental.pallas import tpu as pltpu

_SQRT_HALF = 0.7071067811865476


def _erf_approx(z):
    # Abramowitz & Stegun 7.1.26 (max abs err ~1.5e-7); built only from ops with
    # guaranteed Mosaic lowerings (abs/exp/mul/add/where).
    p = 0.3275911
    a1, a2, a3, a4, a5 = (0.254829592, -0.284496736, 1.421413741,
                          -1.453152027, 1.061405429)
    az = jnp.abs(z)
    t = 1.0 / (1.0 + p * az)
    poly = t * (a1 + t * (a2 + t * (a3 + t * (a4 + t * a5))))
    y = 1.0 - poly * jnp.exp(-az * az)
    return jnp.where(z < 0.0, -y, y)


def _gelu_exact(x):
    # PyTorch nn.GELU() default is the exact (erf-based) GELU.
    return 0.5 * x * (1.0 + _erf_approx(x * _SQRT_HALF))


def _row_layer_norm(rows, g_ref, b_ref, eps):
    """LayerNorm over the channel axis; `rows` is a list of (1, ts) channel rows."""
    c = len(rows)
    inv_c = 1.0 / c
    mu = rows[0]
    for i in range(1, c):
        mu = mu + rows[i]
    mu = mu * inv_c
    d = [r - mu for r in rows]
    var = d[0] * d[0]
    for i in range(1, c):
        var = var + d[i] * d[i]
    var = var * inv_c
    inv = jax.lax.rsqrt(var + eps)
    return [d[i] * inv * g_ref[i] + b_ref[i] for i in range(c)]


def _mat_rows(rows, w_ref, n_out, base=0):
    """Tiny-K matmul on lane-dense rows: out[n] = sum_k w[base + k*n_out + n] * rows[k].

    `w_ref` is a flat f32 SMEM ref (scalar reads); each row is a (1, ts) vector.
    """
    out = []
    for n in range(n_out):
        acc = rows[0] * w_ref[base + n]
        for k in range(1, len(rows)):
            acc = acc + rows[k] * w_ref[base + k * n_out + n]
        out.append(acc)
    return out


def _self_attention_kernel(x_ref, wq_ref, wv_ref, a_ref, wo_ref, bo_ref,
                           g1_ref, b1_ref, g2_ref, b2_ref,
                           w1_ref, fb1_ref, w2_ref, fb2_ref,
                           out_ref, *, num_heads, head_dim, eps):
    # x_ref / out_ref blocks: (T, C, ts) -- lane-dense in the position axis.
    t_dim = x_ref.shape[0]          # attention "T" axis == module batch
    c_dim = x_ref.shape[1]
    n_heads, dh = num_heads, head_dim
    hd = n_heads * dh
    scale = 1.0 / math.sqrt(dh)

    # ---- load + LN1, kept as per-channel (1, ts) lane-dense rows ------------
    x_rows, xn_rows = [], []
    for t in range(t_dim):
        xt = x_ref[t].astype(jnp.float32)                 # (C, ts); f32 even for bf16 x
        rows = [xt[ci:ci + 1, :] for ci in range(c_dim)]
        x_rows.append(rows)                               # pre-LN x for the residual
        xn_rows.append(_row_layer_norm(rows, g1_ref, b1_ref, eps))

    # ---- q (== k), |q|^2 per head, and XA = xn @ A_h (A_h precomputed) ------
    q_rows, qsq, xa_rows = [], [], []
    for t in range(t_dim):
        qt = _mat_rows(xn_rows[t], wq_ref, hd)            # hd rows, j = h*dh + d
        q_rows.append(qt)
        qsq_t, xa_t = [], []
        for h in range(n_heads):
            o = h * dh
            sq = qt[o] * qt[o]
            for d in range(1, dh):
                sq = sq + qt[o + d] * qt[o + d]
            qsq_t.append(sq)
            xa_t.append(_mat_rows(xn_rows[t], a_ref, c_dim, base=h * c_dim * c_dim))
        qsq.append(qsq_t)
        xa_rows.append(xa_t)

    # ---- exp(L2 logits): symmetric, diagonal is exactly exp(0) = 1 ----------
    # logit(t,s) = -|q_t - q_s|^2 / sqrt(dh) <= 0, so the softmax max is 0 and no
    # separate max pass is needed.  Only the upper triangle is computed.
    exps = [[[None] * t_dim for _ in range(t_dim)] for _ in range(n_heads)]
    for h in range(n_heads):
        o = h * dh
        for t in range(t_dim):
            for s in range(t + 1, t_dim):
                dot = q_rows[t][o] * q_rows[s][o]
                for d in range(1, dh):
                    dot = dot + q_rows[t][o + d] * q_rows[s][o + d]
                sq_dist = qsq[t][h] + qsq[s][h] - 2.0 * dot
                e = jnp.exp(-sq_dist * scale)
                exps[h][t][s] = e
                exps[h][s][t] = e

    # ---- per batch-row: softmax mix, value/out projections, MLP, residuals --
    for t in range(t_dim):
        pxav = []                                          # hd rows, j = h*dh + d
        for h in range(n_heads):
            off_diag = [exps[h][t][s] for s in range(t_dim) if s != t]
            if off_diag:
                denom = off_diag[0]
                for e in off_diag[1:]:
                    denom = denom + e
                denom = denom + 1.0                        # diagonal contributes exp(0)=1
                r = pl.reciprocal(denom, approx=True)      # EUP slot
                inv = r * (2.0 - denom * r)                # one cheap Newton refinement
            else:
                inv = None                                 # softmax over a single element
            pxa = []
            for n in range(c_dim):
                acc = xa_rows[t][h][n]                     # s == t term (weight 1)
                for s in range(t_dim):
                    if s == t:
                        continue
                    acc = acc + exps[h][t][s] * xa_rows[s][h][n]
                pxa.append(acc if inv is None else acc * inv)
            # Per-head accumulation into the flat (h, d) list -- no concatenate.
            pxav.extend(_mat_rows(pxa, wv_ref, dh, base=h * c_dim * dh))

        attn = _mat_rows(pxav, wo_ref, c_dim)              # out_proj (weight.T, flat)
        out1 = [attn[ci] + bo_ref[ci] + x_rows[t][ci] for ci in range(c_dim)]
        n2 = _row_layer_norm(out1, g2_ref, b2_ref, eps)
        hid = _mat_rows(n2, w1_ref, c_dim)
        hid = [_gelu_exact(hid[j] + fb1_ref[j]) for j in range(c_dim)]
        out2 = _mat_rows(hid, w2_ref, c_dim)
        y = [out2[ci] + fb2_ref[ci] + out1[ci] for ci in range(c_dim)]
        out_ref[t, :, :] = jnp.concatenate(y, axis=0).astype(out_ref.dtype)


def _num_tensorcores_per_chip():
    # v5e / v6e have a single TensorCore; v4 / v5p / v7x have two.  Default to 2
    # (the multi-step policy is also correct on 1-TC chips).
    try:
        kind = jax.devices()[0].device_kind.lower().replace(" ", "")
    except Exception:
        return 2
    for tag in ("v5e", "v5lite", "v6e", "v6lite"):
        if tag in kind:
            return 1
    return 2


def _pick_position_tile(s_pad, num_tc):
    """Choose the position-tile size; s_pad is already a multiple of 128."""
    if num_tc <= 1:
        # Single TensorCore: a full-extent step avoids ~0.35us/step overhead; the
        # per-step VMEM footprint is tiny (C is small), so this easily fits.
        if s_pad <= 2048:
            return s_pad
        for ts in (2048, 1024, 512, 256, 128):
            if s_pad % ts == 0:
                return ts
        return 128
    # >=2 TensorCores: want >=2 grid steps, preferably an even count so both cores
    # get equal work; keep tiles a multiple of 128 (lane-dense stores).
    for want_even in (True, False):
        for ts in (1024, 512, 256, 128):
            n = s_pad // ts
            if s_pad % ts == 0 and n >= 2 and (n % 2 == 0 or not want_even):
                return ts
    return s_pad


def self_attention_forward(x, params, *, num_heads=1, eps=1e-5):
    """Pallas TPU forward of SelfAttention (default embed_dim == in_channels).

    x: (B, C, H, W) NCHW.  Returns (B, C, H, W), dtype of x.
    """
    b, c, h, w = x.shape
    s = h * w
    head_dim = c // num_heads
    assert head_dim * num_heads == c, "embed_dim must be divisible by num_heads"
    # Scalar-unrolled channel/batch loops are specialized for small C and B; larger
    # sizes need the MXU / scratch-staged variant (see TODO at top of file).
    assert c <= 32 and b <= 8, "kernel is specialized for small channel/batch counts"

    f32 = jnp.float32
    hp = jax.lax.Precision.HIGHEST

    # --- weight-only precompute + flattening (wrapper-side layout plumbing) ---
    wq3 = params["q_weight"].astype(f32)                          # (C, H, Dh)
    wv3 = params["v_weight"].astype(f32)                          # (C, H, Dh)
    wq_flat = wq3.reshape(-1)                                     # [m*H*Dh + h*Dh + d]
    a_flat = (jnp.einsum("mhd,nhd->hmn", wq3, wq3, precision=hp)
              / math.sqrt(head_dim)).reshape(-1)                  # [h*C*C + m*C + n]
    wv_flat = jnp.transpose(wv3, (1, 0, 2)).reshape(-1)           # [h*C*Dh + n*Dh + d]
    wo_t = params["out_proj_w"].astype(f32).T.reshape(-1)         # [j*C + c_out]
    w1_t = params["ff1_w"].astype(f32).T.reshape(-1)              # [k*C + j]
    w2_t = params["ff2_w"].astype(f32).T.reshape(-1)              # [j*C + c_out]
    bo = params["out_proj_b"].astype(f32)
    g1 = params["ln1_w"].astype(f32)
    b1 = params["ln1_b"].astype(f32)
    g2 = params["ln2_w"].astype(f32)
    b2 = params["ln2_b"].astype(f32)
    fb1 = params["ff1_b"].astype(f32)
    fb2 = params["ff2_b"].astype(f32)

    # --- lane-dense kernel I/O: (B, C, S), S padded to a multiple of 128 ------
    x_flat = x.reshape(b, c, s)
    s_pad = ((s + 127) // 128) * 128
    if s_pad != s:
        # Padded positions are computed independently (attention mixes only over
        # the batch axis) and sliced away afterwards; zeros stay finite through LN.
        x_flat = jnp.pad(x_flat, ((0, 0), (0, 0), (0, s_pad - s)))

    ts = _pick_position_tile(s_pad, _num_tensorcores_per_chip())
    grid = (s_pad // ts,)

    kernel = functools.partial(_self_attention_kernel, num_heads=num_heads,
                               head_dim=head_dim, eps=eps)

    smem_spec = pl.BlockSpec(memory_space=pltpu.MemorySpace.SMEM)
    weights = (wq_flat, wv_flat, a_flat, wo_t, bo, g1, b1, g2, b2,
               w1_t, fb1, w2_t, fb2)
    in_specs = [pl.BlockSpec((b, c, ts), lambda i: (0, 0, i))]
    in_specs += [smem_spec] * len(weights)
    out_spec = pl.BlockSpec((b, c, ts), lambda i: (0, 0, i))

    out_flat = pl.pallas_call(
        kernel,
        out_shape=jax.ShapeDtypeStruct((b, c, s_pad), x.dtype),
        grid_spec=pltpu.PrefetchScalarGridSpec(
            num_scalar_prefetch=0,
            grid=grid,
            in_specs=in_specs,
            out_specs=out_spec,
        ),
        compiler_params=pltpu.CompilerParams(
            dimension_semantics=("parallel",),
        ),
    )(x_flat, *weights)

    if s_pad != s:
        out_flat = out_flat[:, :, :s]
    return out_flat.reshape(b, c, h, w)


def _reference_forward(x, params, *, num_heads=1, eps=1e-5):
    """Plain-JAX mirror of the PyTorch SelfAttention forward (use_conv=False)."""
    hp = jax.lax.Precision.HIGHEST
    b, c, hh, ww = x.shape
    s = hh * ww
    dh = c // num_heads
    xi = jnp.transpose(x, (0, 2, 3, 1)).reshape(b, s, c)   # (T=B, N=S, D=C)

    def ln(v, g, bb):
        mu = jnp.mean(v, axis=-1, keepdims=True)
        var = jnp.mean((v - mu) ** 2, axis=-1, keepdims=True)
        return (v - mu) / jnp.sqrt(var + eps) * g + bb

    norm_is = ln(xi, params["ln1_w"], params["ln1_b"])
    wq, wv = params["q_weight"], params["v_weight"]
    q = jnp.einsum("tbm,mhd->tbhd", norm_is, wq, precision=hp)
    k = jnp.einsum("tbm,mhd->tbhd", norm_is, wq, precision=hp)
    sq = (jnp.einsum("tbhd,tbhd->tbh", q, q, precision=hp)[:, None]
          + jnp.einsum("sbhd,sbhd->sbh", k, k, precision=hp)[None, :]
          - 2.0 * jnp.einsum("tbhd,sbhd->tsbh", q, k, precision=hp))
    attn_w = jax.nn.softmax(-sq / math.sqrt(dh), axis=1)
    a_mat = jnp.einsum("mhd,nhd->hmn", wq, wq, precision=hp) / math.sqrt(dh)
    xa = jnp.einsum("tbm,hmn->tbhn", norm_is, a_mat, precision=hp)
    pxa = jnp.einsum("tsbh,sbhm->tbhm", attn_w, xa, precision=hp)
    pxav = jnp.einsum("tbhm,mhd->tbhd", pxa, wv, precision=hp).reshape(b, s, c)
    attn_out = jnp.dot(pxav, params["out_proj_w"].T, precision=hp) + params["out_proj_b"]
    out1 = attn_out + xi
    n2 = ln(out1, params["ln2_w"], params["ln2_b"])
    hid = jnp.dot(n2, params["ff1_w"].T, precision=hp) + params["ff1_b"]
    hid = 0.5 * hid * (1.0 + jax.lax.erf(hid * _SQRT_HALF))           # exact GELU
    out2 = jnp.dot(hid, params["ff2_w"].T, precision=hp) + params["ff2_b"]
    y = out2 + out1
    return jnp.transpose(y.reshape(b, hh, ww, c), (0, 3, 1, 2))


if __name__ == "__main__":
    key = jax.random.PRNGKey(0)
    ks = jax.random.split(key, 14)

    batch, channels, spatial = 2, 4, 16          # x: (2, 4, 16, 16), S = 256
    num_heads = 1                                # SelfAttention default
    head_dim = channels // num_heads
    f32 = jnp.float32

    # NOTE: the PyTorch module zero-inits the attention weights (making that branch
    # identically zero); random values are used so the check exercises every code
    # path while keeping the same forward semantics.
    params = {
        "q_weight": 0.4 * jax.random.normal(ks[0], (channels, num_heads, head_dim), f32),
        "v_weight": 0.4 * jax.random.normal(ks[1], (channels, num_heads, head_dim), f32),
        "out_proj_w": 0.4 * jax.random.normal(ks[2], (channels, channels), f32),
        "out_proj_b": 0.1 * jax.random.normal(ks[3], (channels,), f32),
        "ln1_w": 1.0 + 0.1 * jax.random.normal(ks[4], (channels,), f32),
        "ln1_b": 0.1 * jax.random.normal(ks[5], (channels,), f32),
        "ln2_w": 1.0 + 0.1 * jax.random.normal(ks[6], (channels,), f32),
        "ln2_b": 0.1 * jax.random.normal(ks[7], (channels,), f32),
        "ff1_w": 0.4 * jax.random.normal(ks[8], (channels, channels), f32),
        "ff1_b": 0.1 * jax.random.normal(ks[9], (channels,), f32),
        "ff2_w": 0.4 * jax.random.normal(ks[10], (channels, channels), f32),
        "ff2_b": 0.1 * jax.random.normal(ks[11], (channels,), f32),
    }
    x = jax.random.normal(ks[12], (batch, channels, spatial, spatial), f32)

    out = self_attention_forward(x, params, num_heads=num_heads)
    out = jax.block_until_ready(out)

    ref = _reference_forward(x, params, num_heads=num_heads)
    assert out.shape == x.shape
    assert out.dtype == x.dtype
    max_err = float(jnp.max(jnp.abs(out - ref)))
    assert max_err < 1e-4, f"max abs error too large: {max_err}"
    print("KERNEL_OK")
</pallas_src>

<mosaic_0001>
module attributes {stable_mosaic.version = 11 : i64} {
  func.func @_self_attention_kernel(%arg0: i32, %arg1: memref<2x4x128xf32, #tpu.memory_space<vmem>>, %arg2: memref<16xf32, #tpu.memory_space<smem>>, %arg3: memref<16xf32, #tpu.memory_space<smem>>, %arg4: memref<16xf32, #tpu.memory_space<smem>>, %arg5: memref<16xf32, #tpu.memory_space<smem>>, %arg6: memref<4xf32, #tpu.memory_space<smem>>, %arg7: memref<4xf32, #tpu.memory_space<smem>>, %arg8: memref<4xf32, #tpu.memory_space<smem>>, %arg9: memref<4xf32, #tpu.memory_space<smem>>, %arg10: memref<4xf32, #tpu.memory_space<smem>>, %arg11: memref<16xf32, #tpu.memory_space<smem>>, %arg12: memref<4xf32, #tpu.memory_space<smem>>, %arg13: memref<16xf32, #tpu.memory_space<smem>>, %arg14: memref<4xf32, #tpu.memory_space<smem>>, %arg15: memref<2x4x128xf32, #tpu.memory_space<vmem>>) attributes {dimension_semantics = [#tpu.dimension_semantics<parallel>], iteration_bounds = array<i64: 2>, scalar_prefetch = 0 : i64, scratch_operands = 0 : i64, tpu.core_type = #tpu.core_type<tc>, window_params = [{transform_indices = @transform_0, window_bounds = array<i64: 2, 4, 128>}, {transform_indices = @transform_1, window_bounds = array<i64: 16>}, {transform_indices = @transform_2, window_bounds = array<i64: 16>}, {transform_indices = @transform_3, window_bounds = array<i64: 16>}, {transform_indices = @transform_4, window_bounds = array<i64: 16>}, {transform_indices = @transform_5, window_bounds = array<i64: 4>}, {transform_indices = @transform_6, window_bounds = array<i64: 4>}, {transform_indices = @transform_7, window_bounds = array<i64: 4>}, {transform_indices = @transform_8, window_bounds = array<i64: 4>}, {transform_indices = @transform_9, window_bounds = array<i64: 4>}, {transform_indices = @transform_10, window_bounds = array<i64: 16>}, {transform_indices = @transform_11, window_bounds = array<i64: 4>}, {transform_indices = @transform_12, window_bounds = array<i64: 16>}, {transform_indices = @transform_13, window_bounds = array<i64: 4>}, {transform_indices = @transform_14, window_bounds = array<i64: 2, 4, 128>}]} {
    %c0 = arith.constant 0 : index
    %c0_0 = arith.constant 0 : index
    %c0_1 = arith.constant 0 : index
    %0 = vector.load %arg1[%c0, %c0_0, %c0_1] : memref<2x4x128xf32, #tpu.memory_space<vmem>>, vector<1x4x128xf32>
    %1 = vector.shape_cast %0 : vector<1x4x128xf32> to vector<4x128xf32>
    %2 = vector.extract_strided_slice %1 {offsets = [0, 0], sizes = [1, 128], strides = [1, 1]} : vector<4x128xf32> to vector<1x128xf32>
    %3 = vector.extract_strided_slice %1 {offsets = [1, 0], sizes = [1, 128], strides = [1, 1]} : vector<4x128xf32> to vector<1x128xf32>
    %4 = vector.extract_strided_slice %1 {offsets = [2, 0], sizes = [1, 128], strides = [1, 1]} : vector<4x128xf32> to vector<1x128xf32>
    %5 = vector.extract_strided_slice %1 {offsets = [3, 0], sizes = [1, 128], strides = [1, 1]} : vector<4x128xf32> to vector<1x128xf32>
    %6 = arith.addf %2, %3 : vector<1x128xf32>
    %7 = arith.addf %6, %4 : vector<1x128xf32>
    %8 = arith.addf %7, %5 : vector<1x128xf32>
    %cst = arith.constant 2.500000e-01 : f32
    %9 = vector.broadcast %cst : f32 to vector<1x128xf32>
    %10 = arith.mulf %8, %9 : vector<1x128xf32>
    %11 = arith.subf %2, %10 : vector<1x128xf32>
    %12 = arith.subf %3, %10 : vector<1x128xf32>
    %13 = arith.subf %4, %10 : vector<1x128xf32>
    %14 = arith.subf %5, %10 : vector<1x128xf32>
    %15 = arith.mulf %11, %11 : vector<1x128xf32>
    %16 = arith.mulf %12, %12 : vector<1x128xf32>
    %17 = arith.addf %15, %16 : vector<1x128xf32>
    %18 = arith.mulf %13, %13 : vector<1x128xf32>
    %19 = arith.addf %17, %18 : vector<1x128xf32>
    %20 = arith.mulf %14, %14 : vector<1x128xf32>
    %21 = arith.addf %19, %20 : vector<1x128xf32>
    %cst_2 = arith.constant 2.500000e-01 : f32
    %22 = vector.broadcast %cst_2 : f32 to vector<1x128xf32>
    %23 = arith.mulf %21, %22 : vector<1x128xf32>
    %cst_3 = arith.constant 9.99999974E-6 : f32
    %24 = vector.broadcast %cst_3 : f32 to vector<1x128xf32>
    %25 = arith.addf %23, %24 : vector<1x128xf32>
    %26 = math.rsqrt %25 : vector<1x128xf32>
    %27 = arith.mulf %11, %26 : vector<1x128xf32>
    %c0_4 = arith.constant 0 : index
    %28 = memref.load %arg7[%c0_4] : memref<4xf32, #tpu.memory_space<smem>>
    %29 = vector.broadcast %28 : f32 to vector<1x128xf32>
    %30 = arith.mulf %27, %29 : vector<1x128xf32>
    %c0_5 = arith.constant 0 : index
    %31 = memref.load %arg8[%c0_5] : memref<4xf32, #tpu.memory_space<smem>>
    %32 = vector.broadcast %31 : f32 to vector<1x128xf32>
    %33 = arith.addf %30, %32 : vector<1x128xf32>
    %34 = arith.mulf %12, %26 : vector<1x128xf32>
    %c1 = arith.constant 1 : index
    %35 = memref.load %arg7[%c1] : memref<4xf32, #tpu.memory_space<smem>>
    %36 = vector.broadcast %35 : f32 to vector<1x128xf32>
    %37 = arith.mulf %34, %36 : vector<1x128xf32>
    %c1_6 = arith.constant 1 : index
    %38 = memref.load %arg8[%c1_6] : memref<4xf32, #tpu.memory_space<smem>>
    %39 = vector.broadcast %38 : f32 to vector<1x128xf32>
    %40 = arith.addf %37, %39 : vector<1x128xf32>
    %41 = arith.mulf %13, %26 : vector<1x128xf32>
    %c2 = arith.constant 2 : index
    %42 = memref.load %arg7[%c2] : memref<4xf32, #tpu.memory_space<smem>>
    %43 = vector.broadcast %42 : f32 to vector<1x128xf32>
    %44 = arith.mulf %41, %43 : vector<1x128xf32>
    %c2_7 = arith.constant 2 : index
    %45 = memref.load %arg8[%c2_7] : memref<4xf32, #tpu.memory_space<smem>>
    %46 = vector.broadcast %45 : f32 to vector<1x128xf32>
    %47 = arith.addf %44, %46 : vector<1x128xf32>
    %48 = arith.mulf %14, %26 : vector<1x128xf32>
    %c3 = arith.constant 3 : index
    %49 = memref.load %arg7[%c3] : memref<4xf32, #tpu.memory_space<smem>>
    %50 = vector.broadcast %49 : f32 to vector<1x128xf32>
    %51 = arith.mulf %48, %50 : vector<1x128xf32>
    %c3_8 = arith.constant 3 : index
    %52 = memref.load %arg8[%c3_8] : memref<4xf32, #tpu.memory_space<smem>>
    %53 = vector.broadcast %52 : f32 to vector<1x128xf32>
    %54 = arith.addf %51, %53 : vector<1x128xf32>
    %c1_9 = arith.constant 1 : index
    %c0_10 = arith.constant 0 : index
    %c0_11 = arith.constant 0 : index
    %55 = vector.load %arg1[%c1_9, %c0_10, %c0_11] : memref<2x4x128xf32, #tpu.memory_space<vmem>>, vector<1x4x128xf32>
    %56 = vector.shape_cast %55 : vector<1x4x128xf32> to vector<4x128xf32>
    %57 = vector.extract_strided_slice %56 {offsets = [0, 0], sizes = [1, 128], strides = [1, 1]} : vector<4x128xf32> to vector<1x128xf32>
    %58 = vector.extract_strided_slice %56 {offsets = [1, 0], sizes = [1, 128], strides = [1, 1]} : vector<4x128xf32> to vector<1x128xf32>
    %59 = vector.extract_strided_slice %56 {offsets = [2, 0], sizes = [1, 128], strides = [1, 1]} : vector<4x128xf32> to vector<1x128xf32>
    %60 = vector.extract_strided_slice %56 {offsets = [3, 0], sizes = [1, 128], strides = [1, 1]} : vector<4x128xf32> to vector<1x128xf32>
    %61 = arith.addf %57, %58 : vector<1x128xf32>
    %62 = arith.addf %61, %59 : vector<1x128xf32>
    %63 = arith.addf %62, %60 : vector<1x128xf32>
    %cst_12 = arith.constant 2.500000e-01 : f32
    %64 = vector.broadcast %cst_12 : f32 to vector<1x128xf32>
    %65 = arith.mulf %63, %64 : vector<1x128xf32>
    %66 = arith.subf %57, %65 : vector<1x128xf32>
    %67 = arith.subf %58, %65 : vector<1x128xf32>
    %68 = arith.subf %59, %65 : vector<1x128xf32>
    %69 = arith.subf %60, %65 : vector<1x128xf32>
    %70 = arith.mulf %66, %66 : vector<1x128xf32>
    %71 = arith.mulf %67, %67 : vector<1x128xf32>
    %72 = arith.addf %70, %71 : vector<1x128xf32>
    %73 = arith.mulf %68, %68 : vector<1x128xf32>
    %74 = arith.addf %72, %73 : vector<1x128xf32>
    %75 = arith.mulf %69, %69 : vector<1x128xf32>
    %76 = arith.addf %74, %75 : vector<1x128xf32>
    %cst_13 = arith.constant 2.500000e-01 : f32
    %77 = vector.broadcast %cst_13 : f32 to vector<1x128xf32>
    %78 = arith.mulf %76, %77 : vector<1x128xf32>
    %cst_14 = arith.constant 9.99999974E-6 : f32
    %79 = vector.broadcast %cst_14 : f32 to vector<1x128xf32>
    %80 = arith.addf %78, %79 : vector<1x128xf32>
    %81 = math.rsqrt %80 : vector<1x128xf32>
    %82 = arith.mulf %66, %81 : vector<1x128xf32>
    %c0_15 = arith.constant 0 : index
    %83 = memref.load %arg7[%c0_15] : memref<4xf32, #tpu.memory_space<smem>>
    %84 = vector.broadcast %83 : f32 to vector<1x128xf32>
    %85 = arith.mulf %82, %84 : vector<1x128xf32>
    %c0_16 = arith.constant 0 : index
    %86 = memref.load %arg8[%c0_16] : memref<4xf32, #tpu.memory_space<smem>>
    %87 = vector.broadcast %86 : f32 to vector<1x128xf32>
    %88 = arith.addf %85, %87 : vector<1x128xf32>
    %89 = arith.mulf %67, %81 : vector<1x128xf32>
    %c1_17 = arith.constant 1 : index
    %90 = memref.load %arg7[%c1_17] : memref<4xf32, #tpu.memory_space<smem>>
    %91 = vector.broadcast %90 : f32 to vector<1x128xf32>
    %92 = arith.mulf %89, %91 : vector<1x128xf32>
    %c1_18 = arith.constant 1 : index
    %93 = memref.load %arg8[%c1_18] : memref<4xf32, #tpu.memory_space<smem>>
    %94 = vector.broadcast %93 : f32 to vector<1x128xf32>
    %95 = arith.addf %92, %94 : vector<1x128xf32>
    %96 = arith.mulf %68, %81 : vector<1x128xf32>
    %c2_19 = arith.constant 2 : index
    %97 = memref.load %arg7[%c2_19] : memref<4xf32, #tpu.memory_space<smem>>
    %98 = vector.broadcast %97 : f32 to vector<1x128xf32>
    %99 = arith.mulf %96, %98 : vector<1x128xf32>
    %c2_20 = arith.constant 2 : index
    %100 = memref.load %arg8[%c2_20] : memref<4xf32, #tpu.memory_space<smem>>
    %101 = vector.broadcast %100 : f32 to vector<1x128xf32>
    %102 = arith.addf %99, %101 : vector<1x128xf32>
    %103 = arith.mulf %69, %81 : vector<1x128xf32>
    %c3_21 = arith.constant 3 : index
    %104 = memref.load %arg7[%c3_21] : memref<4xf32, #tpu.memory_space<smem>>
    %105 = vector.broadcast %104 : f32 to vector<1x128xf32>
    %106 = arith.mulf %103, %105 : vector<1x128xf32>
    %c3_22 = arith.constant 3 : index
    %107 = memref.load %arg8[%c3_22] : memref<4xf32, #tpu.memory_space<smem>>
    %108 = vector.broadcast %107 : f32 to vector<1x128xf32>
    %109 = arith.addf %106, %108 : vector<1x128xf32>
    %c0_23 = arith.constant 0 : index
    %110 = memref.load %arg2[%c0_23] : memref<16xf32, #tpu.memory_space<smem>>
    %111 = vector.broadcast %110 : f32 to vector<1x128xf32>
    %112 = arith.mulf %33, %111 : vector<1x128xf32>
    %c4 = arith.constant 4 : index
    %113 = memref.load %arg2[%c4] : memref<16xf32, #tpu.memory_space<smem>>
    %114 = vector.broadcast %113 : f32 to vector<1x128xf32>
    %115 = arith.mulf %40, %114 : vector<1x128xf32>
    %116 = arith.addf %112, %115 : vector<1x128xf32>
    %c8 = arith.constant 8 : index
    %117 = memref.load %arg2[%c8] : memref<16xf32, #tpu.memory_space<smem>>
    %118 = vector.broadcast %117 : f32 to vector<1x128xf32>
    %119 = arith.mulf %47, %118 : vector<1x128xf32>
    %120 = arith.addf %116, %119 : vector<1x128xf32>
    %c12 = arith.constant 12 : index
    %121 = memref.load %arg2[%c12] : memref<16xf32, #tpu.memory_space<smem>>
    %122 = vector.broadcast %121 : f32 to vector<1x128xf32>
    %123 = arith.mulf %54, %122 : vector<1x128xf32>
    %124 = arith.addf %120, %123 : vector<1x128xf32>
    %c1_24 = arith.constant 1 : index
    %125 = memref.load %arg2[%c1_24] : memref<16xf32, #tpu.memory_space<smem>>
    %126 = vector.broadcast %125 : f32 to vector<1x128xf32>
    %127 = arith.mulf %33, %126 : vector<1x128xf32>
    %c5 = arith.constant 5 : index
    %128 = memref.load %arg2[%c5] : memref<16xf32, #tpu.memory_space<smem>>
    %129 = vector.broadcast %128 : f32 to vector<1x128xf32>
    %130 = arith.mulf %40, %129 : vector<1x128xf32>
    %131 = arith.addf %127, %130 : vector<1x128xf32>
    %c9 = arith.constant 9 : index
    %132 = memref.load %arg2[%c9] : memref<16xf32, #tpu.memory_space<smem>>
    %133 = vector.broadcast %132 : f32 to vector<1x128xf32>
    %134 = arith.mulf %47, %133 : vector<1x128xf32>
    %135 = arith.addf %131, %134 : vector<1x128xf32>
    %c13 = arith.constant 13 : index
    %136 = memref.load %arg2[%c13] : memref<16xf32, #tpu.memory_space<smem>>
    %137 = vector.broadcast %136 : f32 to vector<1x128xf32>
    %138 = arith.mulf %54, %137 : vector<1x128xf32>
    %139 = arith.addf %135, %138 : vector<1x128xf32>
    %c2_25 = arith.constant 2 : index
    %140 = memref.load %arg2[%c2_25] : memref<16xf32, #tpu.memory_space<smem>>
    %141 = vector.broadcast %140 : f32 to vector<1x128xf32>
    %142 = arith.mulf %33, %141 : vector<1x128xf32>
    %c6 = arith.constant 6 : index
    %143 = memref.load %arg2[%c6] : memref<16xf32, #tpu.memory_space<smem>>
    %144 = vector.broadcast %143 : f32 to vector<1x128xf32>
    %145 = arith.mulf %40, %144 : vector<1x128xf32>
    %146 = arith.addf %142, %145 : vector<1x128xf32>
    %c10 = arith.constant 10 : index
    %147 = memref.load %arg2[%c10] : memref<16xf32, #tpu.memory_space<smem>>
    %148 = vector.broadcast %147 : f32 to vector<1x128xf32>
    %149 = arith.mulf %47, %148 : vector<1x128xf32>
    %150 = arith.addf %146, %149 : vector<1x128xf32>
    %c14 = arith.constant 14 : index
    %151 = memref.load %arg2[%c14] : memref<16xf32, #tpu.memory_space<smem>>
    %152 = vector.broadcast %151 : f32 to vector<1x128xf32>
    %153 = arith.mulf %54, %152 : vector<1x128xf32>
    %154 = arith.addf %150, %153 : vector<1x128xf32>
    %c3_26 = arith.constant 3 : index
    %155 = memref.load %arg2[%c3_26] : memref<16xf32, #tpu.memory_space<smem>>
    %156 = vector.broadcast %155 : f32 to vector<1x128xf32>
    %157 = arith.mulf %33, %156 : vector<1x128xf32>
    %c7 = arith.constant 7 : index
    %158 = memref.load %arg2[%c7] : memref<16xf32, #tpu.memory_space<smem>>
    %159 = vector.broadcast %158 : f32 to vector<1x128xf32>
    %160 = arith.mulf %40, %159 : vector<1x128xf32>
    %161 = arith.addf %157, %160 : vector<1x128xf32>
    %c11 = arith.constant 11 : index
    %162 = memref.load %arg2[%c11] : memref<16xf32, #tpu.memory_space<smem>>
    %163 = vector.broadcast %162 : f32 to vector<1x128xf32>
    %164 = arith.mulf %47, %163 : vector<1x128xf32>
    %165 = arith.addf %161, %164 : vector<1x128xf32>
    %c15 = arith.constant 15 : index
    %166 = memref.load %arg2[%c15] : memref<16xf32, #tpu.memory_space<smem>>
    %167 = vector.broadcast %166 : f32 to vector<1x128xf32>
    %168 = arith.mulf %54, %167 : vector<1x128xf32>
    %169 = arith.addf %165, %168 : vector<1x128xf32>
    %170 = arith.mulf %124, %124 : vector<1x128xf32>
    %171 = arith.mulf %139, %139 : vector<1x128xf32>
    %172 = arith.addf %170, %171 : vector<1x128xf32>
    %173 = arith.mulf %154, %154 : vector<1x128xf32>
    %174 = arith.addf %172, %173 : vector<1x128xf32>
    %175 = arith.mulf %169, %169 : vector<1x128xf32>
    %176 = arith.addf %174, %175 : vector<1x128xf32>
    %c0_27 = arith.constant 0 : index
    %177 = memref.load %arg4[%c0_27] : memref<16xf32, #tpu.memory_space<smem>>
    %178 = vector.broadcast %177 : f32 to vector<1x128xf32>
    %179 = arith.mulf %33, %178 : vector<1x128xf32>
    %c4_28 = arith.constant 4 : index
    %180 = memref.load %arg4[%c4_28] : memref<16xf32, #tpu.memory_space<smem>>
    %181 = vector.broadcast %180 : f32 to vector<1x128xf32>
    %182 = arith.mulf %40, %181 : vector<1x128xf32>
    %183 = arith.addf %179, %182 : vector<1x128xf32>
    %c8_29 = arith.constant 8 : index
    %184 = memref.load %arg4[%c8_29] : memref<16xf32, #tpu.memory_space<smem>>
    %185 = vector.broadcast %184 : f32 to vector<1x128xf32>
    %186 = arith.mulf %47, %185 : vector<1x128xf32>
    %187 = arith.addf %183, %186 : vector<1x128xf32>
    %c12_30 = arith.constant 12 : index
    %188 = memref.load %arg4[%c12_30] : memref<16xf32, #tpu.memory_space<smem>>
    %189 = vector.broadcast %188 : f32 to vector<1x128xf32>
    %190 = arith.mulf %54, %189 : vector<1x128xf32>
    %191 = arith.addf %187, %190 : vector<1x128xf32>
    %c1_31 = arith.constant 1 : index
    %192 = memref.load %arg4[%c1_31] : memref<16xf32, #tpu.memory_space<smem>>
    %193 = vector.broadcast %192 : f32 to vector<1x128xf32>
    %194 = arith.mulf %33, %193 : vector<1x128xf32>
    %c5_32 = arith.constant 5 : index
    %195 = memref.load %arg4[%c5_32] : memref<16xf32, #tpu.memory_space<smem>>
    %196 = vector.broadcast %195 : f32 to vector<1x128xf32>
    %197 = arith.mulf %40, %196 : vector<1x128xf32>
    %198 = arith.addf %194, %197 : vector<1x128xf32>
    %c9_33 = arith.constant 9 : index
    %199 = memref.load %arg4[%c9_33] : memref<16xf32, #tpu.memory_space<smem>>
    %200 = vector.broadcast %199 : f32 to vector<1x128xf32>
    %201 = arith.mulf %47, %200 : vector<1x128xf32>
    %202 = arith.addf %198, %201 : vector<1x128xf32>
    %c13_34 = arith.constant 13 : index
    %203 = memref.load %arg4[%c13_34] : memref<16xf32, #tpu.memory_space<smem>>
    %204 = vector.broadcast %203 : f32 to vector<1x128xf32>
    %205 = arith.mulf %54, %204 : vector<1x128xf32>
    %206 = arith.addf %202, %205 : vector<1x128xf32>
    %c2_35 = arith.constant 2 : index
    %207 = memref.load %arg4[%c2_35] : memref<16xf32, #tpu.memory_space<smem>>
    %208 = vector.broadcast %207 : f32 to vector<1x128xf32>
    %209 = arith.mulf %33, %208 : vector<1x128xf32>
    %c6_36 = arith.constant 6 : index
    %210 = memref.load %arg4[%c6_36] : memref<16xf32, #tpu.memory_space<smem>>
    %211 = vector.broadcast %210 : f32 to vector<1x128xf32>
    %212 = arith.mulf %40, %211 : vector<1x128xf32>
    %213 = arith.addf %209, %212 : vector<1x128xf32>
    %c10_37 = arith.constant 10 : index
    %214 = memref.load %arg4[%c10_37] : memref<16xf32, #tpu.memory_space<smem>>
    %215 = vector.broadcast %214 : f32 to vector<1x128xf32>
    %216 = arith.mulf %47, %215 : vector<1x128xf32>
    %217 = arith.addf %213, %216 : vector<1x128xf32>
    %c14_38 = arith.constant 14 : index
    %218 = memref.load %arg4[%c14_38] : memref<16xf32, #tpu.memory_space<smem>>
    %219 = vector.broadcast %218 : f32 to vector<1x128xf32>
    %220 = arith.mulf %54, %219 : vector<1x128xf32>
    %221 = arith.addf %217, %220 : vector<1x128xf32>
    %c3_39 = arith.constant 3 : index
    %222 = memref.load %arg4[%c3_39] : memref<16xf32, #tpu.memory_space<smem>>
    %223 = vector.broadcast %222 : f32 to vector<1x128xf32>
    %224 = arith.mulf %33, %223 : vector<1x128xf32>
    %c7_40 = arith.constant 7 : index
    %225 = memref.load %arg4[%c7_40] : memref<16xf32, #tpu.memory_space<smem>>
    %226 = vector.broadcast %225 : f32 to vector<1x128xf32>
    %227 = arith.mulf %40, %226 : vector<1x128xf32>
    %228 = arith.addf %224, %227 : vector<1x128xf32>
    %c11_41 = arith.constant 11 : index
    %229 = memref.load %arg4[%c11_41] : memref<16xf32, #tpu.memory_space<smem>>
    %230 = vector.broadcast %229 : f32 to vector<1x128xf32>
    %231 = arith.mulf %47, %230 : vector<1x128xf32>
    %232 = arith.addf %228, %231 : vector<1x128xf32>
    %c15_42 = arith.constant 15 : index
    %233 = memref.load %arg4[%c15_42] : memref<16xf32, #tpu.memory_space<smem>>
    %234 = vector.broadcast %233 : f32 to vector<1x128xf32>
    %235 = arith.mulf %54, %234 : vector<1x128xf32>
    %236 = arith.addf %232, %235 : vector<1x128xf32>
    %c0_43 = arith.constant 0 : index
    %237 = memref.load %arg2[%c0_43] : memref<16xf32, #tpu.memory_space<smem>>
    %238 = vector.broadcast %237 : f32 to vector<1x128xf32>
    %239 = arith.mulf %88, %238 : vector<1x128xf32>
    %c4_44 = arith.constant 4 : index
    %240 = memref.load %arg2[%c4_44] : memref<16xf32, #tpu.memory_space<smem>>
    %241 = vector.broadcast %240 : f32 to vector<1x128xf32>
    %242 = arith.mulf %95, %241 : vector<1x128xf32>
    %243 = arith.addf %239, %242 : vector<1x128xf32>
    %c8_45 = arith.constant 8 : index
    %244 = memref.load %arg2[%c8_45] : memref<16xf32, #tpu.memory_space<smem>>
    %245 = vector.broadcast %244 : f32 to vector<1x128xf32>
    %246 = arith.mulf %102, %245 : vector<1x128xf32>
    %247 = arith.addf %243, %246 : vector<1x128xf32>
    %c12_46 = arith.constant 12 : index
    %248 = memref.load %arg2[%c12_46] : memref<16xf32, #tpu.memory_space<smem>>
    %249 = vector.broadcast %248 : f32 to vector<1x128xf32>
    %250 = arith.mulf %109, %249 : vector<1x128xf32>
    %251 = arith.addf %247, %250 : vector<1x128xf32>
    %c1_47 = arith.constant 1 : index
    %252 = memref.load %arg2[%c1_47] : memref<16xf32, #tpu.memory_space<smem>>
    %253 = vector.broadcast %252 : f32 to vector<1x128xf32>
    %254 = arith.mulf %88, %253 : vector<1x128xf32>
    %c5_48 = arith.constant 5 : index
    %255 = memref.load %arg2[%c5_48] : memref<16xf32, #tpu.memory_space<smem>>
    %256 = vector.broadcast %255 : f32 to vector<1x128xf32>
    %257 = arith.mulf %95, %256 : vector<1x128xf32>
    %258 = arith.addf %254, %257 : vector<1x128xf32>
    %c9_49 = arith.constant 9 : index
    %259 = memref.load %arg2[%c9_49] : memref<16xf32, #tpu.memory_space<smem>>
    %260 = vector.broadcast %259 : f32 to vector<1x128xf32>
    %261 = arith.mulf %102, %260 : vector<1x128xf32>
    %262 = arith.addf %258, %261 : vector<1x128xf32>
    %c13_50 = arith.constant 13 : index
    %263 = memref.load %arg2[%c13_50] : memref<16xf32, #tpu.memory_space<smem>>
    %264 = vector.broadcast %263 : f32 to vector<1x128xf32>
    %265 = arith.mulf %109, %264 : vector<1x128xf32>
    %266 = arith.addf %262, %265 : vector<1x128xf32>
    %c2_51 = arith.constant 2 : index
    %267 = memref.load %arg2[%c2_51] : memref<16xf32, #tpu.memory_space<smem>>
    %268 = vector.broadcast %267 : f32 to vector<1x128xf32>
    %269 = arith.mulf %88, %268 : vector<1x128xf32>
    %c6_52 = arith.constant 6 : index
    %270 = memref.load %arg2[%c6_52] : memref<16xf32, #tpu.memory_space<smem>>
    %271 = vector.broadcast %270 : f32 to vector<1x128xf32>
    %272 = arith.mulf %95, %271 : vector<1x128xf32>
    %273 = arith.addf %269, %272 : vector<1x128xf32>
    %c10_53 = arith.constant 10 : index
    %274 = memref.load %arg2[%c10_53] : memref<16xf32, #tpu.memory_space<smem>>
    %275 = vector.broadcast %274 : f32 to vector<1x128xf32>
    %276 = arith.mulf %102, %275 : vector<1x128xf32>
    %277 = arith.addf %273, %276 : vector<1x128xf32>
    %c14_54 = arith.constant 14 : index
    %278 = memref.load %arg2[%c14_54] : memref<16xf32, #tpu.memory_space<smem>>
    %279 = vector.broadcast %278 : f32 to vector<1x128xf32>
    %280 = arith.mulf %109, %279 : vector<1x128xf32>
    %281 = arith.addf %277, %280 : vector<1x128xf32>
    %c3_55 = arith.constant 3 : index
    %282 = memref.load %arg2[%c3_55] : memref<16xf32, #tpu.memory_space<smem>>
    %283 = vector.broadcast %282 : f32 to vector<1x128xf32>
    %284 = arith.mulf %88, %283 : vector<1x128xf32>
    %c7_56 = arith.constant 7 : index
    %285 = memref.load %arg2[%c7_56] : memref<16xf32, #tpu.memory_space<smem>>
    %286 = vector.broadcast %285 : f32 to vector<1x128xf32>
    %287 = arith.mulf %95, %286 : vector<1x128xf32>
    %288 = arith.addf %284, %287 : vector<1x128xf32>
    %c11_57 = arith.constant 11 : index
    %289 = memref.load %arg2[%c11_57] : memref<16xf32, #tpu.memory_space<smem>>
    %290 = vector.broadcast %289 : f32 to vector<1x128xf32>
    %291 = arith.mulf %102, %290 : vector<1x128xf32>
    %292 = arith.addf %288, %291 : vector<1x128xf32>
    %c15_58 = arith.constant 15 : index
    %293 = memref.load %arg2[%c15_58] : memref<16xf32, #tpu.memory_space<smem>>
    %294 = vector.broadcast %293 : f32 to vector<1x128xf32>
    %295 = arith.mulf %109, %294 : vector<1x128xf32>
    %296 = arith.addf %292, %295 : vector<1x128xf32>
    %297 = arith.mulf %251, %251 : vector<1x128xf32>
    %298 = arith.mulf %266, %266 : vector<1x128xf32>
    %299 = arith.addf %297, %298 : vector<1x128xf32>
    %300 = arith.mulf %281, %281 : vector<1x128xf32>
    %301 = arith.addf %299, %300 : vector<1x128xf32>
    %302 = arith.mulf %296, %296 : vector<1x128xf32>
    %303 = arith.addf %301, %302 : vector<1x128xf32>
    %c0_59 = arith.constant 0 : index
    %304 = memref.load %arg4[%c0_59] : memref<16xf32, #tpu.memory_space<smem>>
    %305 = vector.broadcast %304 : f32 to vector<1x128xf32>
    %306 = arith.mulf %88, %305 : vector<1x128xf32>
    %c4_60 = arith.constant 4 : index
    %307 = memref.load %arg4[%c4_60] : memref<16xf32, #tpu.memory_space<smem>>
    %308 = vector.broadcast %307 : f32 to vector<1x128xf32>
    %309 = arith.mulf %95, %308 : vector<1x128xf32>
    %310 = arith.addf %306, %309 : vector<1x128xf32>
    %c8_61 = arith.constant 8 : index
    %311 = memref.load %arg4[%c8_61] : memref<16xf32, #tpu.memory_space<smem>>
    %312 = vector.broadcast %311 : f32 to vector<1x128xf32>
    %313 = arith.mulf %102, %312 : vector<1x128xf32>
    %314 = arith.addf %310, %313 : vector<1x128xf32>
    %c12_62 = arith.constant 12 : index
    %315 = memref.load %arg4[%c12_62] : memref<16xf32, #tpu.memory_space<smem>>
    %316 = vector.broadcast %315 : f32 to vector<1x128xf32>
    %317 = arith.mulf %109, %316 : vector<1x128xf32>
    %318 = arith.addf %314, %317 : vector<1x128xf32>
    %c1_63 = arith.constant 1 : index
    %319 = memref.load %arg4[%c1_63] : memref<16xf32, #tpu.memory_space<smem>>
    %320 = vector.broadcast %319 : f32 to vector<1x128xf32>
    %321 = arith.mulf %88, %320 : vector<1x128xf32>
    %c5_64 = arith.constant 5 : index
    %322 = memref.load %arg4[%c5_64] : memref<16xf32, #tpu.memory_space<smem>>
    %323 = vector.broadcast %322 : f32 to vector<1x128xf32>
    %324 = arith.mulf %95, %323 : vector<1x128xf32>
    %325 = arith.addf %321, %324 : vector<1x128xf32>
    %c9_65 = arith.constant 9 : index
    %326 = memref.load %arg4[%c9_65] : memref<16xf32, #tpu.memory_space<smem>>
    %327 = vector.broadcast %326 : f32 to vector<1x128xf32>
    %328 = arith.mulf %102, %327 : vector<1x128xf32>
    %329 = arith.addf %325, %328 : vector<1x128xf32>
    %c13_66 = arith.constant 13 : index
    %330 = memref.load %arg4[%c13_66] : memref<16xf32, #tpu.memory_space<smem>>
    %331 = vector.broadcast %330 : f32 to vector<1x128xf32>
    %332 = arith.mulf %109, %331 : vector<1x128xf32>
    %333 = arith.addf %329, %332 : vector<1x128xf32>
    %c2_67 = arith.constant 2 : index
    %334 = memref.load %arg4[%c2_67] : memref<16xf32, #tpu.memory_space<smem>>
    %335 = vector.broadcast %334 : f32 to vector<1x128xf32>
    %336 = arith.mulf %88, %335 : vector<1x128xf32>
    %c6_68 = arith.constant 6 : index
    %337 = memref.load %arg4[%c6_68] : memref<16xf32, #tpu.memory_space<smem>>
    %338 = vector.broadcast %337 : f32 to vector<1x128xf32>
    %339 = arith.mulf %95, %338 : vector<1x128xf32>
    %340 = arith.addf %336, %339 : vector<1x128xf32>
    %c10_69 = arith.constant 10 : index
    %341 = memref.load %arg4[%c10_69] : memref<16xf32, #tpu.memory_space<smem>>
    %342 = vector.broadcast %341 : f32 to vector<1x128xf32>
    %343 = arith.mulf %102, %342 : vector<1x128xf32>
    %344 = arith.addf %340, %343 : vector<1x128xf32>
    %c14_70 = arith.constant 14 : index
    %345 = memref.load %arg4[%c14_70] : memref<16xf32, #tpu.memory_space<smem>>
    %346 = vector.broadcast %345 : f32 to vector<1x128xf32>
    %347 = arith.mulf %109, %346 : vector<1x128xf32>
    %348 = arith.addf %344, %347 : vector<1x128xf32>
    %c3_71 = arith.constant 3 : index
    %349 = memref.load %arg4[%c3_71] : memref<16xf32, #tpu.memory_space<smem>>
    %350 = vector.broadcast %349 : f32 to vector<1x128xf32>
    %351 = arith.mulf %88, %350 : vector<1x128xf32>
    %c7_72 = arith.constant 7 : index
    %352 = memref.load %arg4[%c7_72] : memref<16xf32, #tpu.memory_space<smem>>
    %353 = vector.broadcast %352 : f32 to vector<1x128xf32>
    %354 = arith.mulf %95, %353 : vector<1x128xf32>
    %355 = arith.addf %351, %354 : vector<1x128xf32>
    %c11_73 = arith.constant 11 : index
    %356 = memref.load %arg4[%c11_73] : memref<16xf32, #tpu.memory_space<smem>>
    %357 = vector.broadcast %356 : f32 to vector<1x128xf32>
    %358 = arith.mulf %102, %357 : vector<1x128xf32>
    %359 = arith.addf %355, %358 : vector<1x128xf32>
    %c15_74 = arith.constant 15 : index
    %360 = memref.load %arg4[%c15_74] : memref<16xf32, #tpu.memory_space<smem>>
    %361 = vector.broadcast %360 : f32 to vector<1x128xf32>
    %362 = arith.mulf %109, %361 : vector<1x128xf32>
    %363 = arith.addf %359, %362 : vector<1x128xf32>
    %364 = arith.mulf %124, %251 : vector<1x128xf32>
    %365 = arith.mulf %139, %266 : vector<1x128xf32>
    %366 = arith.addf %364, %365 : vector<1x128xf32>
    %367 = arith.mulf %154, %281 : vector<1x128xf32>
    %368 = arith.addf %366, %367 : vector<1x128xf32>
    %369 = arith.mulf %169, %296 : vector<1x128xf32>
    %370 = arith.addf %368, %369 : vector<1x128xf32>
    %371 = arith.addf %176, %303 : vector<1x128xf32>
    %cst_75 = arith.constant 2.000000e+00 : f32
    %372 = vector.broadcast %cst_75 : f32 to vector<1x128xf32>
    %373 = arith.mulf %372, %370 : vector<1x128xf32>
    %374 = arith.subf %371, %373 : vector<1x128xf32>
    %cst_76 = arith.constant 0.000000e+00 : f32
    %375 = vector.broadcast %cst_76 : f32 to vector<1x128xf32>
    %376 = arith.subf %375, %374 : vector<1x128xf32>
    %cst_77 = arith.constant 5.000000e-01 : f32
    %377 = vector.broadcast %cst_77 : f32 to vector<1x128xf32>
    %378 = arith.mulf %376, %377 : vector<1x128xf32>
    %379 = math.exp %378 : vector<1x128xf32>
    %cst_78 = arith.constant 1.000000e+00 : f32
    %380 = vector.broadcast %cst_78 : f32 to vector<1x128xf32>
    %381 = arith.addf %379, %380 : vector<1x128xf32>
    %382 = tpu.reciprocal %381 {approx = true} : vector<1x128xf32> -> vector<1x128xf32>
    %383 = arith.mulf %381, %382 : vector<1x128xf32>
    %cst_79 = arith.constant 2.000000e+00 : f32
    %384 = vector.broadcast %cst_79 : f32 to vector<1x128xf32>
    %385 = arith.subf %384, %383 : vector<1x128xf32>
    %386 = arith.mulf %382, %385 : vector<1x128xf32>
    %387 = arith.mulf %379, %318 : vector<1x128xf32>
    %388 = arith.addf %191, %387 : vector<1x128xf32>
    %389 = arith.mulf %388, %386 : vector<1x128xf32>
    %390 = arith.mulf %379, %333 : vector<1x128xf32>
    %391 = arith.addf %206, %390 : vector<1x128xf32>
    %392 = arith.mulf %391, %386 : vector<1x128xf32>
    %393 = arith.mulf %379, %348 : vector<1x128xf32>
    %394 = arith.addf %221, %393 : vector<1x128xf32>
    %395 = arith.mulf %394, %386 : vector<1x128xf32>
    %396 = arith.mulf %379, %363 : vector<1x128xf32>
    %397 = arith.addf %236, %396 : vector<1x128xf32>
    %398 = arith.mulf %397, %386 : vector<1x128xf32>
    %c0_80 = arith.constant 0 : index
    %399 = memref.load %arg3[%c0_80] : memref<16xf32, #tpu.memory_space<smem>>
    %400 = vector.broadcast %399 : f32 to vector<1x128xf32>
    %401 = arith.mulf %389, %400 : vector<1x128xf32>
    %c4_81 = arith.constant 4 : index
    %402 = memref.load %arg3[%c4_81] : memref<16xf32, #tpu.memory_space<smem>>
    %403 = vector.broadcast %402 : f32 to vector<1x128xf32>
    %404 = arith.mulf %392, %403 : vector<1x128xf32>
    %405 = arith.addf %401, %404 : vector<1x128xf32>
    %c8_82 = arith.constant 8 : index
    %406 = memref.load %arg3[%c8_82] : memref<16xf32, #tpu.memory_space<smem>>
    %407 = vector.broadcast %406 : f32 to vector<1x128xf32>
    %408 = arith.mulf %395, %407 : vector<1x128xf32>
    %409 = arith.addf %405, %408 : vector<1x128xf32>
    %c12_83 = arith.constant 12 : index
    %410 = memref.load %arg3[%c12_83] : memref<16xf32, #tpu.memory_space<smem>>
    %411 = vector.broadcast %410 : f32 to vector<1x128xf32>
    %412 = arith.mulf %398, %411 : vector<1x128xf32>
    %413 = arith.addf %409, %412 : vector<1x128xf32>
    %c1_84 = arith.constant 1 : index
    %414 = memref.load %arg3[%c1_84] : memref<16xf32, #tpu.memory_space<smem>>
    %415 = vector.broadcast %414 : f32 to vector<1x128xf32>
    %416 = arith.mulf %389, %415 : vector<1x128xf32>
    %c5_85 = arith.constant 5 : index
    %417 = memref.load %arg3[%c5_85] : memref<16xf32, #tpu.memory_space<smem>>
    %418 = vector.broadcast %417 : f32 to vector<1x128xf32>
    %419 = arith.mulf %392, %418 : vector<1x128xf32>
    %420 = arith.addf %416, %419 : vector<1x128xf32>
    %c9_86 = arith.constant 9 : index
    %421 = memref.load %arg3[%c9_86] : memref<16xf32, #tpu.memory_space<smem>>
    %422 = vector.broadcast %421 : f32 to vector<1x128xf32>
    %423 = arith.mulf %395, %422 : vector<1x128xf32>
    %424 = arith.addf %420, %423 : vector<1x128xf32>
    %c13_87 = arith.constant 13 : index
    %425 = memref.load %arg3[%c13_87] : memref<16xf32, #tpu.memory_space<smem>>
    %426 = vector.broadcast %425 : f32 to vector<1x128xf32>
    %427 = arith.mulf %398, %426 : vector<1x128xf32>
    %428 = arith.addf %424, %427 : vector<1x128xf32>
    %c2_88 = arith.constant 2 : index
    %429 = memref.load %arg3[%c2_88] : memref<16xf32, #tpu.memory_space<smem>>
    %430 = vector.broadcast %429 : f32 to vector<1x128xf32>
    %431 = arith.mulf %389, %430 : vector<1x128xf32>
    %c6_89 = arith.constant 6 : index
    %432 = memref.load %arg3[%c6_89] : memref<16xf32, #tpu.memory_space<smem>>
    %433 = vector.broadcast %432 : f32 to vector<1x128xf32>
    %434 = arith.mulf %392, %433 : vector<1x128xf32>
    %435 = arith.addf %431, %434 : vector<1x128xf32>
    %c10_90 = arith.constant 10 : index
    %436 = memref.load %arg3[%c10_90] : memref<16xf32, #tpu.memory_space<smem>>
    %437 = vector.broadcast %436 : f32 to vector<1x128xf32>
    %438 = arith.mulf %395, %437 : vector<1x128xf32>
    %439 = arith.addf %435, %438 : vector<1x128xf32>
    %c14_91 = arith.constant 14 : index
    %440 = memref.load %arg3[%c14_91] : memref<16xf32, #tpu.memory_space<smem>>
    %441 = vector.broadcast %440 : f32 to vector<1x128xf32>
    %442 = arith.mulf %398, %441 : vector<1x128xf32>
    %443 = arith.addf %439, %442 : vector<1x128xf32>
    %c3_92 = arith.constant 3 : index
    %444 = memref.load %arg3[%c3_92] : memref<16xf32, #tpu.memory_space<smem>>
    %445 = vector.broadcast %444 : f32 to vector<1x128xf32>
    %446 = arith.mulf %389, %445 : vector<1x128xf32>
    %c7_93 = arith.constant 7 : index
    %447 = memref.load %arg3[%c7_93] : memref<16xf32, #tpu.memory_space<smem>>
    %448 = vector.broadcast %447 : f32 to vector<1x128xf32>
    %449 = arith.mulf %392, %448 : vector<1x128xf32>
    %450 = arith.addf %446, %449 : vector<1x128xf32>
    %c11_94 = arith.constant 11 : index
    %451 = memref.load %arg3[%c11_94] : memref<16xf32, #tpu.memory_space<smem>>
    %452 = vector.broadcast %451 : f32 to vector<1x128xf32>
    %453 = arith.mulf %395, %452 : vector<1x128xf32>
    %454 = arith.addf %450, %453 : vector<1x128xf32>
    %c15_95 = arith.constant 15 : index
    %455 = memref.load %arg3[%c15_95] : memref<16xf32, #tpu.memory_space<smem>>
    %456 = vector.broadcast %455 : f32 to vector<1x128xf32>
    %457 = arith.mulf %398, %456 : vector<1x128xf32>
    %458 = arith.addf %454, %457 : vector<1x128xf32>
    %c0_96 = arith.constant 0 : index
    %459 = memref.load %arg5[%c0_96] : memref<16xf32, #tpu.memory_space<smem>>
    %460 = vector.broadcast %459 : f32 to vector<1x128xf32>
    %461 = arith.mulf %413, %460 : vector<1x128xf32>
    %c4_97 = arith.constant 4 : index
    %462 = memref.load %arg5[%c4_97] : memref<16xf32, #tpu.memory_space<smem>>
    %463 = vector.broadcast %462 : f32 to vector<1x128xf32>
    %464 = arith.mulf %428, %463 : vector<1x128xf32>
    %465 = arith.addf %461, %464 : vector<1x128xf32>
    %c8_98 = arith.constant 8 : index
    %466 = memref.load %arg5[%c8_98] : memref<16xf32, #tpu.memory_space<smem>>
    %467 = vector.broadcast %466 : f32 to vector<1x128xf32>
    %468 = arith.mulf %443, %467 : vector<1x128xf32>
    %469 = arith.addf %465, %468 : vector<1x128xf32>
    %c12_99 = arith.constant 12 : index
    %470 = memref.load %arg5[%c12_99] : memref<16xf32, #tpu.memory_space<smem>>
    %471 = vector.broadcast %470 : f32 to vector<1x128xf32>
    %472 = arith.mulf %458, %471 : vector<1x128xf32>
    %473 = arith.addf %469, %472 : vector<1x128xf32>
    %c1_100 = arith.constant 1 : index
    %474 = memref.load %arg5[%c1_100] : memref<16xf32, #tpu.memory_space<smem>>
    %475 = vector.broadcast %474 : f32 to vector<1x128xf32>
    %476 = arith.mulf %413, %475 : vector<1x128xf32>
    %c5_101 = arith.constant 5 : index
    %477 = memref.load %arg5[%c5_101] : memref<16xf32, #tpu.memory_space<smem>>
    %478 = vector.broadcast %477 : f32 to vector<1x128xf32>
    %479 = arith.mulf %428, %478 : vector<1x128xf32>
    %480 = arith.addf %476, %479 : vector<1x128xf32>
    %c9_102 = arith.constant 9 : index
    %481 = memref.load %arg5[%c9_102] : memref<16xf32, #tpu.memory_space<smem>>
    %482 = vector.broadcast %481 : f32 to vector<1x128xf32>
    %483 = arith.mulf %443, %482 : vector<1x128xf32>
    %484 = arith.addf %480, %483 : vector<1x128xf32>
    %c13_103 = arith.constant 13 : index
    %485 = memref.load %arg5[%c13_103] : memref<16xf32, #tpu.memory_space<smem>>
    %486 = vector.broadcast %485 : f32 to vector<1x128xf32>
    %487 = arith.mulf %458, %486 : vector<1x128xf32>
    %488 = arith.addf %484, %487 : vector<1x128xf32>
    %c2_104 = arith.constant 2 : index
    %489 = memref.load %arg5[%c2_104] : memref<16xf32, #tpu.memory_space<smem>>
    %490 = vector.broadcast %489 : f32 to vector<1x128xf32>
    %491 = arith.mulf %413, %490 : vector<1x128xf32>
    %c6_105 = arith.constant 6 : index
    %492 = memref.load %arg5[%c6_105] : memref<16xf32, #tpu.memory_space<smem>>
    %493 = vector.broadcast %492 : f32 to vector<1x128xf32>
    %494 = arith.mulf %428, %493 : vector<1x128xf32>
    %495 = arith.addf %491, %494 : vector<1x128xf32>
    %c10_106 = arith.constant 10 : index
    %496 = memref.load %arg5[%c10_106] : memref<16xf32, #tpu.memory_space<smem>>
    %497 = vector.broadcast %496 : f32 to vector<1x128xf32>
    %498 = arith.mulf %443, %497 : vector<1x128xf32>
    %499 = arith.addf %495, %498 : vector<1x128xf32>
    %c14_107 = arith.constant 14 : index
    %500 = memref.load %arg5[%c14_107] : memref<16xf32, #tpu.memory_space<smem>>
    %501 = vector.broadcast %500 : f32 to vector<1x128xf32>
    %502 = arith.mulf %458, %501 : vector<1x128xf32>
    %503 = arith.addf %499, %502 : vector<1x128xf32>
    %c3_108 = arith.constant 3 : index
    %504 = memref.load %arg5[%c3_108] : memref<16xf32, #tpu.memory_space<smem>>
    %505 = vector.broadcast %504 : f32 to vector<1x128xf32>
    %506 = arith.mulf %413, %505 : vector<1x128xf32>
    %c7_109 = arith.constant 7 : index
    %507 = memref.load %arg5[%c7_109] : memref<16xf32, #tpu.memory_space<smem>>
    %508 = vector.broadcast %507 : f32 to vector<1x128xf32>
    %509 = arith.mulf %428, %508 : vector<1x128xf32>
    %510 = arith.addf %506, %509 : vector<1x128xf32>
    %c11_110 = arith.constant 11 : index
    %511 = memref.load %arg5[%c11_110] : memref<16xf32, #tpu.memory_space<smem>>
    %512 = vector.broadcast %511 : f32 to vector<1x128xf32>
    %513 = arith.mulf %443, %512 : vector<1x128xf32>
    %514 = arith.addf %510, %513 : vector<1x128xf32>
    %c15_111 = arith.constant 15 : index
    %515 = memref.load %arg5[%c15_111] : memref<16xf32, #tpu.memory_space<smem>>
    %516 = vector.broadcast %515 : f32 to vector<1x128xf32>
    %517 = arith.mulf %458, %516 : vector<1x128xf32>
    %518 = arith.addf %514, %517 : vector<1x128xf32>
    %c0_112 = arith.constant 0 : index
    %519 = memref.load %arg6[%c0_112] : memref<4xf32, #tpu.memory_space<smem>>
    %520 = vector.broadcast %519 : f32 to vector<1x128xf32>
    %521 = arith.addf %473, %520 : vector<1x128xf32>
    %522 = arith.addf %521, %2 : vector<1x128xf32>
    %c1_113 = arith.constant 1 : index
    %523 = memref.load %arg6[%c1_113] : memref<4xf32, #tpu.memory_space<smem>>
    %524 = vector.broadcast %523 : f32 to vector<1x128xf32>
    %525 = arith.addf %488, %524 : vector<1x128xf32>
    %526 = arith.addf %525, %3 : vector<1x128xf32>
    %c2_114 = arith.constant 2 : index
    %527 = memref.load %arg6[%c2_114] : memref<4xf32, #tpu.memory_space<smem>>
    %528 = vector.broadcast %527 : f32 to vector<1x128xf32>
    %529 = arith.addf %503, %528 : vector<1x128xf32>
    %530 = arith.addf %529, %4 : vector<1x128xf32>
    %c3_115 = arith.constant 3 : index
    %531 = memref.load %arg6[%c3_115] : memref<4xf32, #tpu.memory_space<smem>>
    %532 = vector.broadcast %531 : f32 to vector<1x128xf32>
    %533 = arith.addf %518, %532 : vector<1x128xf32>
    %534 = arith.addf %533, %5 : vector<1x128xf32>
    %535 = arith.addf %522, %526 : vector<1x128xf32>
    %536 = arith.addf %535, %530 : vector<1x128xf32>
    %537 = arith.addf %536, %534 : vector<1x128xf32>
    %cst_116 = arith.constant 2.500000e-01 : f32
    %538 = vector.broadcast %cst_116 : f32 to vector<1x128xf32>
    %539 = arith.mulf %537, %538 : vector<1x128xf32>
    %540 = arith.subf %522, %539 : vector<1x128xf32>
    %541 = arith.subf %526, %539 : vector<1x128xf32>
    %542 = arith.subf %530, %539 : vector<1x128xf32>
    %543 = arith.subf %534, %539 : vector<1x128xf32>
    %544 = arith.mulf %540, %540 : vector<1x128xf32>
    %545 = arith.mulf %541, %541 : vector<1x128xf32>
    %546 = arith.addf %544, %545 : vector<1x128xf32>
    %547 = arith.mulf %542, %542 : vector<1x128xf32>
    %548 = arith.addf %546, %547 : vector<1x128xf32>
    %549 = arith.mulf %543, %543 : vector<1x128xf32>
    %550 = arith.addf %548, %549 : vector<1x128xf32>
    %cst_117 = arith.constant 2.500000e-01 : f32
    %551 = vector.broadcast %cst_117 : f32 to vector<1x128xf32>
    %552 = arith.mulf %550, %551 : vector<1x128xf32>
    %cst_118 = arith.constant 9.99999974E-6 : f32
    %553 = vector.broadcast %cst_118 : f32 to vector<1x128xf32>
    %554 = arith.addf %552, %553 : vector<1x128xf32>
    %555 = math.rsqrt %554 : vector<1x128xf32>
    %556 = arith.mulf %540, %555 : vector<1x128xf32>
    %c0_119 = arith.constant 0 : index
    %557 = memref.load %arg9[%c0_119] : memref<4xf32, #tpu.memory_space<smem>>
    %558 = vector.broadcast %557 : f32 to vector<1x128xf32>
    %559 = arith.mulf %556, %558 : vector<1x128xf32>
    %c0_120 = arith.constant 0 : index
    %560 = memref.load %arg10[%c0_120] : memref<4xf32, #tpu.memory_space<smem>>
    %561 = vector.broadcast %560 : f32 to vector<1x128xf32>
    %562 = arith.addf %559, %561 : vector<1x128xf32>
    %563 = arith.mulf %541, %555 : vector<1x128xf32>
    %c1_121 = arith.constant 1 : index
    %564 = memref.load %arg9[%c1_121] : memref<4xf32, #tpu.memory_space<smem>>
    %565 = vector.broadcast %564 : f32 to vector<1x128xf32>
    %566 = arith.mulf %563, %565 : vector<1x128xf32>
    %c1_122 = arith.constant 1 : index
    %567 = memref.load %arg10[%c1_122] : memref<4xf32, #tpu.memory_space<smem>>
    %568 = vector.broadcast %567 : f32 to vector<1x128xf32>
    %569 = arith.addf %566, %568 : vector<1x128xf32>
    %570 = arith.mulf %542, %555 : vector<1x128xf32>
    %c2_123 = arith.constant 2 : index
    %571 = memref.load %arg9[%c2_123] : memref<4xf32, #tpu.memory_space<smem>>
    %572 = vector.broadcast %571 : f32 to vector<1x128xf32>
    %573 = arith.mulf %570, %572 : vector<1x128xf32>
    %c2_124 = arith.constant 2 : index
    %574 = memref.load %arg10[%c2_124] : memref<4xf32, #tpu.memory_space<smem>>
    %575 = vector.broadcast %574 : f32 to vector<1x128xf32>
    %576 = arith.addf %573, %575 : vector<1x128xf32>
    %577 = arith.mulf %543, %555 : vector<1x128xf32>
    %c3_125 = arith.constant 3 : index
    %578 = memref.load %arg9[%c3_125] : memref<4xf32, #tpu.memory_space<smem>>
    %579 = vector.broadcast %578 : f32 to vector<1x128xf32>
    %580 = arith.mulf %577, %579 : vector<1x128xf32>
    %c3_126 = arith.constant 3 : index
    %581 = memref.load %arg10[%c3_126] : memref<4xf32, #tpu.memory_space<smem>>
    %582 = vector.broadcast %581 : f32 to vector<1x128xf32>
    %583 = arith.addf %580, %582 : vector<1x128xf32>
    %c0_127 = arith.constant 0 : index
    %584 = memref.load %arg11[%c0_127] : memref<16xf32, #tpu.memory_space<smem>>
    %585 = vector.broadcast %584 : f32 to vector<1x128xf32>
    %586 = arith.mulf %562, %585 : vector<1x128xf32>
    %c4_128 = arith.constant 4 : index
    %587 = memref.load %arg11[%c4_128] : memref<16xf32, #tpu.memory_space<smem>>
    %588 = vector.broadcast %587 : f32 to vector<1x128xf32>
    %589 = arith.mulf %569, %588 : vector<1x128xf32>
    %590 = arith.addf %586, %589 : vector<1x128xf32>
    %c8_129 = arith.constant 8 : index
    %591 = memref.load %arg11[%c8_129] : memref<16xf32, #tpu.memory_space<smem>>
    %592 = vector.broadcast %591 : f32 to vector<1x128xf32>
    %593 = arith.mulf %576, %592 : vector<1x128xf32>
    %594 = arith.addf %590, %593 : vector<1x128xf32>
    %c12_130 = arith.constant 12 : index
    %595 = memref.load %arg11[%c12_130] : memref<16xf32, #tpu.memory_space<smem>>
    %596 = vector.broadcast %595 : f32 to vector<1x128xf32>
    %597 = arith.mulf %583, %596 : vector<1x128xf32>
    %598 = arith.addf %594, %597 : vector<1x128xf32>
    %c1_131 = arith.constant 1 : index
    %599 = memref.load %arg11[%c1_131] : memref<16xf32, #tpu.memory_space<smem>>
    %600 = vector.broadcast %599 : f32 to vector<1x128xf32>
    %601 = arith.mulf %562, %600 : vector<1x128xf32>
    %c5_132 = arith.constant 5 : index
    %602 = memref.load %arg11[%c5_132] : memref<16xf32, #tpu.memory_space<smem>>
    %603 = vector.broadcast %602 : f32 to vector<1x128xf32>
    %604 = arith.mulf %569, %603 : vector<1x128xf32>
    %605 = arith.addf %601, %604 : vector<1x128xf32>
    %c9_133 = arith.constant 9 : index
    %606 = memref.load %arg11[%c9_133] : memref<16xf32, #tpu.memory_space<smem>>
    %607 = vector.broadcast %606 : f32 to vector<1x128xf32>
    %608 = arith.mulf %576, %607 : vector<1x128xf32>
    %609 = arith.addf %605, %608 : vector<1x128xf32>
    %c13_134 = arith.constant 13 : index
    %610 = memref.load %arg11[%c13_134] : memref<16xf32, #tpu.memory_space<smem>>
    %611 = vector.broadcast %610 : f32 to vector<1x128xf32>
    %612 = arith.mulf %583, %611 : vector<1x128xf32>
    %613 = arith.addf %609, %612 : vector<1x128xf32>
    %c2_135 = arith.constant 2 : index
    %614 = memref.load %arg11[%c2_135] : memref<16xf32, #tpu.memory_space<smem>>
    %615 = vector.broadcast %614 : f32 to vector<1x128xf32>
    %616 = arith.mulf %562, %615 : vector<1x128xf32>
    %c6_136 = arith.constant 6 : index
    %617 = memref.load %arg11[%c6_136] : memref<16xf32, #tpu.memory_space<smem>>
    %618 = vector.broadcast %617 : f32 to vector<1x128xf32>
    %619 = arith.mulf %569, %618 : vector<1x128xf32>
    %620 = arith.addf %616, %619 : vector<1x128xf32>
    %c10_137 = arith.constant 10 : index
    %621 = memref.load %arg11[%c10_137] : memref<16xf32, #tpu.memory_space<smem>>
    %622 = vector.broadcast %621 : f32 to vector<1x128xf32>
    %623 = arith.mulf %576, %622 : vector<1x128xf32>
    %624 = arith.addf %620, %623 : vector<1x128xf32>
    %c14_138 = arith.constant 14 : index
    %625 = memref.load %arg11[%c14_138] : memref<16xf32, #tpu.memory_space<smem>>
    %626 = vector.broadcast %625 : f32 to vector<1x128xf32>
    %627 = arith.mulf %583, %626 : vector<1x128xf32>
    %628 = arith.addf %624, %627 : vector<1x128xf32>
    %c3_139 = arith.constant 3 : index
    %629 = memref.load %arg11[%c3_139] : memref<16xf32, #tpu.memory_space<smem>>
    %630 = vector.broadcast %629 : f32 to vector<1x128xf32>
    %631 = arith.mulf %562, %630 : vector<1x128xf32>
    %c7_140 = arith.constant 7 : index
    %632 = memref.load %arg11[%c7_140] : memref<16xf32, #tpu.memory_space<smem>>
    %633 = vector.broadcast %632 : f32 to vector<1x128xf32>
    %634 = arith.mulf %569, %633 : vector<1x128xf32>
    %635 = arith.addf %631, %634 : vector<1x128xf32>
    %c11_141 = arith.constant 11 : index
    %636 = memref.load %arg11[%c11_141] : memref<16xf32, #tpu.memory_space<smem>>
    %637 = vector.broadcast %636 : f32 to vector<1x128xf32>
    %638 = arith.mulf %576, %637 : vector<1x128xf32>
    %639 = arith.addf %635, %638 : vector<1x128xf32>
    %c15_142 = arith.constant 15 : index
    %640 = memref.load %arg11[%c15_142] : memref<16xf32, #tpu.memory_space<smem>>
    %641 = vector.broadcast %640 : f32 to vector<1x128xf32>
    %642 = arith.mulf %583, %641 : vector<1x128xf32>
    %643 = arith.addf %639, %642 : vector<1x128xf32>
    %c0_143 = arith.constant 0 : index
    %644 = memref.load %arg12[%c0_143] : memref<4xf32, #tpu.memory_space<smem>>
    %645 = vector.broadcast %644 : f32 to vector<1x128xf32>
    %646 = arith.addf %598, %645 : vector<1x128xf32>
    %cst_144 = arith.constant 5.000000e-01 : f32
    %647 = vector.broadcast %cst_144 : f32 to vector<1x128xf32>
    %648 = arith.mulf %647, %646 : vector<1x128xf32>
    %cst_145 = arith.constant 0.707106769 : f32
    %649 = vector.broadcast %cst_145 : f32 to vector<1x128xf32>
    %650 = arith.mulf %646, %649 : vector<1x128xf32>
    %651 = math.absf %650 : vector<1x128xf32>
    %cst_146 = arith.constant 0.327591091 : f32
    %652 = vector.broadcast %cst_146 : f32 to vector<1x128xf32>
    %653 = arith.mulf %652, %651 : vector<1x128xf32>
    %cst_147 = arith.constant 1.000000e+00 : f32
    %654 = vector.broadcast %cst_147 : f32 to vector<1x128xf32>
    %655 = arith.addf %654, %653 : vector<1x128xf32>
    %cst_148 = arith.constant 1.000000e+00 : f32
    %656 = vector.broadcast %cst_148 : f32 to vector<1x128xf32>
    %657 = arith.divf %656, %655 : vector<1x128xf32>
    %cst_149 = arith.constant 1.06140542 : f32
    %658 = vector.broadcast %cst_149 : f32 to vector<1x128xf32>
    %659 = arith.mulf %657, %658 : vector<1x128xf32>
    %cst_150 = arith.constant -1.45315206 : f32
    %660 = vector.broadcast %cst_150 : f32 to vector<1x128xf32>
    %661 = arith.addf %660, %659 : vector<1x128xf32>
    %662 = arith.mulf %657, %661 : vector<1x128xf32>
    %cst_151 = arith.constant 1.42141378 : f32
    %663 = vector.broadcast %cst_151 : f32 to vector<1x128xf32>
    %664 = arith.addf %663, %662 : vector<1x128xf32>
    %665 = arith.mulf %657, %664 : vector<1x128xf32>
    %cst_152 = arith.constant -0.284496725 : f32
    %666 = vector.broadcast %cst_152 : f32 to vector<1x128xf32>
    %667 = arith.addf %666, %665 : vector<1x128xf32>
    %668 = arith.mulf %657, %667 : vector<1x128xf32>
    %cst_153 = arith.constant 0.254829586 : f32
    %669 = vector.broadcast %cst_153 : f32 to vector<1x128xf32>
    %670 = arith.addf %669, %668 : vector<1x128xf32>
    %671 = arith.mulf %657, %670 : vector<1x128xf32>
    %cst_154 = arith.constant 0.000000e+00 : f32
    %672 = vector.broadcast %cst_154 : f32 to vector<1x128xf32>
    %673 = arith.subf %672, %651 : vector<1x128xf32>
    %674 = arith.mulf %673, %651 : vector<1x128xf32>
    %675 = math.exp %674 : vector<1x128xf32>
    %676 = arith.mulf %671, %675 : vector<1x128xf32>
    %cst_155 = arith.constant 1.000000e+00 : f32
    %677 = vector.broadcast %cst_155 : f32 to vector<1x128xf32>
    %678 = arith.subf %677, %676 : vector<1x128xf32>
    %cst_156 = arith.constant 0.000000e+00 : f32
    %679 = vector.broadcast %cst_156 : f32 to vector<1x128xf32>
    %680 = arith.cmpf olt, %650, %679 : vector<1x128xf32>
    %cst_157 = arith.constant 0.000000e+00 : f32
    %681 = vector.broadcast %cst_157 : f32 to vector<1x128xf32>
    %682 = arith.subf %681, %678 : vector<1x128xf32>
    %683 = arith.select %680, %682, %678 : vector<1x128xi1>, vector<1x128xf32>
    %cst_158 = arith.constant 1.000000e+00 : f32
    %684 = vector.broadcast %cst_158 : f32 to vector<1x128xf32>
    %685 = arith.addf %684, %683 : vector<1x128xf32>
    %686 = arith.mulf %648, %685 : vector<1x128xf32>
    %c1_159 = arith.constant 1 : index
    %687 = memref.load %arg12[%c1_159] : memref<4xf32, #tpu.memory_space<smem>>
    %688 = vector.broadcast %687 : f32 to vector<1x128xf32>
    %689 = arith.addf %613, %688 : vector<1x128xf32>
    %cst_160 = arith.constant 5.000000e-01 : f32
    %690 = vector.broadcast %cst_160 : f32 to vector<1x128xf32>
    %691 = arith.mulf %690, %689 : vector<1x128xf32>
    %cst_161 = arith.constant 0.707106769 : f32
    %692 = vector.broadcast %cst_161 : f32 to vector<1x128xf32>
    %693 = arith.mulf %689, %692 : vector<1x128xf32>
    %694 = math.absf %693 : vector<1x128xf32>
    %cst_162 = arith.constant 0.327591091 : f32
    %695 = vector.broadcast %cst_162 : f32 to vector<1x128xf32>
    %696 = arith.mulf %695, %694 : vector<1x128xf32>
    %cst_163 = arith.constant 1.000000e+00 : f32
    %697 = vector.broadcast %cst_163 : f32 to vector<1x128xf32>
    %698 = arith.addf %697, %696 : vector<1x128xf32>
    %cst_164 = arith.constant 1.000000e+00 : f32
    %699 = vector.broadcast %cst_164 : f32 to vector<1x128xf32>
    %700 = arith.divf %699, %698 : vector<1x128xf32>
    %cst_165 = arith.constant 1.06140542 : f32
    %701 = vector.broadcast %cst_165 : f32 to vector<1x128xf32>
    %702 = arith.mulf %700, %701 : vector<1x128xf32>
    %cst_166 = arith.constant -1.45315206 : f32
    %703 = vector.broadcast %cst_166 : f32 to vector<1x128xf32>
    %704 = arith.addf %703, %702 : vector<1x128xf32>
    %705 = arith.mulf %700, %704 : vector<1x128xf32>
    %cst_167 = arith.constant 1.42141378 : f32
    %706 = vector.broadcast %cst_167 : f32 to vector<1x128xf32>
    %707 = arith.addf %706, %705 : vector<1x128xf32>
    %708 = arith.mulf %700, %707 : vector<1x128xf32>
    %cst_168 = arith.constant -0.284496725 : f32
    %709 = vector.broadcast %cst_168 : f32 to vector<1x128xf32>
    %710 = arith.addf %709, %708 : vector<1x128xf32>
    %711 = arith.mulf %700, %710 : vector<1x128xf32>
    %cst_169 = arith.constant 0.254829586 : f32
    %712 = vector.broadcast %cst_169 : f32 to vector<1x128xf32>
    %713 = arith.addf %712, %711 : vector<1x128xf32>
    %714 = arith.mulf %700, %713 : vector<1x128xf32>
    %cst_170 = arith.constant 0.000000e+00 : f32
    %715 = vector.broadcast %cst_170 : f32 to vector<1x128xf32>
    %716 = arith.subf %715, %694 : vector<1x128xf32>
    %717 = arith.mulf %716, %694 : vector<1x128xf32>
    %718 = math.exp %717 : vector<1x128xf32>
    %719 = arith.mulf %714, %718 : vector<1x128xf32>
    %cst_171 = arith.constant 1.000000e+00 : f32
    %720 = vector.broadcast %cst_171 : f32 to vector<1x128xf32>
    %721 = arith.subf %720, %719 : vector<1x128xf32>
    %cst_172 = arith.constant 0.000000e+00 : f32
    %722 = vector.broadcast %cst_172 : f32 to vector<1x128xf32>
    %723 = arith.cmpf olt, %693, %722 : vector<1x128xf32>
    %cst_173 = arith.constant 0.000000e+00 : f32
    %724 = vector.broadcast %cst_173 : f32 to vector<1x128xf32>
    %725 = arith.subf %724, %721 : vector<1x128xf32>
    %726 = arith.select %723, %725, %721 : vector<1x128xi1>, vector<1x128xf32>
    %cst_174 = arith.constant 1.000000e+00 : f32
    %727 = vector.broadcast %cst_174 : f32 to vector<1x128xf32>
    %728 = arith.addf %727, %726 : vector<1x128xf32>
    %729 = arith.mulf %691, %728 : vector<1x128xf32>
    %c2_175 = arith.constant 2 : index
    %730 = memref.load %arg12[%c2_175] : memref<4xf32, #tpu.memory_space<smem>>
    %731 = vector.broadcast %730 : f32 to vector<1x128xf32>
    %732 = arith.addf %628, %731 : vector<1x128xf32>
    %cst_176 = arith.constant 5.000000e-01 : f32
    %733 = vector.broadcast %cst_176 : f32 to vector<1x128xf32>
    %734 = arith.mulf %733, %732 : vector<1x128xf32>
    %cst_177 = arith.constant 0.707106769 : f32
    %735 = vector.broadcast %cst_177 : f32 to vector<1x128xf32>
    %736 = arith.mulf %732, %735 : vector<1x128xf32>
    %737 = math.absf %736 : vector<1x128xf32>
    %cst_178 = arith.constant 0.327591091 : f32
    %738 = vector.broadcast %cst_178 : f32 to vector<1x128xf32>
    %739 = arith.mulf %738, %737 : vector<1x128xf32>
    %cst_179 = arith.constant 1.000000e+00 : f32
    %740 = vector.broadcast %cst_179 : f32 to vector<1x128xf32>
    %741 = arith.addf %740, %739 : vector<1x128xf32>
    %cst_180 = arith.constant 1.000000e+00 : f32
    %742 = vector.broadcast %cst_180 : f32 to vector<1x128xf32>
    %743 = arith.divf %742, %741 : vector<1x128xf32>
    %cst_181 = arith.constant 1.06140542 : f32
    %744 = vector.broadcast %cst_181 : f32 to vector<1x128xf32>
    %745 = arith.mulf %743, %744 : vector<1x128xf32>
    %cst_182 = arith.constant -1.45315206 : f32
    %746 = vector.broadcast %cst_182 : f32 to vector<1x128xf32>
    %747 = arith.addf %746, %745 : vector<1x128xf32>
    %748 = arith.mulf %743, %747 : vector<1x128xf32>
    %cst_183 = arith.constant 1.42141378 : f32
    %749 = vector.broadcast %cst_183 : f32 to vector<1x128xf32>
    %750 = arith.addf %749, %748 : vector<1x128xf32>
    %751 = arith.mulf %743, %750 : vector<1x128xf32>
    %cst_184 = arith.constant -0.284496725 : f32
    %752 = vector.broadcast %cst_184 : f32 to vector<1x128xf32>
    %753 = arith.addf %752, %751 : vector<1x128xf32>
    %754 = arith.mulf %743, %753 : vector<1x128xf32>
    %cst_185 = arith.constant 0.254829586 : f32
    %755 = vector.broadcast %cst_185 : f32 to vector<1x128xf32>
    %756 = arith.addf %755, %754 : vector<1x128xf32>
    %757 = arith.mulf %743, %756 : vector<1x128xf32>
    %cst_186 = arith.constant 0.000000e+00 : f32
    %758 = vector.broadcast %cst_186 : f32 to vector<1x128xf32>
    %759 = arith.subf %758, %737 : vector<1x128xf32>
    %760 = arith.mulf %759, %737 : vector<1x128xf32>
    %761 = math.exp %760 : vector<1x128xf32>
    %762 = arith.mulf %757, %761 : vector<1x128xf32>
    %cst_187 = arith.constant 1.000000e+00 : f32
    %763 = vector.broadcast %cst_187 : f32 to vector<1x128xf32>
    %764 = arith.subf %763, %762 : vector<1x128xf32>
    %cst_188 = arith.constant 0.000000e+00 : f32
    %765 = vector.broadcast %cst_188 : f32 to vector<1x128xf32>
    %766 = arith.cmpf olt, %736, %765 : vector<1x128xf32>
    %cst_189 = arith.constant 0.000000e+00 : f32
    %767 = vector.broadcast %cst_189 : f32 to vector<1x128xf32>
    %768 = arith.subf %767, %764 : vector<1x128xf32>
    %769 = arith.select %766, %768, %764 : vector<1x128xi1>, vector<1x128xf32>
    %cst_190 = arith.constant 1.000000e+00 : f32
    %770 = vector.broadcast %cst_190 : f32 to vector<1x128xf32>
    %771 = arith.addf %770, %769 : vector<1x128xf32>
    %772 = arith.mulf %734, %771 : vector<1x128xf32>
    %c3_191 = arith.constant 3 : index
    %773 = memref.load %arg12[%c3_191] : memref<4xf32, #tpu.memory_space<smem>>
    %774 = vector.broadcast %773 : f32 to vector<1x128xf32>
    %775 = arith.addf %643, %774 : vector<1x128xf32>
    %cst_192 = arith.constant 5.000000e-01 : f32
    %776 = vector.broadcast %cst_192 : f32 to vector<1x128xf32>
    %777 = arith.mulf %776, %775 : vector<1x128xf32>
    %cst_193 = arith.constant 0.707106769 : f32
    %778 = vector.broadcast %cst_193 : f32 to vector<1x128xf32>
    %779 = arith.mulf %775, %778 : vector<1x128xf32>
    %780 = math.absf %779 : vector<1x128xf32>
    %cst_194 = arith.constant 0.327591091 : f32
    %781 = vector.broadcast %cst_194 : f32 to vector<1x128xf32>
    %782 = arith.mulf %781, %780 : vector<1x128xf32>
    %cst_195 = arith.constant 1.000000e+00 : f32
    %783 = vector.broadcast %cst_195 : f32 to vector<1x128xf32>
    %784 = arith.addf %783, %782 : vector<1x128xf32>
    %cst_196 = arith.constant 1.000000e+00 : f32
    %785 = vector.broadcast %cst_196 : f32 to vector<1x128xf32>
    %786 = arith.divf %785, %784 : vector<1x128xf32>
    %cst_197 = arith.constant 1.06140542 : f32
    %787 = vector.broadcast %cst_197 : f32 to vector<1x128xf32>
    %788 = arith.mulf %786, %787 : vector<1x128xf32>
    %cst_198 = arith.constant -1.45315206 : f32
    %789 = vector.broadcast %cst_198 : f32 to vector<1x128xf32>
    %790 = arith.addf %789, %788 : vector<1x128xf32>
    %791 = arith.mulf %786, %790 : vector<1x128xf32>
    %cst_199 = arith.constant 1.42141378 : f32
    %792 = vector.broadcast %cst_199 : f32 to vector<1x128xf32>
    %793 = arith.addf %792, %791 : vector<1x128xf32>
    %794 = arith.mulf %786, %793 : vector<1x128xf32>
    %cst_200 = arith.constant -0.284496725 : f32
    %795 = vector.broadcast %cst_200 : f32 to vector<1x128xf32>
    %796 = arith.addf %795, %794 : vector<1x128xf32>
    %797 = arith.mulf %786, %796 : vector<1x128xf32>
    %cst_201 = arith.constant 0.254829586 : f32
    %798 = vector.broadcast %cst_201 : f32 to vector<1x128xf32>
    %799 = arith.addf %798, %797 : vector<1x128xf32>
    %800 = arith.mulf %786, %799 : vector<1x128xf32>
    %cst_202 = arith.constant 0.000000e+00 : f32
    %801 = vector.broadcast %cst_202 : f32 to vector<1x128xf32>
    %802 = arith.subf %801, %780 : vector<1x128xf32>
    %803 = arith.mulf %802, %780 : vector<1x128xf32>
    %804 = math.exp %803 : vector<1x128xf32>
    %805 = arith.mulf %800, %804 : vector<1x128xf32>
    %cst_203 = arith.constant 1.000000e+00 : f32
    %806 = vector.broadcast %cst_203 : f32 to vector<1x128xf32>
    %807 = arith.subf %806, %805 : vector<1x128xf32>
    %cst_204 = arith.constant 0.000000e+00 : f32
    %808 = vector.broadcast %cst_204 : f32 to vector<1x128xf32>
    %809 = arith.cmpf olt, %779, %808 : vector<1x128xf32>
    %cst_205 = arith.constant 0.000000e+00 : f32
    %810 = vector.broadcast %cst_205 : f32 to vector<1x128xf32>
    %811 = arith.subf %810, %807 : vector<1x128xf32>
    %812 = arith.select %809, %811, %807 : vector<1x128xi1>, vector<1x128xf32>
    %cst_206 = arith.constant 1.000000e+00 : f32
    %813 = vector.broadcast %cst_206 : f32 to vector<1x128xf32>
    %814 = arith.addf %813, %812 : vector<1x128xf32>
    %815 = arith.mulf %777, %814 : vector<1x128xf32>
    %c0_207 = arith.constant 0 : index
    %816 = memref.load %arg13[%c0_207] : memref<16xf32, #tpu.memory_space<smem>>
    %817 = vector.broadcast %816 : f32 to vector<1x128xf32>
    %818 = arith.mulf %686, %817 : vector<1x128xf32>
    %c4_208 = arith.constant 4 : index
    %819 = memref.load %arg13[%c4_208] : memref<16xf32, #tpu.memory_space<smem>>
    %820 = vector.broadcast %819 : f32 to vector<1x128xf32>
    %821 = arith.mulf %729, %820 : vector<1x128xf32>
    %822 = arith.addf %818, %821 : vector<1x128xf32>
    %c8_209 = arith.constant 8 : index
    %823 = memref.load %arg13[%c8_209] : memref<16xf32, #tpu.memory_space<smem>>
    %824 = vector.broadcast %823 : f32 to vector<1x128xf32>
    %825 = arith.mulf %772, %824 : vector<1x128xf32>
    %826 = arith.addf %822, %825 : vector<1x128xf32>
    %c12_210 = arith.constant 12 : index
    %827 = memref.load %arg13[%c12_210] : memref<16xf32, #tpu.memory_space<smem>>
    %828 = vector.broadcast %827 : f32 to vector<1x128xf32>
    %829 = arith.mulf %815, %828 : vector<1x128xf32>
    %830 = arith.addf %826, %829 : vector<1x128xf32>
    %c1_211 = arith.constant 1 : index
    %831 = memref.load %arg13[%c1_211] : memref<16xf32, #tpu.memory_space<smem>>
    %832 = vector.broadcast %831 : f32 to vector<1x128xf32>
    %833 = arith.mulf %686, %832 : vector<1x128xf32>
    %c5_212 = arith.constant 5 : index
    %834 = memref.load %arg13[%c5_212] : memref<16xf32, #tpu.memory_space<smem>>
    %835 = vector.broadcast %834 : f32 to vector<1x128xf32>
    %836 = arith.mulf %729, %835 : vector<1x128xf32>
    %837 = arith.addf %833, %836 : vector<1x128xf32>
    %c9_213 = arith.constant 9 : index
    %838 = memref.load %arg13[%c9_213] : memref<16xf32, #tpu.memory_space<smem>>
    %839 = vector.broadcast %838 : f32 to vector<1x128xf32>
    %840 = arith.mulf %772, %839 : vector<1x128xf32>
    %841 = arith.addf %837, %840 : vector<1x128xf32>
    %c13_214 = arith.constant 13 : index
    %842 = memref.load %arg13[%c13_214] : memref<16xf32, #tpu.memory_space<smem>>
    %843 = vector.broadcast %842 : f32 to vector<1x128xf32>
    %844 = arith.mulf %815, %843 : vector<1x128xf32>
    %845 = arith.addf %841, %844 : vector<1x128xf32>
    %c2_215 = arith.constant 2 : index
    %846 = memref.load %arg13[%c2_215] : memref<16xf32, #tpu.memory_space<smem>>
    %847 = vector.broadcast %846 : f32 to vector<1x128xf32>
    %848 = arith.mulf %686, %847 : vector<1x128xf32>
    %c6_216 = arith.constant 6 : index
    %849 = memref.load %arg13[%c6_216] : memref<16xf32, #tpu.memory_space<smem>>
    %850 = vector.broadcast %849 : f32 to vector<1x128xf32>
    %851 = arith.mulf %729, %850 : vector<1x128xf32>
    %852 = arith.addf %848, %851 : vector<1x128xf32>
    %c10_217 = arith.constant 10 : index
    %853 = memref.load %arg13[%c10_217] : memref<16xf32, #tpu.memory_space<smem>>
    %854 = vector.broadcast %853 : f32 to vector<1x128xf32>
    %855 = arith.mulf %772, %854 : vector<1x128xf32>
    %856 = arith.addf %852, %855 : vector<1x128xf32>
    %c14_218 = arith.constant 14 : index
    %857 = memref.load %arg13[%c14_218] : memref<16xf32, #tpu.memory_space<smem>>
    %858 = vector.broadcast %857 : f32 to vector<1x128xf32>
    %859 = arith.mulf %815, %858 : vector<1x128xf32>
    %860 = arith.addf %856, %859 : vector<1x128xf32>
    %c3_219 = arith.constant 3 : index
    %861 = memref.load %arg13[%c3_219] : memref<16xf32, #tpu.memory_space<smem>>
    %862 = vector.broadcast %861 : f32 to vector<1x128xf32>
    %863 = arith.mulf %686, %862 : vector<1x128xf32>
    %c7_220 = arith.constant 7 : index
    %864 = memref.load %arg13[%c7_220] : memref<16xf32, #tpu.memory_space<smem>>
    %865 = vector.broadcast %864 : f32 to vector<1x128xf32>
    %866 = arith.mulf %729, %865 : vector<1x128xf32>
    %867 = arith.addf %863, %866 : vector<1x128xf32>
    %c11_221 = arith.constant 11 : index
    %868 = memref.load %arg13[%c11_221] : memref<16xf32, #tpu.memory_space<smem>>
    %869 = vector.broadcast %868 : f32 to vector<1x128xf32>
    %870 = arith.mulf %772, %869 : vector<1x128xf32>
    %871 = arith.addf %867, %870 : vector<1x128xf32>
    %c15_222 = arith.constant 15 : index
    %872 = memref.load %arg13[%c15_222] : memref<16xf32, #tpu.memory_space<smem>>
    %873 = vector.broadcast %872 : f32 to vector<1x128xf32>
    %874 = arith.mulf %815, %873 : vector<1x128xf32>
    %875 = arith.addf %871, %874 : vector<1x128xf32>
    %c0_223 = arith.constant 0 : index
    %876 = memref.load %arg14[%c0_223] : memref<4xf32, #tpu.memory_space<smem>>
    %877 = vector.broadcast %876 : f32 to vector<1x128xf32>
    %878 = arith.addf %830, %877 : vector<1x128xf32>
    %879 = arith.addf %878, %522 : vector<1x128xf32>
    %c1_224 = arith.constant 1 : index
    %880 = memref.load %arg14[%c1_224] : memref<4xf32, #tpu.memory_space<smem>>
    %881 = vector.broadcast %880 : f32 to vector<1x128xf32>
    %882 = arith.addf %845, %881 : vector<1x128xf32>
    %883 = arith.addf %882, %526 : vector<1x128xf32>
    %c2_225 = arith.constant 2 : index
    %884 = memref.load %arg14[%c2_225] : memref<4xf32, #tpu.memory_space<smem>>
    %885 = vector.broadcast %884 : f32 to vector<1x128xf32>
    %886 = arith.addf %860, %885 : vector<1x128xf32>
    %887 = arith.addf %886, %530 : vector<1x128xf32>
    %c3_226 = arith.constant 3 : index
    %888 = memref.load %arg14[%c3_226] : memref<4xf32, #tpu.memory_space<smem>>
    %889 = vector.broadcast %888 : f32 to vector<1x128xf32>
    %890 = arith.addf %875, %889 : vector<1x128xf32>
    %891 = arith.addf %890, %534 : vector<1x128xf32>
    %892 = tpu.concatenate %879, %883, %887, %891 in 0 : vector<1x128xf32>, vector<1x128xf32>, vector<1x128xf32>, vector<1x128xf32> -> vector<4x128xf32>
    %c0_227 = arith.constant 0 : index
    %c0_228 = arith.constant 0 : index
    %c0_229 = arith.constant 0 : index
    %893 = vector.load %arg15[%c0_227, %c0_228, %c0_229] : memref<2x4x128xf32, #tpu.memory_space<vmem>>, vector<1x4x128xf32>
    %894 = vector.shape_cast %893 : vector<1x4x128xf32> to vector<4x128xf32>
    %895 = vector.shape_cast %892 : vector<4x128xf32> to vector<1x4x128xf32>
    tpu.vector_store %arg15[%c0_227, %c0_228, %c0_229], %895 {strides = array<i32>} : memref<2x4x128xf32, #tpu.memory_space<vmem>>, vector<1x4x128xf32>,
    %cst_230 = arith.constant 1.000000e+00 : f32
    %896 = vector.broadcast %cst_230 : f32 to vector<1x128xf32>
    %897 = arith.addf %379, %896 : vector<1x128xf32>
    %898 = tpu.reciprocal %897 {approx = true} : vector<1x128xf32> -> vector<1x128xf32>
    %899 = arith.mulf %897, %898 : vector<1x128xf32>
    %cst_231 = arith.constant 2.000000e+00 : f32
    %900 = vector.broadcast %cst_231 : f32 to vector<1x128xf32>
    %901 = arith.subf %900, %899 : vector<1x128xf32>
    %902 = arith.mulf %898, %901 : vector<1x128xf32>
    %903 = arith.mulf %379, %191 : vector<1x128xf32>
    %904 = arith.addf %318, %903 : vector<1x128xf32>
    %905 = arith.mulf %904, %902 : vector<1x128xf32>
    %906 = arith.mulf %379, %206 : vector<1x128xf32>
    %907 = arith.addf %333, %906 : vector<1x128xf32>
    %908 = arith.mulf %907, %902 : vector<1x128xf32>
    %909 = arith.mulf %379, %221 : vector<1x128xf32>
    %910 = arith.addf %348, %909 : vector<1x128xf32>
    %911 = arith.mulf %910, %902 : vector<1x128xf32>
    %912 = arith.mulf %379, %236 : vector<1x128xf32>
    %913 = arith.addf %363, %912 : vector<1x128xf32>
    %914 = arith.mulf %913, %902 : vector<1x128xf32>
    %c0_232 = arith.constant 0 : index
    %915 = memref.load %arg3[%c0_232] : memref<16xf32, #tpu.memory_space<smem>>
    %916 = vector.broadcast %915 : f32 to vector<1x128xf32>
    %917 = arith.mulf %905, %916 : vector<1x128xf32>
    %c4_233 = arith.constant 4 : index
    %918 = memref.load %arg3[%c4_233] : memref<16xf32, #tpu.memory_space<smem>>
    %919 = vector.broadcast %918 : f32 to vector<1x128xf32>
    %920 = arith.mulf %908, %919 : vector<1x128xf32>
    %921 = arith.addf %917, %920 : vector<1x128xf32>
    %c8_234 = arith.constant 8 : index
    %922 = memref.load %arg3[%c8_234] : memref<16xf32, #tpu.memory_space<smem>>
    %923 = vector.broadcast %922 : f32 to vector<1x128xf32>
    %924 = arith.mulf %911, %923 : vector<1x128xf32>
    %925 = arith.addf %921, %924 : vector<1x128xf32>
    %c12_235 = arith.constant 12 : index
    %926 = memref.load %arg3[%c12_235] : memref<16xf32, #tpu.memory_space<smem>>
    %927 = vector.broadcast %926 : f32 to vector<1x128xf32>
    %928 = arith.mulf %914, %927 : vector<1x128xf32>
    %929 = arith.addf %925, %928 : vector<1x128xf32>
    %c1_236 = arith.constant 1 : index
    %930 = memref.load %arg3[%c1_236] : memref<16xf32, #tpu.memory_space<smem>>
    %931 = vector.broadcast %930 : f32 to vector<1x128xf32>
    %932 = arith.mulf %905, %931 : vector<1x128xf32>
    %c5_237 = arith.constant 5 : index
    %933 = memref.load %arg3[%c5_237] : memref<16xf32, #tpu.memory_space<smem>>
    %934 = vector.broadcast %933 : f32 to vector<1x128xf32>
    %935 = arith.mulf %908, %934 : vector<1x128xf32>
    %936 = arith.addf %932, %935 : vector<1x128xf32>
    %c9_238 = arith.constant 9 : index
    %937 = memref.load %arg3[%c9_238] : memref<16xf32, #tpu.memory_space<smem>>
    %938 = vector.broadcast %937 : f32 to vector<1x128xf32>
    %939 = arith.mulf %911, %938 : vector<1x128xf32>
    %940 = arith.addf %936, %939 : vector<1x128xf32>
    %c13_239 = arith.constant 13 : index
    %941 = memref.load %arg3[%c13_239] : memref<16xf32, #tpu.memory_space<smem>>
    %942 = vector.broadcast %941 : f32 to vector<1x128xf32>
    %943 = arith.mulf %914, %942 : vector<1x128xf32>
    %944 = arith.addf %940, %943 : vector<1x128xf32>
    %c2_240 = arith.constant 2 : index
    %945 = memref.load %arg3[%c2_240] : memref<16xf32, #tpu.memory_space<smem>>
    %946 = vector.broadcast %945 : f32 to vector<1x128xf32>
    %947 = arith.mulf %905, %946 : vector<1x128xf32>
    %c6_241 = arith.constant 6 : index
    %948 = memref.load %arg3[%c6_241] : memref<16xf32, #tpu.memory_space<smem>>
    %949 = vector.broadcast %948 : f32 to vector<1x128xf32>
    %950 = arith.mulf %908, %949 : vector<1x128xf32>
    %951 = arith.addf %947, %950 : vector<1x128xf32>
    %c10_242 = arith.constant 10 : index
    %952 = memref.load %arg3[%c10_242] : memref<16xf32, #tpu.memory_space<smem>>
    %953 = vector.broadcast %952 : f32 to vector<1x128xf32>
    %954 = arith.mulf %911, %953 : vector<1x128xf32>
    %955 = arith.addf %951, %954 : vector<1x128xf32>
    %c14_243 = arith.constant 14 : index
    %956 = memref.load %arg3[%c14_243] : memref<16xf32, #tpu.memory_space<smem>>
    %957 = vector.broadcast %956 : f32 to vector<1x128xf32>
    %958 = arith.mulf %914, %957 : vector<1x128xf32>
    %959 = arith.addf %955, %958 : vector<1x128xf32>
    %c3_244 = arith.constant 3 : index
    %960 = memref.load %arg3[%c3_244] : memref<16xf32, #tpu.memory_space<smem>>
    %961 = vector.broadcast %960 : f32 to vector<1x128xf32>
    %962 = arith.mulf %905, %961 : vector<1x128xf32>
    %c7_245 = arith.constant 7 : index
    %963 = memref.load %arg3[%c7_245] : memref<16xf32, #tpu.memory_space<smem>>
    %964 = vector.broadcast %963 : f32 to vector<1x128xf32>
    %965 = arith.mulf %908, %964 : vector<1x128xf32>
    %966 = arith.addf %962, %965 : vector<1x128xf32>
    %c11_246 = arith.constant 11 : index
    %967 = memref.load %arg3[%c11_246] : memref<16xf32, #tpu.memory_space<smem>>
    %968 = vector.broadcast %967 : f32 to vector<1x128xf32>
    %969 = arith.mulf %911, %968 : vector<1x128xf32>
    %970 = arith.addf %966, %969 : vector<1x128xf32>
    %c15_247 = arith.constant 15 : index
    %971 = memref.load %arg3[%c15_247] : memref<16xf32, #tpu.memory_space<smem>>
    %972 = vector.broadcast %971 : f32 to vector<1x128xf32>
    %973 = arith.mulf %914, %972 : vector<1x128xf32>
    %974 = arith.addf %970, %973 : vector<1x128xf32>
    %c0_248 = arith.constant 0 : index
    %975 = memref.load %arg5[%c0_248] : memref<16xf32, #tpu.memory_space<smem>>
    %976 = vector.broadcast %975 : f32 to vector<1x128xf32>
    %977 = arith.mulf %929, %976 : vector<1x128xf32>
    %c4_249 = arith.constant 4 : index
    %978 = memref.load %arg5[%c4_249] : memref<16xf32, #tpu.memory_space<smem>>
    %979 = vector.broadcast %978 : f32 to vector<1x128xf32>
    %980 = arith.mulf %944, %979 : vector<1x128xf32>
    %981 = arith.addf %977, %980 : vector<1x128xf32>
    %c8_250 = arith.constant 8 : index
    %982 = memref.load %arg5[%c8_250] : memref<16xf32, #tpu.memory_space<smem>>
    %983 = vector.broadcast %982 : f32 to vector<1x128xf32>
    %984 = arith.mulf %959, %983 : vector<1x128xf32>
    %985 = arith.addf %981, %984 : vector<1x128xf32>
    %c12_251 = arith.constant 12 : index
    %986 = memref.load %arg5[%c12_251] : memref<16xf32, #tpu.memory_space<smem>>
    %987 = vector.broadcast %986 : f32 to vector<1x128xf32>
    %988 = arith.mulf %974, %987 : vector<1x128xf32>
    %989 = arith.addf %985, %988 : vector<1x128xf32>
    %c1_252 = arith.constant 1 : index
    %990 = memref.load %arg5[%c1_252] : memref<16xf32, #tpu.memory_space<smem>>
    %991 = vector.broadcast %990 : f32 to vector<1x128xf32>
    %992 = arith.mulf %929, %991 : vector<1x128xf32>
    %c5_253 = arith.constant 5 : index
    %993 = memref.load %arg5[%c5_253] : memref<16xf32, #tpu.memory_space<smem>>
    %994 = vector.broadcast %993 : f32 to vector<1x128xf32>
    %995 = arith.mulf %944, %994 : vector<1x128xf32>
    %996 = arith.addf %992, %995 : vector<1x128xf32>
    %c9_254 = arith.constant 9 : index
    %997 = memref.load %arg5[%c9_254] : memref<16xf32, #tpu.memory_space<smem>>
    %998 = vector.broadcast %997 : f32 to vector<1x128xf32>
    %999 = arith.mulf %959, %998 : vector<1x128xf32>
    %1000 = arith.addf %996, %999 : vector<1x128xf32>
    %c13_255 = arith.constant 13 : index
    %1001 = memref.load %arg5[%c13_255] : memref<16xf32, #tpu.memory_space<smem>>
    %1002 = vector.broadcast %1001 : f32 to vector<1x128xf32>
    %1003 = arith.mulf %974, %1002 : vector<1x128xf32>
    %1004 = arith.addf %1000, %1003 : vector<1x128xf32>
    %c2_256 = arith.constant 2 : index
    %1005 = memref.load %arg5[%c2_256] : memref<16xf32, #tpu.memory_space<smem>>
    %1006 = vector.broadcast %1005 : f32 to vector<1x128xf32>
    %1007 = arith.mulf %929, %1006 : vector<1x128xf32>
    %c6_257 = arith.constant 6 : index
    %1008 = memref.load %arg5[%c6_257] : memref<16xf32, #tpu.memory_space<smem>>
    %1009 = vector.broadcast %1008 : f32 to vector<1x128xf32>
    %1010 = arith.mulf %944, %1009 : vector<1x128xf32>
    %1011 = arith.addf %1007, %1010 : vector<1x128xf32>
    %c10_258 = arith.constant 10 : index
    %1012 = memref.load %arg5[%c10_258] : memref<16xf32, #tpu.memory_space<smem>>
    %1013 = vector.broadcast %1012 : f32 to vector<1x128xf32>
    %1014 = arith.mulf %959, %1013 : vector<1x128xf32>
    %1015 = arith.addf %1011, %1014 : vector<1x128xf32>
    %c14_259 = arith.constant 14 : index
    %1016 = memref.load %arg5[%c14_259] : memref<16xf32, #tpu.memory_space<smem>>
    %1017 = vector.broadcast %1016 : f32 to vector<1x128xf32>
    %1018 = arith.mulf %974, %1017 : vector<1x128xf32>
    %1019 = arith.addf %1015, %1018 : vector<1x128xf32>
    %c3_260 = arith.constant 3 : index
    %1020 = memref.load %arg5[%c3_260] : memref<16xf32, #tpu.memory_space<smem>>
    %1021 = vector.broadcast %1020 : f32 to vector<1x128xf32>
    %1022 = arith.mulf %929, %1021 : vector<1x128xf32>
    %c7_261 = arith.constant 7 : index
    %1023 = memref.load %arg5[%c7_261] : memref<16xf32, #tpu.memory_space<smem>>
    %1024 = vector.broadcast %1023 : f32 to vector<1x128xf32>
    %1025 = arith.mulf %944, %1024 : vector<1x128xf32>
    %1026 = arith.addf %1022, %1025 : vector<1x128xf32>
    %c11_262 = arith.constant 11 : index
    %1027 = memref.load %arg5[%c11_262] : memref<16xf32, #tpu.memory_space<smem>>
    %1028 = vector.broadcast %1027 : f32 to vector<1x128xf32>
    %1029 = arith.mulf %959, %1028 : vector<1x128xf32>
    %1030 = arith.addf %1026, %1029 : vector<1x128xf32>
    %c15_263 = arith.constant 15 : index
    %1031 = memref.load %arg5[%c15_263] : memref<16xf32, #tpu.memory_space<smem>>
    %1032 = vector.broadcast %1031 : f32 to vector<1x128xf32>
    %1033 = arith.mulf %974, %1032 : vector<1x128xf32>
    %1034 = arith.addf %1030, %1033 : vector<1x128xf32>
    %c0_264 = arith.constant 0 : index
    %1035 = memref.load %arg6[%c0_264] : memref<4xf32, #tpu.memory_space<smem>>
    %1036 = vector.broadcast %1035 : f32 to vector<1x128xf32>
    %1037 = arith.addf %989, %1036 : vector<1x128xf32>
    %1038 = arith.addf %1037, %57 : vector<1x128xf32>
    %c1_265 = arith.constant 1 : index
    %1039 = memref.load %arg6[%c1_265] : memref<4xf32, #tpu.memory_space<smem>>
    %1040 = vector.broadcast %1039 : f32 to vector<1x128xf32>
    %1041 = arith.addf %1004, %1040 : vector<1x128xf32>
    %1042 = arith.addf %1041, %58 : vector<1x128xf32>
    %c2_266 = arith.constant 2 : index
    %1043 = memref.load %arg6[%c2_266] : memref<4xf32, #tpu.memory_space<smem>>
    %1044 = vector.broadcast %1043 : f32 to vector<1x128xf32>
    %1045 = arith.addf %1019, %1044 : vector<1x128xf32>
    %1046 = arith.addf %1045, %59 : vector<1x128xf32>
    %c3_267 = arith.constant 3 : index
    %1047 = memref.load %arg6[%c3_267] : memref<4xf32, #tpu.memory_space<smem>>
    %1048 = vector.broadcast %1047 : f32 to vector<1x128xf32>
    %1049 = arith.addf %1034, %1048 : vector<1x128xf32>
    %1050 = arith.addf %1049, %60 : vector<1x128xf32>
    %1051 = arith.addf %1038, %1042 : vector<1x128xf32>
    %1052 = arith.addf %1051, %1046 : vector<1x128xf32>
    %1053 = arith.addf %1052, %1050 : vector<1x128xf32>
    %cst_268 = arith.constant 2.500000e-01 : f32
    %1054 = vector.broadcast %cst_268 : f32 to vector<1x128xf32>
    %1055 = arith.mulf %1053, %1054 : vector<1x128xf32>
    %1056 = arith.subf %1038, %1055 : vector<1x128xf32>
    %1057 = arith.subf %1042, %1055 : vector<1x128xf32>
    %1058 = arith.subf %1046, %1055 : vector<1x128xf32>
    %1059 = arith.subf %1050, %1055 : vector<1x128xf32>
    %1060 = arith.mulf %1056, %1056 : vector<1x128xf32>
    %1061 = arith.mulf %1057, %1057 : vector<1x128xf32>
    %1062 = arith.addf %1060, %1061 : vector<1x128xf32>
    %1063 = arith.mulf %1058, %1058 : vector<1x128xf32>
    %1064 = arith.addf %1062, %1063 : vector<1x128xf32>
    %1065 = arith.mulf %1059, %1059 : vector<1x128xf32>
    %1066 = arith.addf %1064, %1065 : vector<1x128xf32>
    %cst_269 = arith.constant 2.500000e-01 : f32
    %1067 = vector.broadcast %cst_269 : f32 to vector<1x128xf32>
    %1068 = arith.mulf %1066, %1067 : vector<1x128xf32>
    %cst_270 = arith.constant 9.99999974E-6 : f32
    %1069 = vector.broadcast %cst_270 : f32 to vector<1x128xf32>
    %1070 = arith.addf %1068, %1069 : vector<1x128xf32>
    %1071 = math.rsqrt %1070 : vector<1x128xf32>
    %1072 = arith.mulf %1056, %1071 : vector<1x128xf32>
    %c0_271 = arith.constant 0 : index
    %1073 = memref.load %arg9[%c0_271] : memref<4xf32, #tpu.memory_space<smem>>
    %1074 = vector.broadcast %1073 : f32 to vector<1x128xf32>
    %1075 = arith.mulf %1072, %1074 : vector<1x128xf32>
    %c0_272 = arith.constant 0 : index
    %1076 = memref.load %arg10[%c0_272] : memref<4xf32, #tpu.memory_space<smem>>
    %1077 = vector.broadcast %1076 : f32 to vector<1x128xf32>
    %1078 = arith.addf %1075, %1077 : vector<1x128xf32>
    %1079 = arith.mulf %1057, %1071 : vector<1x128xf32>
    %c1_273 = arith.constant 1 : index
    %1080 = memref.load %arg9[%c1_273] : memref<4xf32, #tpu.memory_space<smem>>
    %1081 = vector.broadcast %1080 : f32 to vector<1x128xf32>
    %1082 = arith.mulf %1079, %1081 : vector<1x128xf32>
    %c1_274 = arith.constant 1 : index
    %1083 = memref.load %arg10[%c1_274] : memref<4xf32, #tpu.memory_space<smem>>
    %1084 = vector.broadcast %1083 : f32 to vector<1x128xf32>
    %1085 = arith.addf %1082, %1084 : vector<1x128xf32>
    %1086 = arith.mulf %1058, %1071 : vector<1x128xf32>
    %c2_275 = arith.constant 2 : index
    %1087 = memref.load %arg9[%c2_275] : memref<4xf32, #tpu.memory_space<smem>>
    %1088 = vector.broadcast %1087 : f32 to vector<1x128xf32>
    %1089 = arith.mulf %1086, %1088 : vector<1x128xf32>
    %c2_276 = arith.constant 2 : index
    %1090 = memref.load %arg10[%c2_276] : memref<4xf32, #tpu.memory_space<smem>>
    %1091 = vector.broadcast %1090 : f32 to vector<1x128xf32>
    %1092 = arith.addf %1089, %1091 : vector<1x128xf32>
    %1093 = arith.mulf %1059, %1071 : vector<1x128xf32>
    %c3_277 = arith.constant 3 : index
    %1094 = memref.load %arg9[%c3_277] : memref<4xf32, #tpu.memory_space<smem>>
    %1095 = vector.broadcast %1094 : f32 to vector<1x128xf32>
    %1096 = arith.mulf %1093, %1095 : vector<1x128xf32>
    %c3_278 = arith.constant 3 : index
    %1097 = memref.load %arg10[%c3_278] : memref<4xf32, #tpu.memory_space<smem>>
    %1098 = vector.broadcast %1097 : f32 to vector<1x128xf32>
    %1099 = arith.addf %1096, %1098 : vector<1x128xf32>
    %c0_279 = arith.constant 0 : index
    %1100 = memref.load %arg11[%c0_279] : memref<16xf32, #tpu.memory_space<smem>>
    %1101 = vector.broadcast %1100 : f32 to vector<1x128xf32>
    %1102 = arith.mulf %1078, %1101 : vector<1x128xf32>
    %c4_280 = arith.constant 4 : index
    %1103 = memref.load %arg11[%c4_280] : memref<16xf32, #tpu.memory_space<smem>>
    %1104 = vector.broadcast %1103 : f32 to vector<1x128xf32>
    %1105 = arith.mulf %1085, %1104 : vector<1x128xf32>
    %1106 = arith.addf %1102, %1105 : vector<1x128xf32>
    %c8_281 = arith.constant 8 : index
    %1107 = memref.load %arg11[%c8_281] : memref<16xf32, #tpu.memory_space<smem>>
    %1108 = vector.broadcast %1107 : f32 to vector<1x128xf32>
    %1109 = arith.mulf %1092, %1108 : vector<1x128xf32>
    %1110 = arith.addf %1106, %1109 : vector<1x128xf32>
    %c12_282 = arith.constant 12 : index
    %1111 = memref.load %arg11[%c12_282] : memref<16xf32, #tpu.memory_space<smem>>
    %1112 = vector.broadcast %1111 : f32 to vector<1x128xf32>
    %1113 = arith.mulf %1099, %1112 : vector<1x128xf32>
    %1114 = arith.addf %1110, %1113 : vector<1x128xf32>
    %c1_283 = arith.constant 1 : index
    %1115 = memref.load %arg11[%c1_283] : memref<16xf32, #tpu.memory_space<smem>>
    %1116 = vector.broadcast %1115 : f32 to vector<1x128xf32>
    %1117 = arith.mulf %1078, %1116 : vector<1x128xf32>
    %c5_284 = arith.constant 5 : index
    %1118 = memref.load %arg11[%c5_284] : memref<16xf32, #tpu.memory_space<smem>>
    %1119 = vector.broadcast %1118 : f32 to vector<1x128xf32>
    %1120 = arith.mulf %1085, %1119 : vector<1x128xf32>
    %1121 = arith.addf %1117, %1120 : vector<1x128xf32>
    %c9_285 = arith.constant 9 : index
    %1122 = memref.load %arg11[%c9_285] : memref<16xf32, #tpu.memory_space<smem>>
    %1123 = vector.broadcast %1122 : f32 to vector<1x128xf32>
    %1124 = arith.mulf %1092, %1123 : vector<1x128xf32>
    %1125 = arith.addf %1121, %1124 : vector<1x128xf32>
    %c13_286 = arith.constant 13 : index
    %1126 = memref.load %arg11[%c13_286] : memref<16xf32, #tpu.memory_space<smem>>
    %1127 = vector.broadcast %1126 : f32 to vector<1x128xf32>
    %1128 = arith.mulf %1099, %1127 : vector<1x128xf32>
    %1129 = arith.addf %1125, %1128 : vector<1x128xf32>
    %c2_287 = arith.constant 2 : index
    %1130 = memref.load %arg11[%c2_287] : memref<16xf32, #tpu.memory_space<smem>>
    %1131 = vector.broadcast %1130 : f32 to vector<1x128xf32>
    %1132 = arith.mulf %1078, %1131 : vector<1x128xf32>
    %c6_288 = arith.constant 6 : index
    %1133 = memref.load %arg11[%c6_288] : memref<16xf32, #tpu.memory_space<smem>>
    %1134 = vector.broadcast %1133 : f32 to vector<1x128xf32>
    %1135 = arith.mulf %1085, %1134 : vector<1x128xf32>
    %1136 = arith.addf %1132, %1135 : vector<1x128xf32>
    %c10_289 = arith.constant 10 : index
    %1137 = memref.load %arg11[%c10_289] : memref<16xf32, #tpu.memory_space<smem>>
    %1138 = vector.broadcast %1137 : f32 to vector<1x128xf32>
    %1139 = arith.mulf %1092, %1138 : vector<1x128xf32>
    %1140 = arith.addf %1136, %1139 : vector<1x128xf32>
    %c14_290 = arith.constant 14 : index
    %1141 = memref.load %arg11[%c14_290] : memref<16xf32, #tpu.memory_space<smem>>
    %1142 = vector.broadcast %1141 : f32 to vector<1x128xf32>
    %1143 = arith.mulf %1099, %1142 : vector<1x128xf32>
    %1144 = arith.addf %1140, %1143 : vector<1x128xf32>
    %c3_291 = arith.constant 3 : index
    %1145 = memref.load %arg11[%c3_291] : memref<16xf32, #tpu.memory_space<smem>>
    %1146 = vector.broadcast %1145 : f32 to vector<1x128xf32>
    %1147 = arith.mulf %1078, %1146 : vector<1x128xf32>
    %c7_292 = arith.constant 7 : index
    %1148 = memref.load %arg11[%c7_292] : memref<16xf32, #tpu.memory_space<smem>>
    %1149 = vector.broadcast %1148 : f32 to vector<1x128xf32>
    %1150 = arith.mulf %1085, %1149 : vector<1x128xf32>
    %1151 = arith.addf %1147, %1150 : vector<1x128xf32>
    %c11_293 = arith.constant 11 : index
    %1152 = memref.load %arg11[%c11_293] : memref<16xf32, #tpu.memory_space<smem>>
    %1153 = vector.broadcast %1152 : f32 to vector<1x128xf32>
    %1154 = arith.mulf %1092, %1153 : vector<1x128xf32>
    %1155 = arith.addf %1151, %1154 : vector<1x128xf32>
    %c15_294 = arith.constant 15 : index
    %1156 = memref.load %arg11[%c15_294] : memref<16xf32, #tpu.memory_space<smem>>
    %1157 = vector.broadcast %1156 : f32 to vector<1x128xf32>
    %1158 = arith.mulf %1099, %1157 : vector<1x128xf32>
    %1159 = arith.addf %1155, %1158 : vector<1x128xf32>
    %c0_295 = arith.constant 0 : index
    %1160 = memref.load %arg12[%c0_295] : memref<4xf32, #tpu.memory_space<smem>>
    %1161 = vector.broadcast %1160 : f32 to vector<1x128xf32>
    %1162 = arith.addf %1114, %1161 : vector<1x128xf32>
    %cst_296 = arith.constant 5.000000e-01 : f32
    %1163 = vector.broadcast %cst_296 : f32 to vector<1x128xf32>
    %1164 = arith.mulf %1163, %1162 : vector<1x128xf32>
    %cst_297 = arith.constant 0.707106769 : f32
    %1165 = vector.broadcast %cst_297 : f32 to vector<1x128xf32>
    %1166 = arith.mulf %1162, %1165 : vector<1x128xf32>
    %1167 = math.absf %1166 : vector<1x128xf32>
    %cst_298 = arith.constant 0.327591091 : f32
    %1168 = vector.broadcast %cst_298 : f32 to vector<1x128xf32>
    %1169 = arith.mulf %1168, %1167 : vector<1x128xf32>
    %cst_299 = arith.constant 1.000000e+00 : f32
    %1170 = vector.broadcast %cst_299 : f32 to vector<1x128xf32>
    %1171 = arith.addf %1170, %1169 : vector<1x128xf32>
    %cst_300 = arith.constant 1.000000e+00 : f32
    %1172 = vector.broadcast %cst_300 : f32 to vector<1x128xf32>
    %1173 = arith.divf %1172, %1171 : vector<1x128xf32>
    %cst_301 = arith.constant 1.06140542 : f32
    %1174 = vector.broadcast %cst_301 : f32 to vector<1x128xf32>
    %1175 = arith.mulf %1173, %1174 : vector<1x128xf32>
    %cst_302 = arith.constant -1.45315206 : f32
    %1176 = vector.broadcast %cst_302 : f32 to vector<1x128xf32>
    %1177 = arith.addf %1176, %1175 : vector<1x128xf32>
    %1178 = arith.mulf %1173, %1177 : vector<1x128xf32>
    %cst_303 = arith.constant 1.42141378 : f32
    %1179 = vector.broadcast %cst_303 : f32 to vector<1x128xf32>
    %1180 = arith.addf %1179, %1178 : vector<1x128xf32>
    %1181 = arith.mulf %1173, %1180 : vector<1x128xf32>
    %cst_304 = arith.constant -0.284496725 : f32
    %1182 = vector.broadcast %cst_304 : f32 to vector<1x128xf32>
    %1183 = arith.addf %1182, %1181 : vector<1x128xf32>
    %1184 = arith.mulf %1173, %1183 : vector<1x128xf32>
    %cst_305 = arith.constant 0.254829586 : f32
    %1185 = vector.broadcast %cst_305 : f32 to vector<1x128xf32>
    %1186 = arith.addf %1185, %1184 : vector<1x128xf32>
    %1187 = arith.mulf %1173, %1186 : vector<1x128xf32>
    %cst_306 = arith.constant 0.000000e+00 : f32
    %1188 = vector.broadcast %cst_306 : f32 to vector<1x128xf32>
    %1189 = arith.subf %1188, %1167 : vector<1x128xf32>
    %1190 = arith.mulf %1189, %1167 : vector<1x128xf32>
    %1191 = math.exp %1190 : vector<1x128xf32>
    %1192 = arith.mulf %1187, %1191 : vector<1x128xf32>
    %cst_307 = arith.constant 1.000000e+00 : f32
    %1193 = vector.broadcast %cst_307 : f32 to vector<1x128xf32>
    %1194 = arith.subf %1193, %1192 : vector<1x128xf32>
    %cst_308 = arith.constant 0.000000e+00 : f32
    %1195 = vector.broadcast %cst_308 : f32 to vector<1x128xf32>
    %1196 = arith.cmpf olt, %1166, %1195 : vector<1x128xf32>
    %cst_309 = arith.constant 0.000000e+00 : f32
    %1197 = vector.broadcast %cst_309 : f32 to vector<1x128xf32>
    %1198 = arith.subf %1197, %1194 : vector<1x128xf32>
    %1199 = arith.select %1196, %1198, %1194 : vector<1x128xi1>, vector<1x128xf32>
    %cst_310 = arith.constant 1.000000e+00 : f32
    %1200 = vector.broadcast %cst_310 : f32 to vector<1x128xf32>
    %1201 = arith.addf %1200, %1199 : vector<1x128xf32>
    %1202 = arith.mulf %1164, %1201 : vector<1x128xf32>
    %c1_311 = arith.constant 1 : index
    %1203 = memref.load %arg12[%c1_311] : memref<4xf32, #tpu.memory_space<smem>>
    %1204 = vector.broadcast %1203 : f32 to vector<1x128xf32>
    %1205 = arith.addf %1129, %1204 : vector<1x128xf32>
    %cst_312 = arith.constant 5.000000e-01 : f32
    %1206 = vector.broadcast %cst_312 : f32 to vector<1x128xf32>
    %1207 = arith.mulf %1206, %1205 : vector<1x128xf32>
    %cst_313 = arith.constant 0.707106769 : f32
    %1208 = vector.broadcast %cst_313 : f32 to vector<1x128xf32>
    %1209 = arith.mulf %1205, %1208 : vector<1x128xf32>
    %1210 = math.absf %1209 : vector<1x128xf32>
    %cst_314 = arith.constant 0.327591091 : f32
    %1211 = vector.broadcast %cst_314 : f32 to vector<1x128xf32>
    %1212 = arith.mulf %1211, %1210 : vector<1x128xf32>
    %cst_315 = arith.constant 1.000000e+00 : f32
    %1213 = vector.broadcast %cst_315 : f32 to vector<1x128xf32>
    %1214 = arith.addf %1213, %1212 : vector<1x128xf32>
    %cst_316 = arith.constant 1.000000e+00 : f32
    %1215 = vector.broadcast %cst_316 : f32 to vector<1x128xf32>
    %1216 = arith.divf %1215, %1214 : vector<1x128xf32>
    %cst_317 = arith.constant 1.06140542 : f32
    %1217 = vector.broadcast %cst_317 : f32 to vector<1x128xf32>
    %1218 = arith.mulf %1216, %1217 : vector<1x128xf32>
    %cst_318 = arith.constant -1.45315206 : f32
    %1219 = vector.broadcast %cst_318 : f32 to vector<1x128xf32>
    %1220 = arith.addf %1219, %1218 : vector<1x128xf32>
    %1221 = arith.mulf %1216, %1220 : vector<1x128xf32>
    %cst_319 = arith.constant 1.42141378 : f32
    %1222 = vector.broadcast %cst_319 : f32 to vector<1x128xf32>
    %1223 = arith.addf %1222, %1221 : vector<1x128xf32>
    %1224 = arith.mulf %1216, %1223 : vector<1x128xf32>
    %cst_320 = arith.constant -0.284496725 : f32
    %1225 = vector.broadcast %cst_320 : f32 to vector<1x128xf32>
    %1226 = arith.addf %1225, %1224 : vector<1x128xf32>
    %1227 = arith.mulf %1216, %1226 : vector<1x128xf32>
    %cst_321 = arith.constant 0.254829586 : f32
    %1228 = vector.broadcast %cst_321 : f32 to vector<1x128xf32>
    %1229 = arith.addf %1228, %1227 : vector<1x128xf32>
    %1230 = arith.mulf %1216, %1229 : vector<1x128xf32>
    %cst_322 = arith.constant 0.000000e+00 : f32
    %1231 = vector.broadcast %cst_322 : f32 to vector<1x128xf32>
    %1232 = arith.subf %1231, %1210 : vector<1x128xf32>
    %1233 = arith.mulf %1232, %1210 : vector<1x128xf32>
    %1234 = math.exp %1233 : vector<1x128xf32>
    %1235 = arith.mulf %1230, %1234 : vector<1x128xf32>
    %cst_323 = arith.constant 1.000000e+00 : f32
    %1236 = vector.broadcast %cst_323 : f32 to vector<1x128xf32>
    %1237 = arith.subf %1236, %1235 : vector<1x128xf32>
    %cst_324 = arith.constant 0.000000e+00 : f32
    %1238 = vector.broadcast %cst_324 : f32 to vector<1x128xf32>
    %1239 = arith.cmpf olt, %1209, %1238 : vector<1x128xf32>
    %cst_325 = arith.constant 0.000000e+00 : f32
    %1240 = vector.broadcast %cst_325 : f32 to vector<1x128xf32>
    %1241 = arith.subf %1240, %1237 : vector<1x128xf32>
    %1242 = arith.select %1239, %1241, %1237 : vector<1x128xi1>, vector<1x128xf32>
    %cst_326 = arith.constant 1.000000e+00 : f32
    %1243 = vector.broadcast %cst_326 : f32 to vector<1x128xf32>
    %1244 = arith.addf %1243, %1242 : vector<1x128xf32>
    %1245 = arith.mulf %1207, %1244 : vector<1x128xf32>
    %c2_327 = arith.constant 2 : index
    %1246 = memref.load %arg12[%c2_327] : memref<4xf32, #tpu.memory_space<smem>>
    %1247 = vector.broadcast %1246 : f32 to vector<1x128xf32>
    %1248 = arith.addf %1144, %1247 : vector<1x128xf32>
    %cst_328 = arith.constant 5.000000e-01 : f32
    %1249 = vector.broadcast %cst_328 : f32 to vector<1x128xf32>
    %1250 = arith.mulf %1249, %1248 : vector<1x128xf32>
    %cst_329 = arith.constant 0.707106769 : f32
    %1251 = vector.broadcast %cst_329 : f32 to vector<1x128xf32>
    %1252 = arith.mulf %1248, %1251 : vector<1x128xf32>
    %1253 = math.absf %1252 : vector<1x128xf32>
    %cst_330 = arith.constant 0.327591091 : f32
    %1254 = vector.broadcast %cst_330 : f32 to vector<1x128xf32>
    %1255 = arith.mulf %1254, %1253 : vector<1x128xf32>
    %cst_331 = arith.constant 1.000000e+00 : f32
    %1256 = vector.broadcast %cst_331 : f32 to vector<1x128xf32>
    %1257 = arith.addf %1256, %1255 : vector<1x128xf32>
    %cst_332 = arith.constant 1.000000e+00 : f32
    %1258 = vector.broadcast %cst_332 : f32 to vector<1x128xf32>
    %1259 = arith.divf %1258, %1257 : vector<1x128xf32>
    %cst_333 = arith.constant 1.06140542 : f32
    %1260 = vector.broadcast %cst_333 : f32 to vector<1x128xf32>
    %1261 = arith.mulf %1259, %1260 : vector<1x128xf32>
    %cst_334 = arith.constant -1.45315206 : f32
    %1262 = vector.broadcast %cst_334 : f32 to vector<1x128xf32>
    %1263 = arith.addf %1262, %1261 : vector<1x128xf32>
    %1264 = arith.mulf %1259, %1263 : vector<1x128xf32>
    %cst_335 = arith.constant 1.42141378 : f32
    %1265 = vector.broadcast %cst_335 : f32 to vector<1x128xf32>
    %1266 = arith.addf %1265, %1264 : vector<1x128xf32>
    %1267 = arith.mulf %1259, %1266 : vector<1x128xf32>
    %cst_336 = arith.constant -0.284496725 : f32
    %1268 = vector.broadcast %cst_336 : f32 to vector<1x128xf32>
    %1269 = arith.addf %1268, %1267 : vector<1x128xf32>
    %1270 = arith.mulf %1259, %1269 : vector<1x128xf32>
    %cst_337 = arith.constant 0.254829586 : f32
    %1271 = vector.broadcast %cst_337 : f32 to vector<1x128xf32>
    %1272 = arith.addf %1271, %1270 : vector<1x128xf32>
    %1273 = arith.mulf %1259, %1272 : vector<1x128xf32>
    %cst_338 = arith.constant 0.000000e+00 : f32
    %1274 = vector.broadcast %cst_338 : f32 to vector<1x128xf32>
    %1275 = arith.subf %1274, %1253 : vector<1x128xf32>
    %1276 = arith.mulf %1275, %1253 : vector<1x128xf32>
    %1277 = math.exp %1276 : vector<1x128xf32>
    %1278 = arith.mulf %1273, %1277 : vector<1x128xf32>
    %cst_339 = arith.constant 1.000000e+00 : f32
    %1279 = vector.broadcast %cst_339 : f32 to vector<1x128xf32>
    %1280 = arith.subf %1279, %1278 : vector<1x128xf32>
    %cst_340 = arith.constant 0.000000e+00 : f32
    %1281 = vector.broadcast %cst_340 : f32 to vector<1x128xf32>
    %1282 = arith.cmpf olt, %1252, %1281 : vector<1x128xf32>
    %cst_341 = arith.constant 0.000000e+00 : f32
    %1283 = vector.broadcast %cst_341 : f32 to vector<1x128xf32>
    %1284 = arith.subf %1283, %1280 : vector<1x128xf32>
    %1285 = arith.select %1282, %1284, %1280 : vector<1x128xi1>, vector<1x128xf32>
    %cst_342 = arith.constant 1.000000e+00 : f32
    %1286 = vector.broadcast %cst_342 : f32 to vector<1x128xf32>
    %1287 = arith.addf %1286, %1285 : vector<1x128xf32>
    %1288 = arith.mulf %1250, %1287 : vector<1x128xf32>
    %c3_343 = arith.constant 3 : index
    %1289 = memref.load %arg12[%c3_343] : memref<4xf32, #tpu.memory_space<smem>>
    %1290 = vector.broadcast %1289 : f32 to vector<1x128xf32>
    %1291 = arith.addf %1159, %1290 : vector<1x128xf32>
    %cst_344 = arith.constant 5.000000e-01 : f32
    %1292 = vector.broadcast %cst_344 : f32 to vector<1x128xf32>
    %1293 = arith.mulf %1292, %1291 : vector<1x128xf32>
    %cst_345 = arith.constant 0.707106769 : f32
    %1294 = vector.broadcast %cst_345 : f32 to vector<1x128xf32>
    %1295 = arith.mulf %1291, %1294 : vector<1x128xf32>
    %1296 = math.absf %1295 : vector<1x128xf32>
    %cst_346 = arith.constant 0.327591091 : f32
    %1297 = vector.broadcast %cst_346 : f32 to vector<1x128xf32>
    %1298 = arith.mulf %1297, %1296 : vector<1x128xf32>
    %cst_347 = arith.constant 1.000000e+00 : f32
    %1299 = vector.broadcast %cst_347 : f32 to vector<1x128xf32>
    %1300 = arith.addf %1299, %1298 : vector<1x128xf32>
    %cst_348 = arith.constant 1.000000e+00 : f32
    %1301 = vector.broadcast %cst_348 : f32 to vector<1x128xf32>
    %1302 = arith.divf %1301, %1300 : vector<1x128xf32>
    %cst_349 = arith.constant 1.06140542 : f32
    %1303 = vector.broadcast %cst_349 : f32 to vector<1x128xf32>
    %1304 = arith.mulf %1302, %1303 : vector<1x128xf32>
    %cst_350 = arith.constant -1.45315206 : f32
    %1305 = vector.broadcast %cst_350 : f32 to vector<1x128xf32>
    %1306 = arith.addf %1305, %1304 : vector<1x128xf32>
    %1307 = arith.mulf %1302, %1306 : vector<1x128xf32>
    %cst_351 = arith.constant 1.42141378 : f32
    %1308 = vector.broadcast %cst_351 : f32 to vector<1x128xf32>
    %1309 = arith.addf %1308, %1307 : vector<1x128xf32>
    %1310 = arith.mulf %1302, %1309 : vector<1x128xf32>
    %cst_352 = arith.constant -0.284496725 : f32
    %1311 = vector.broadcast %cst_352 : f32 to vector<1x128xf32>
    %1312 = arith.addf %1311, %1310 : vector<1x128xf32>
    %1313 = arith.mulf %1302, %1312 : vector<1x128xf32>
    %cst_353 = arith.constant 0.254829586 : f32
    %1314 = vector.broadcast %cst_353 : f32 to vector<1x128xf32>
    %1315 = arith.addf %1314, %1313 : vector<1x128xf32>
    %1316 = arith.mulf %1302, %1315 : vector<1x128xf32>
    %cst_354 = arith.constant 0.000000e+00 : f32
    %1317 = vector.broadcast %cst_354 : f32 to vector<1x128xf32>
    %1318 = arith.subf %1317, %1296 : vector<1x128xf32>
    %1319 = arith.mulf %1318, %1296 : vector<1x128xf32>
    %1320 = math.exp %1319 : vector<1x128xf32>
    %1321 = arith.mulf %1316, %1320 : vector<1x128xf32>
    %cst_355 = arith.constant 1.000000e+00 : f32
    %1322 = vector.broadcast %cst_355 : f32 to vector<1x128xf32>
    %1323 = arith.subf %1322, %1321 : vector<1x128xf32>
    %cst_356 = arith.constant 0.000000e+00 : f32
    %1324 = vector.broadcast %cst_356 : f32 to vector<1x128xf32>
    %1325 = arith.cmpf olt, %1295, %1324 : vector<1x128xf32>
    %cst_357 = arith.constant 0.000000e+00 : f32
    %1326 = vector.broadcast %cst_357 : f32 to vector<1x128xf32>
    %1327 = arith.subf %1326, %1323 : vector<1x128xf32>
    %1328 = arith.select %1325, %1327, %1323 : vector<1x128xi1>, vector<1x128xf32>
    %cst_358 = arith.constant 1.000000e+00 : f32
    %1329 = vector.broadcast %cst_358 : f32 to vector<1x128xf32>
    %1330 = arith.addf %1329, %1328 : vector<1x128xf32>
    %1331 = arith.mulf %1293, %1330 : vector<1x128xf32>
    %c0_359 = arith.constant 0 : index
    %1332 = memref.load %arg13[%c0_359] : memref<16xf32, #tpu.memory_space<smem>>
    %1333 = vector.broadcast %1332 : f32 to vector<1x128xf32>
    %1334 = arith.mulf %1202, %1333 : vector<1x128xf32>
    %c4_360 = arith.constant 4 : index
    %1335 = memref.load %arg13[%c4_360] : memref<16xf32, #tpu.memory_space<smem>>
    %1336 = vector.broadcast %1335 : f32 to vector<1x128xf32>
    %1337 = arith.mulf %1245, %1336 : vector<1x128xf32>
    %1338 = arith.addf %1334, %1337 : vector<1x128xf32>
    %c8_361 = arith.constant 8 : index
    %1339 = memref.load %arg13[%c8_361] : memref<16xf32, #tpu.memory_space<smem>>
    %1340 = vector.broadcast %1339 : f32 to vector<1x128xf32>
    %1341 = arith.mulf %1288, %1340 : vector<1x128xf32>
    %1342 = arith.addf %1338, %1341 : vector<1x128xf32>
    %c12_362 = arith.constant 12 : index
    %1343 = memref.load %arg13[%c12_362] : memref<16xf32, #tpu.memory_space<smem>>
    %1344 = vector.broadcast %1343 : f32 to vector<1x128xf32>
    %1345 = arith.mulf %1331, %1344 : vector<1x128xf32>
    %1346 = arith.addf %1342, %1345 : vector<1x128xf32>
    %c1_363 = arith.constant 1 : index
    %1347 = memref.load %arg13[%c1_363] : memref<16xf32, #tpu.memory_space<smem>>
    %1348 = vector.broadcast %1347 : f32 to vector<1x128xf32>
    %1349 = arith.mulf %1202, %1348 : vector<1x128xf32>
    %c5_364 = arith.constant 5 : index
    %1350 = memref.load %arg13[%c5_364] : memref<16xf32, #tpu.memory_space<smem>>
    %1351 = vector.broadcast %1350 : f32 to vector<1x128xf32>
    %1352 = arith.mulf %1245, %1351 : vector<1x128xf32>
    %1353 = arith.addf %1349, %1352 : vector<1x128xf32>
    %c9_365 = arith.constant 9 : index
    %1354 = memref.load %arg13[%c9_365] : memref<16xf32, #tpu.memory_space<smem>>
    %1355 = vector.broadcast %1354 : f32 to vector<1x128xf32>
    %1356 = arith.mulf %1288, %1355 : vector<1x128xf32>
    %1357 = arith.addf %1353, %1356 : vector<1x128xf32>
    %c13_366 = arith.constant 13 : index
    %1358 = memref.load %arg13[%c13_366] : memref<16xf32, #tpu.memory_space<smem>>
    %1359 = vector.broadcast %1358 : f32 to vector<1x128xf32>
    %1360 = arith.mulf %1331, %1359 : vector<1x128xf32>
    %1361 = arith.addf %1357, %1360 : vector<1x128xf32>
    %c2_367 = arith.constant 2 : index
    %1362 = memref.load %arg13[%c2_367] : memref<16xf32, #tpu.memory_space<smem>>
    %1363 = vector.broadcast %1362 : f32 to vector<1x128xf32>
    %1364 = arith.mulf %1202, %1363 : vector<1x128xf32>
    %c6_368 = arith.constant 6 : index
    %1365 = memref.load %arg13[%c6_368] : memref<16xf32, #tpu.memory_space<smem>>
    %1366 = vector.broadcast %1365 : f32 to vector<1x128xf32>
    %1367 = arith.mulf %1245, %1366 : vector<1x128xf32>
    %1368 = arith.addf %1364, %1367 : vector<1x128xf32>
    %c10_369 = arith.constant 10 : index
    %1369 = memref.load %arg13[%c10_369] : memref<16xf32, #tpu.memory_space<smem>>
    %1370 = vector.broadcast %1369 : f32 to vector<1x128xf32>
    %1371 = arith.mulf %1288, %1370 : vector<1x128xf32>
    %1372 = arith.addf %1368, %1371 : vector<1x128xf32>
    %c14_370 = arith.constant 14 : index
    %1373 = memref.load %arg13[%c14_370] : memref<16xf32, #tpu.memory_space<smem>>
    %1374 = vector.broadcast %1373 : f32 to vector<1x128xf32>
    %1375 = arith.mulf %1331, %1374 : vector<1x128xf32>
    %1376 = arith.addf %1372, %1375 : vector<1x128xf32>
    %c3_371 = arith.constant 3 : index
    %1377 = memref.load %arg13[%c3_371] : memref<16xf32, #tpu.memory_space<smem>>
    %1378 = vector.broadcast %1377 : f32 to vector<1x128xf32>
    %1379 = arith.mulf %1202, %1378 : vector<1x128xf32>
    %c7_372 = arith.constant 7 : index
    %1380 = memref.load %arg13[%c7_372] : memref<16xf32, #tpu.memory_space<smem>>
    %1381 = vector.broadcast %1380 : f32 to vector<1x128xf32>
    %1382 = arith.mulf %1245, %1381 : vector<1x128xf32>
    %1383 = arith.addf %1379, %1382 : vector<1x128xf32>
    %c11_373 = arith.constant 11 : index
    %1384 = memref.load %arg13[%c11_373] : memref<16xf32, #tpu.memory_space<smem>>
    %1385 = vector.broadcast %1384 : f32 to vector<1x128xf32>
    %1386 = arith.mulf %1288, %1385 : vector<1x128xf32>
    %1387 = arith.addf %1383, %1386 : vector<1x128xf32>
    %c15_374 = arith.constant 15 : index
    %1388 = memref.load %arg13[%c15_374] : memref<16xf32, #tpu.memory_space<smem>>
    %1389 = vector.broadcast %1388 : f32 to vector<1x128xf32>
    %1390 = arith.mulf %1331, %1389 : vector<1x128xf32>
    %1391 = arith.addf %1387, %1390 : vector<1x128xf32>
    %c0_375 = arith.constant 0 : index
    %1392 = memref.load %arg14[%c0_375] : memref<4xf32, #tpu.memory_space<smem>>
    %1393 = vector.broadcast %1392 : f32 to vector<1x128xf32>
    %1394 = arith.addf %1346, %1393 : vector<1x128xf32>
    %1395 = arith.addf %1394, %1038 : vector<1x128xf32>
    %c1_376 = arith.constant 1 : index
    %1396 = memref.load %arg14[%c1_376] : memref<4xf32, #tpu.memory_space<smem>>
    %1397 = vector.broadcast %1396 : f32 to vector<1x128xf32>
    %1398 = arith.addf %1361, %1397 : vector<1x128xf32>
    %1399 = arith.addf %1398, %1042 : vector<1x128xf32>
    %c2_377 = arith.constant 2 : index
    %1400 = memref.load %arg14[%c2_377] : memref<4xf32, #tpu.memory_space<smem>>
    %1401 = vector.broadcast %1400 : f32 to vector<1x128xf32>
    %1402 = arith.addf %1376, %1401 : vector<1x128xf32>
    %1403 = arith.addf %1402, %1046 : vector<1x128xf32>
    %c3_378 = arith.constant 3 : index
    %1404 = memref.load %arg14[%c3_378] : memref<4xf32, #tpu.memory_space<smem>>
    %1405 = vector.broadcast %1404 : f32 to vector<1x128xf32>
    %1406 = arith.addf %1391, %1405 : vector<1x128xf32>
    %1407 = arith.addf %1406, %1050 : vector<1x128xf32>
    %1408 = tpu.concatenate %1395, %1399, %1403, %1407 in 0 : vector<1x128xf32>, vector<1x128xf32>, vector<1x128xf32>, vector<1x128xf32> -> vector<4x128xf32>
    %c1_379 = arith.constant 1 : index
    %c0_380 = arith.constant 0 : index
    %c0_381 = arith.constant 0 : index
    %1409 = vector.load %arg15[%c1_379, %c0_380, %c0_381] : memref<2x4x128xf32, #tpu.memory_space<vmem>>, vector<1x4x128xf32>
    %1410 = vector.shape_cast %1409 : vector<1x4x128xf32> to vector<4x128xf32>
    %1411 = vector.shape_cast %1408 : vector<4x128xf32> to vector<1x4x128xf32>
    tpu.vector_store %arg15[%c1_379, %c0_380, %c0_381], %1411 {strides = array<i32>} : memref<2x4x128xf32, #tpu.memory_space<vmem>>, vector<1x4x128xf32>,
    return
  }
  func.func @transform_0(%arg0: i32) -> (i32, i32, i32) {
    %c0_i32 = arith.constant 0 : i32
    %c0_i32_0 = arith.constant 0 : i32
    %c0_i32_1 = arith.constant 0 : i32
    return %c0_i32, %c0_i32_0, %arg0 : i32, i32, i32
  }
  func.func @transform_1(%arg0: i32) -> i32 {
    %c0_i32 = arith.constant 0 : i32
    %c0_i32_0 = arith.constant 0 : i32
    return %c0_i32 : i32
  }
  func.func @transform_2(%arg0: i32) -> i32 {
    %c0_i32 = arith.constant 0 : i32
    %c0_i32_0 = arith.constant 0 : i32
    return %c0_i32 : i32
  }
  func.func @transform_3(%arg0: i32) -> i32 {
    %c0_i32 = arith.constant 0 : i32
    %c0_i32_0 = arith.constant 0 : i32
    return %c0_i32 : i32
  }
  func.func @transform_4(%arg0: i32) -> i32 {
    %c0_i32 = arith.constant 0 : i32
    %c0_i32_0 = arith.constant 0 : i32
    return %c0_i32 : i32
  }
  func.func @transform_5(%arg0: i32) -> i32 {
    %c0_i32 = arith.constant 0 : i32
    %c0_i32_0 = arith.constant 0 : i32
    return %c0_i32 : i32
  }
  func.func @transform_6(%arg0: i32) -> i32 {
    %c0_i32 = arith.constant 0 : i32
    %c0_i32_0 = arith.constant 0 : i32
    return %c0_i32 : i32
  }
  func.func @transform_7(%arg0: i32) -> i32 {
    %c0_i32 = arith.constant 0 : i32
    %c0_i32_0 = arith.constant 0 : i32
    return %c0_i32 : i32
  }
  func.func @transform_8(%arg0: i32) -> i32 {
    %c0_i32 = arith.constant 0 : i32
    %c0_i32_0 = arith.constant 0 : i32
    return %c0_i32 : i32
  }
  func.func @transform_9(%arg0: i32) -> i32 {
    %c0_i32 = arith.constant 0 : i32
    %c0_i32_0 = arith.constant 0 : i32
    return %c0_i32 : i32
  }
  func.func @transform_10(%arg0: i32) -> i32 {
    %c0_i32 = arith.constant 0 : i32
    %c0_i32_0 = arith.constant 0 : i32
    return %c0_i32 : i32
  }
  func.func @transform_11(%arg0: i32) -> i32 {
    %c0_i32 = arith.constant 0 : i32
    %c0_i32_0 = arith.constant 0 : i32
    return %c0_i32 : i32
  }
  func.func @transform_12(%arg0: i32) -> i32 {
    %c0_i32 = arith.constant 0 : i32
    %c0_i32_0 = arith.constant 0 : i32
    return %c0_i32 : i32
  }
  func.func @transform_13(%arg0: i32) -> i32 {
    %c0_i32 = arith.constant 0 : i32
    %c0_i32_0 = arith.constant 0 : i32
    return %c0_i32 : i32
  }
  func.func @transform_14(%arg0: i32) -> (i32, i32, i32) {
    %c0_i32 = arith.constant 0 : i32
    %c0_i32_0 = arith.constant 0 : i32
    %c0_i32_1 = arith.constant 0 : i32
    return %c0_i32, %c0_i32_0, %arg0 : i32, i32, i32
  }
}

</mosaic_0001>

<bundles_post_ra>
// kernel: tpu_custom_call.1
= control target key start
LH: loop header
LB: loop body
LE: loop exit
PB: predicated region body
PF: predicated region fallthrough
CT: control target
= control target key end

     0   :  { %s5265_s0 = inlined_call_operand.hbm [shape: f32[2,4,256], index: 0, kind: input, shape index: {}]   ;;  %s5266_s1 = inlined_call_operand.hbm [shape: f32[16], index: 1, kind: input, shape index: {}]   ;;  %s5267_s2 = inlined_call_operand.vmem [shape: f32[16], index: 2, kind: input, shape index: {}]   ;;  %s5268_s3 = inlined_call_operand.vmem [shape: f32[16], index: 3, kind: input, shape index: {}]   ;;  %s5269_s4 = inlined_call_operand.vmem [shape: f32[16], index: 4, kind: input, shape index: {}]   ;;  %s5270_s5 = inlined_call_operand.vmem [shape: f32[4], index: 5, kind: input, shape index: {}]   ;;  %s5271_s6 = inlined_call_operand.vmem [shape: f32[4], index: 6, kind: input, shape index: {}]   ;;  %s5272_s7 = inlined_call_operand.vmem [shape: f32[4], index: 7, kind: input, shape index: {}]   ;;  %s5273_s8 = inlined_call_operand.vmem [shape: f32[4], index: 8, kind: input, shape index: {}]   ;;  %s5274_s9 = inlined_call_operand.vmem [shape: f32[4], index: 9, kind: input, shape index: {}]   ;;  %s5275_s10 = inlined_call_operand.vmem [shape: f32[16], index: 10, kind: input, shape index: {}]   ;;  %s5276_s11 = inlined_call_operand.vmem [shape: f32[4], index: 11, kind: input, shape index: {}]   ;;  %s5277_s12 = inlined_call_operand.vmem [shape: f32[16], index: 12, kind: input, shape index: {}]   ;;  %s5278_s13 = inlined_call_operand.vmem [shape: f32[4], index: 13, kind: input, shape index: {}]   ;;  %s5279_s14 = inlined_call_operand.hbm [shape: f32[2,4,256], index: 14, kind: output, shape index: {}]  }
   0x1   :  { %5364 = sst [smem:[#allocation95_spill]] %s5265_s0 }
   0x2   :  { %5365 = sst [smem:[#allocation96_spill]] %s5266_s1 }
   0x3   :  { %5366 = sst [smem:[#allocation97_spill]] %s5267_s2 }
   0x4   :  { %5367 = sst [smem:[#allocation98_spill]] %s5268_s3 }
   0x5   :  { %5368 = sst [smem:[#allocation99_spill]] %s5269_s4 }
   0x6   :  { %5369 = sst [smem:[#allocation100_spill]] %s5270_s5 }
   0x7   :  { %5370 = sst [smem:[#allocation101_spill]] %s5271_s6 }
   0x8   :  { %5371 = sst [smem:[#allocation102_spill]] %s5272_s7 }
   0x9   :  { %5372 = sst [smem:[#allocation103_spill]] %s5273_s8 }
   0xa   :  { %5373 = sst [smem:[#allocation104_spill]] %s5274_s9 }
   0xb   :  { %5374 = sst [smem:[#allocation105_spill]] %s5275_s10 }
   0xc   :  { %5375 = sst [smem:[#allocation106_spill]] %s5276_s11 }
   0xd   :  { %5376 = sst [smem:[#allocation107_spill]] %s5277_s12 }
   0xe   :  { %5377 = sst [smem:[#allocation108_spill]] %s5278_s13 }
   0xf   :  { %5378 = sst [smem:[#allocation109_spill]] %s5279_s14 }
  0x10   :  { %19 = vsyncpa [#allocation3], 0 }
  0x11   :  { %21 = vsyncpa [#allocation3 + $0x1], 0 }
  0x12   :  { %22 = vsyncpa [#allocation5], 0 }
  0x13   :  { %23 = vsyncpa [#allocation6], 0 }
  0x14   :  { %24 = vsyncpa [#allocation10], 0 }
  0x15   :  { %25 = vsyncpa [#allocation13], 0 }
  0x16   :  { %26 = vsyncpa [#allocation16], 0 }
  0x17   :  { %27 = vsyncpa [#allocation19], 0 }
  0x18   :  { %28 = vsyncpa [#allocation22], 0 }
  0x19   :  { %29 = vsyncpa [#allocation25], 0 }
  0x1a   :  { %30 = vsyncpa [#allocation4], 0 }
  0x1b   :  { %32 = vsyncpa [#allocation4 + $0x1], 0  ;;  %s3305_s29 = smov 0   ;;  %s3307_s30 = smov 0  }
  0x1c   :  { %s3309_s15 = smov 0   ;;  %s3311_s16 = smov 0  }
  0x1d LB: > { %5379 = sst [smem:[#allocation37_spill]] %s3197_s29  ;;  %s3329_s20 = sadd.s32 4294967295, %s3209_s16   ;;  %s3209_s16 = sphi %s3311_s16, %s5621_s16   ;;  %s3205_s15 = sphi %s3309_s15, %s5624_s15   ;;  %s3201_s30 = sphi %s3307_s30, %s5623_s30   ;;  %s3197_s29 = sphi %s3305_s29, %s5622_s29  }
  0x1e   : > { %5380 = sst [smem:[#allocation38_spill]] %s3201_s30  ;;  %p2432_p0 = scmp.ge.s32.totalorder %s3209_s16, 1 }
  0x1f   : > { %5381 = sst [smem:[#allocation39_spill]] %s3205_s15  ;;  %p59_p1 = scmp.eq.s32.totalorder %s3329_s20, 0 }
  0x20   : > { %5382 = sst [smem:[#allocation40_spill]] %s3209_s16  ;;  %p368_p2 = scmp.lt.s32.totalorder %s3209_s16, 3 }
  0x21   : > { %s5383_s3 = sld [smem:[#allocation98_spill]]  ;;  %s3211_s23 = smov [#allocation9]  }
  0x22   : > { %5384 = sst [smem:[#allocation41_spill]] %s3329_s20  ;;  %p3334_p3 = pnand %p2432_p0, %p368_p2 }
  0x23   : > { %s5386_s5 = sld [smem:[#allocation100_spill]]  ;;  %s3212_s25 = smov [#allocation12]  }
  0x24   : > { %p2713_p5 = pneg %p3334_p3  ;;  %s5387_s7 = sld [smem:[#allocation102_spill]] }
  0x25   : > { %s5389_s9 = sld [smem:[#allocation104_spill]]  ;;  %s3213_s26 = smov [#allocation15]  }
  0x26   : > { %p3349_p6 = pnand %p2713_p5, %p59_p1  ;;  %s5390_s11 = sld [smem:[#allocation106_spill]] }
  0x27   : > { %s400_s19 = sshll.u32 %s5383_s3, 4  ;;  %s3214_s3 = smov [#allocation18]   ;;  %s401_s19 = int_to_ptr.vmem [resolvable:$true] %s400_s19 }
  0x28   : > { %2722 = dma.vmem_to_smem (!%p3349_p6), %s401_s19, 16, %s3211_s23, [#allocation10]  }
  0x29   : > { %s420_s24 = sshll.u32 %s5386_s5, 4  ;;  %s5391_s1 = sld [smem:[#allocation96_spill]]  ;;  %s421_s24 = int_to_ptr.vmem [resolvable:$true] %s420_s24 }
  0x2a   : > { %s440_s27 = sshll.u32 %s5387_s7, 4  ;;  %s3215_s23 = smov [#allocation21]   ;;  %s441_s27 = int_to_ptr.vmem [resolvable:$true] %s440_s27 }
  0x2b   : > { %s460_s22 = sshll.u32 %s5389_s9, 4  ;;  %s5392_s2 = sld [smem:[#allocation97_spill]]  ;;  %s461_s22 = int_to_ptr.vmem [resolvable:$true] %s460_s22 }
  0x2c   : > { %2728 = dma.vmem_to_smem (!%p3349_p6), %s421_s24, 16, %s3212_s25, [#allocation13]  }
  0x2d   : > { %2734 = dma.vmem_to_smem (!%p3349_p6), %s441_s27, 16, %s3213_s26, [#allocation16]  }
  0x2e   : > { %2740 = dma.vmem_to_smem (!%p3349_p6), %s461_s22, 16, %s3214_s3, [#allocation19]  }
  0x2f   : > { %s480_s17 = sshll.u32 %s5390_s11, 4  ;;  %s380_s19 = sshll.u32 %s5391_s1, 4  ;;  %s481_s17 = int_to_ptr.vmem [resolvable:$true] %s480_s17  ;;  %s381_s19 = int_to_ptr.hbm [resolvable:$true] %s380_s19 }
  0x30   : > { %2746 = dma.vmem_to_smem (!%p3349_p6), %s481_s17, 16, %s3215_s23, [#allocation22]  }
  0x31   : > { %s3216_s24 = smov [#allocation7]   ;;  %s390_s5 = sshll.u32 %s5392_s2, 4  ;;  %s391_s5 = int_to_ptr.vmem [resolvable:$true] %s390_s5 }
  0x32   : > { %2716 = dma.hbm_to_smem (!%p3349_p6), %s381_s19, 16, %s3216_s24, [#allocation5]  }
  0x33   : > { %s5393_s4 = sld [smem:[#allocation99_spill]]  ;;  %s3217_s9 = smov [#allocation8]  }
  0x34   : > { %2719 = dma.vmem_to_smem (!%p3349_p6), %s391_s5, 16, %s3217_s9, [#allocation6]  }
  0x35   : > { %s3218_s26 = smov [#allocation11]   ;;  %s5394_s6 = sld [smem:[#allocation101_spill]] }
  0x36   : > { %s5395_s8 = sld [smem:[#allocation103_spill]]  ;;  %s3219_s3 = smov [#allocation14]  }
  0x37   : > { %s3220_s5 = smov [#allocation17]   ;;  %s5396_s10 = sld [smem:[#allocation105_spill]] }
  0x38   : > { %s5397_s12 = sld [smem:[#allocation107_spill]]  ;;  %s3221_s18 = smov [#allocation20]  }
  0x39   : > { %s410_s25 = sshll.u32 %s5393_s4, 4  ;;  %s5398_s13 = sld [smem:[#allocation108_spill]]  ;;  %s411_s25 = int_to_ptr.vmem [resolvable:$true] %s410_s25 }
  0x3a   : > { %2725 = dma.vmem_to_smem (!%p3349_p6), %s411_s25, 16, %s3218_s26, [#allocation10]  }
  0x3b   : > { %s430_s19 = sshll.u32 %s5394_s6, 4  ;;  %s3411_s7 = sadd.s32 1, %s3209_s16   ;;  %s431_s19 = int_to_ptr.vmem [resolvable:$true] %s430_s19 }
  0x3c   : > { %s450_s27 = sshll.u32 %s5395_s8, 4  ;;  %5399 = sst [smem:[#allocation42_spill]] %s3411_s7  ;;  %s451_s27 = int_to_ptr.vmem [resolvable:$true] %s450_s27 }
  0x3d   : > { %2731 = dma.vmem_to_smem (!%p3349_p6), %s431_s19, 16, %s3219_s3, [#allocation13]  }
  0x3e   : > { %2737 = dma.vmem_to_smem (!%p3349_p6), %s451_s27, 16, %s3220_s5, [#allocation16]  }
  0x3f   : > { %s470_s25 = sshll.u32 %s5396_s10, 4  ;;  %s490_s17 = sshll.u32 %s5397_s12, 4  ;;  %s471_s25 = int_to_ptr.vmem [resolvable:$true] %s470_s25  ;;  %s491_s17 = int_to_ptr.vmem [resolvable:$true] %s490_s17 }
  0x40   : > { %2743 = dma.vmem_to_smem (!%p3349_p6), %s471_s25, 16, %s3221_s18, [#allocation19]  }
  0x41   : > { %s3222_s19 = smov [#allocation23]   ;;  %s500_s27 = sshll.u32 %s5398_s13, 4  ;;  %s501_s27 = int_to_ptr.vmem [resolvable:$true] %s500_s27 }
  0x42   : > { %2749 = dma.vmem_to_smem (!%p3349_p6), %s491_s17, 16, %s3222_s19, [#allocation22]  }
  0x43   : > { %s3223_s3 = smov [#allocation24]   ;;  %s2431_s5 = sadd.s32 4294967294, %s3209_s16  }
  0x44   : > { %2752 = dma.vmem_to_smem (!%p3349_p6), %s501_s27, 16, %s3223_s3, [#allocation25]  }
  0x45   : > { %s45_s22 = sadd.s32 1, %s3205_s15  ;;  %s42_s25 = ssub.s32 %s3209_s16, %s3411_s7 }
  0x46   : > { %p52_p7 = scmp.ne.s32.totalorder %s3205_s15, %s3201_s30  ;;  %p43_p8 = scmp.eq.s32.totalorder %s42_s25, 0 }
  0x47   : > { %p53_p9 = scmp.eq.s32.totalorder %s3209_s16, 0  ;;  %p58_p10 = scmp.ne.s32.totalorder %s3201_s30, %s3197_s29 }
  0x48   : > { %p355_p11 = scmp.eq.s32.totalorder %s3329_s20, 1  ;;  %p361_p2 = scmp.eq.s32.totalorder %s2431_s5, 1 }
  0x49   : > { %s3423_s9 = scalar_select %p43_p8, %s3205_s15, %s45_s22  }
  0x4a   : > { %p3425_p12 = por %p53_p9, %p52_p7  ;;  %p3431_p13 = por %p59_p1, %p58_p10 }
  0x4b   : > { %5400 = sst [smem:[#allocation43_spill]] %s3423_s9  ;;  %p3435_p0 = por %p355_p11, %p52_p7 }
  0x4c   : > { %p2774_p5 = scmp.lt.s32.totalorder %s3209_s16, 2  ;;  %s511_s18 = sand.u32 1, %s3205_s15  }
  0x4d   : > { %s5403_s17 = scalar_select %p3435_p0, 1, 0 }
  0x4e   : > { %p3441_p6 = por %p361_p2, %p58_p10  ;;  %s2447_s23 = sshll.u32 %s511_s18, 3 }
  0x4f   : > { %5404 = sst [smem:[#allocation44_spill]] %s5403_s17  ;;  %s2448_s24 = sshll.u32 %s3209_s16, 2 }
  0x50   : > { %s5405_s19 = scalar_select %p3441_p6, 1, 0 }
  0x51   : > { %s5407_s0 = sld [smem:[#allocation95_spill]]  ;;  %s515_s1 = scalar_lea.vmem [#allocation2], %s2447_s23 }
  0x52   : > { %5406 = sst [smem:[#allocation45_spill]] %s5405_s19  ;;  %s522_s2 = sshll.u32 %s515_s1, 4  ;;  %s523_s2 = int_to_ptr.vmem [resolvable:$true] %s522_s2 }
  0x53   : > { %p3451_p7 = pnand %p2774_p5, %p3425_p12  ;;  %s512_s4 = scalar_lea.sflag [#allocation3], %s511_s18 }
  0x55   : > { %p3085_p9 = pneg %p3451_p7 }
  0x57   : > { %s519_s22 = scalar_lea.hbm %s5407_s0, %s2448_s24  ;;  %s3088_s1 = scalar_lea.hbm %s5407_s0, 16 }
  0x58   : > { %s520_s25 = sshll.u32 %s519_s22, 4  ;;  %s521_s25 = int_to_ptr.hbm [resolvable:$true] %s520_s25 }
  0x59   : > { %s3081_s6 = sshra.s32 %s521_s25, 4  ;;  %s3082_s6 = int_to_ptr.hbm [resolvable:$true] %s3081_s6 }
  0x5a   : > { %s3083_s8 = scalar_lea.hbm %s3082_s6, 8  ;;  %p3089_p12 = scmp.lt.s32.totalorder %s3082_s6, %s5407_s0 }
  0x5b   : > { %p3084_p8 = scmp.ne.s32.totalorder %s3082_s6, %s3083_s8  ;;  %p3090_p2 = scmp.lt.s32.totalorder %s3088_s1, %s3083_s8 }
  0x5d   : > { %p3086_p10 = pnand %p3085_p9, %p3084_p8  ;;  %p3091_p5 = por %p3090_p2, %p3089_p12 }
  0x5f   : > { %p3087_p11 = pneg %p3086_p10 }
  0x61   : > { %p3092_p4 = pnand %p3091_p5, %p3087_p11 }
  0x63   : > { %3095 = shalt.err (!%p3092_p4)
}
  0x64   : > { %s3224_s18 = smov 128   ;;  %s3225_s3 = smov 64  }
  0x65   : > { %s3226_s22 = smov 4   ;;  %534 = sbr.rel (%p3334_p3) target bundleno = 546 (0x222), region = 76 }
  0x66   : > { %2756 = dma.hbm_to_vmem [thread:$0]  (!%p3451_p7), %s521_s25, 128, %s523_s2, %s512_s4, %s3224_s18, %s3225_s3, %s3226_s22  }
  0x6a   : > { %s3468_s24 = sand.u32 1, %s3201_s30  }
  0x6b   : > { %5409 = sst [smem:[#allocation46_spill]] %s3468_s24  ;;  %s5280_s6 = sshll.u32 %s3468_s24, 3 }
  0x6c   : > { %s537_s8 = scalar_lea.sflag [#allocation3], %s3468_s24  ;;  %s3474_s23 = scalar_lea.vmem [#allocation2], %s5280_s6 }
  0x6d   : > { %5410 = sst [smem:[#allocation47_spill]] %s3474_s23 }
  0x6e   : > { %3156 = dma.done.wait (%p3431_p13), %s537_s8, 128  }
  0x6f   : > { %3158 = vsyncadd (%p3431_p13), %s537_s8, 4294967168 }
  0x70   : > { %3160 = dma.done.wait (%p59_p1), [#allocation5], 16  }
  0x71   : > { %3162 = vsyncadd (%p59_p1), [#allocation5], 4294967280 }
  0x72   : > { %3164 = dma.done.wait (%p59_p1), [#allocation6], 16  }
  0x73   : > { %3166 = vsyncadd (%p59_p1), [#allocation6], 4294967280 }
  0x74   : > { %3168 = dma.done.wait (%p59_p1), [#allocation10], 32  }
  0x75   : > { %3170 = vsyncadd (%p59_p1), [#allocation10], 4294967264 }
  0x76   : > { %3172 = dma.done.wait (%p59_p1), [#allocation13], 32  }
  0x77   : > { %3174 = vsyncadd (%p59_p1), [#allocation13], 4294967264 }
  0x78   : > { %3176 = dma.done.wait (%p59_p1), [#allocation16], 32  }
  0x79   : > { %3178 = vsyncadd (%p59_p1), [#allocation16], 4294967264 }
  0x7a   : > { %3180 = dma.done.wait (%p59_p1), [#allocation19], 32  }
  0x7b   : > { %3182 = vsyncadd (%p59_p1), [#allocation19], 4294967264 }
  0x7c   : > { %3184 = dma.done.wait (%p59_p1), [#allocation22], 32  }
  0x7d   : > { %3186 = vsyncadd (%p59_p1), [#allocation22], 4294967264 }
  0x7e   : > { %3188 = dma.done.wait (%p59_p1), [#allocation25], 16  }
  0x7f   : > { %3190 = vsyncadd (%p59_p1), [#allocation25], 4294967280 }
  0x80   : > { %611 = sfence }
  0x81   : > { %v3513_v0 = vld [vmem:[%s3474_s23] sm:$0xf]  ;;  %v3518_v3 = vld [vmem:[%s3474_s23 + $0x4] sm:$0xf]  ;;  %s3578_s2 = sld [smem:[#allocation14]] }
  0x82   : > { %v5355_v1 = vrot.slane %v3513_v0, 1  ;;  %v5354_v2 = vrot.slane %v3513_v0, 2  ;;  %v5351_v5 = vrot.slane %v3513_v0, 3  ;;  %v5348_v6 = vrot.slane %v3518_v3, 1  ;;  %s3580_s4 = sld [smem:[#allocation15]] }
  0x83   : > { %v5347_v7 = vrot.slane %v3518_v3, 2  ;;  %v5344_v10 = vrot.slane %v3518_v3, 3  ;;  %s3582_s21 = sld [smem:[#allocation14 + $0x1]] }
  0x84   : > { %v656_v4 = vadd.f32 %v5355_v1, %v3513_v0  ;;  %v743_v9 = vadd.f32 %v3518_v3, %v5348_v6  ;;  %s3586_s28 = sld [smem:[#allocation15 + $0x1]] }
  0x85   : > { %s3588_s25 = sld [smem:[#allocation14 + $0x2]] }
  0x86   : > { %v659_v8 = vadd.f32 %v5354_v2, %v656_v4  ;;  %v746_v12 = vadd.f32 %v5347_v7, %v743_v9  ;;  %s3591_s5 = sld [smem:[#allocation15 + $0x2]] }
  0x87   : > { %s3593_s1 = sld [smem:[#allocation14 + $0x3]] }
  0x88   : > { %v662_v11 = vadd.f32 %v5351_v5, %v659_v8  ;;  %v749_v14 = vadd.f32 %v5344_v10, %v746_v12  ;;  %s3595_s27 = sld [smem:[#allocation15 + $0x3]] }
  0x89   : > { %s3597_s26 = sld [smem:[#allocation7]]  ;;  %v715_v12 = vstv %s3582_s21 }
  0x8a   : > { %v663_v13 = vmul.f32 0.25, %v662_v11  ;;  %v750_v19 = vmul.f32 0.25, %v749_v14  ;;  %s3599_s18 = sld [smem:[#allocation7 + $0x4]]  ;;  %v705_v14 = vstv %s3578_s2 }
  0x8b   : > { %s3603_s3 = sld [smem:[#allocation7 + $0x8]] }
  0x8c   : > { %v3539_v15 = vsub.f32 %v3513_v0, %v663_v13  ;;  %v666_v16 = vrot.slane %v663_v13, 7  ;;  %v669_v17 = vrot.slane %v663_v13, 6  ;;  %v672_v18 = vrot.slane %v663_v13, 5  ;;  %s3607_s22 = sld [smem:[#allocation7 + $0xc]] }
  0x8d   : > { %v3551_v23 = vsub.f32 %v3518_v3, %v750_v19  ;;  %v753_v24 = vrot.slane %v750_v19, 7  ;;  %v756_v25 = vrot.slane %v750_v19, 6  ;;  %v759_v26 = vrot.slane %v750_v19, 5  ;;  %s3609_s8 = sld [smem:[#allocation7 + $0x1]] }
  0x8e   : > { %v3542_v20 = vsub.f32 %v3513_v0, %v666_v16  ;;  %v3545_v21 = vsub.f32 %v3513_v0, %v669_v17  ;;  %v3548_v22 = vsub.f32 %v3513_v0, %v672_v18  ;;  %v675_v27 = vmul.f32 %v3539_v15, %v3539_v15  ;;  %5411 = sst [smem:[#allocation48_spill]] %s3595_s27 }
  0x8f   : > { %v3562_v31 = vsub.f32 %v3518_v3, %v753_v24  ;;  %v3565_v32 = vsub.f32 %v3518_v3, %v756_v25  ;;  %v3568_v33 = vsub.f32 %v3518_v3, %v759_v26  ;;  %v762_v36 = vmul.f32 %v3551_v23, %v3551_v23  ;;  %5412 = sst [smem:[#allocation49_spill]] %s3597_s26 }
  0x90   : > { %v676_v28 = vmul.f32 %v3542_v20, %v3542_v20  ;;  %v681_v29 = vmul.f32 %v3545_v21, %v3545_v21  ;;  %v686_v30 = vmul.f32 %v3548_v22, %v3548_v22  ;;  %5413 = sst [smem:[#allocation50_spill]] %s3599_s18  ;;  %v724_v18 = vstv %s3588_s25 }
  0x91   : > { %v763_v37 = vmul.f32 %v3562_v31, %v3562_v31  ;;  %v768_v38 = vmul.f32 %v3565_v32, %v3565_v32  ;;  %v773_v39 = vmul.f32 %v3568_v33, %v3568_v33  ;;  %5414 = sst [smem:[#allocation51_spill]] %s3603_s3  ;;  %v718_v19 = vstv %s3586_s28 }
  0x92   : > { %v678_v34 = vrot.slane %v676_v28, 1  ;;  %v683_v35 = vrot.slane %v681_v29, 2  ;;  %v688_v41 = vrot.slane %v686_v30, 3  ;;  %s3611_s6 = sld [smem:[#allocation7 + $0x5]]  ;;  %v708_v24 = vstv %s3580_s4 }
  0x93   : > { %v765_v42 = vrot.slane %v763_v37, 1  ;;  %v770_v43 = vrot.slane %v768_v38, 2  ;;  %v775_v46 = vrot.slane %v773_v39, 3  ;;  %5415 = sst [smem:[#allocation52_spill]] %s3609_s8  ;;  %v727_v28 = vstv %s3591_s5 }
  0x94   : > { %v680_v40 = vadd.f32 %v678_v34, %v675_v27  ;;  %s3614_s0 = sld [smem:[#allocation7 + $0x9]]  ;;  %v733_v29 = vstv %s3593_s1  ;;  %v813_v30 = vstv %s3599_s18  ;;  %v736_v34 = vstv %s3595_s27 }
  0x95   : > { %v767_v45 = vadd.f32 %v765_v42, %v762_v36  ;;  %s3616_s10 = sld [smem:[#allocation7 + $0xd]]  ;;  %v827_v42 = vstv %s3607_s22 }
  0x96   : > { %v685_v44 = vadd.f32 %v683_v35, %v680_v40  ;;  %s3618_s11 = sld [smem:[#allocation7 + $0x2]]  ;;  %v810_v40 = vstv %s3597_s26 }
  0x97   : > { %v772_v48 = vadd.f32 %v770_v43, %v767_v45  ;;  %s3620_s12 = sld [smem:[#allocation7 + $0x6]]  ;;  %v834_v43 = vstv %s3609_s8 }
  0x98   : > { %v690_v47 = vadd.f32 %v688_v41, %v685_v44  ;;  %5416 = sst [smem:[#allocation53_spill]] %s3611_s6  ;;  %v837_v35 = vstv %s3611_s6  ;;  %v820_v41 = vstv %s3603_s3 }
  0x99   : > { %v777_v50 = vadd.f32 %v775_v46, %v772_v48  ;;  %s3622_s13 = sld [smem:[#allocation7 + $0xa]] }
  0x9a   : > { %v691_v49 = vmul.f32 0.25, %v690_v47  ;;  %s3624_s9 = sld [smem:[#allocation7 + $0xe]]  ;;  %v844_v45 = vstv %s3614_s0 }
  0x9b   : > { %v778_v52 = vmul.f32 0.25, %v777_v50  ;;  %s3628_s15 = sld [smem:[#allocation7 + $0x3]]  ;;  %v851_v46 = vstv %s3616_s10 }
  0x9c   : > { %v692_v51 = vadd.f32 1e-05, %v691_v49  ;;  %s3634_s30 = sld [smem:[#allocation7 + $0x7]]  ;;  %v858_v49 = vstv %s3618_s11 }
  0x9d   : > { %v3584_v53 = vadd.f32 1e-05, %v778_v52  ;;  %s3637_s7 = sld [smem:[#allocation7 + $0xb]]  ;;  %v861_v47 = vstv %s3620_s12 }
  0x9e   : > { %2840 = vrsqrt.f32 %v692_v51  ;;  %vm699_vm0 = vweird.f32 %v692_v51  ;;  %s3643_s16 = sld [smem:[#allocation7 + $0xf]] }
  0x9f   : > { %2842 = vrsqrt.f32 %v3584_v53  ;;  %vm786_vm3 = vweird.f32 %v3584_v53  ;;  %s3651_s19 = sld [smem:[#allocation9]]  ;;  %v868_v50 = vstv %s3622_s13 }
  0xa0   : > { %s3660_s29 = sld [smem:[#allocation9 + $0x4]] }
  0xa1   : > { %s3663_s17 = sld [smem:[#allocation9 + $0x8]] }
  0xa2   : > { %s3669_s14 = sld [smem:[#allocation9 + $0xc]] }
  0xa3   : > { %s3684_s20 = sld [smem:[#allocation9 + $0x1]] }
  0xa4   : > { %v2841_v54 = vpop.eup %2840  ;;  %s3690_s24 = sld [smem:[#allocation9 + $0x5]] }
  0xa5   : > { %v694_v55 = vmul.f32 %v2841_v54, %v692_v51  ;;  %v3601_v56 = vpop.eup %2842  ;;  %vm700_vm1 = vweird.f32 %v2841_v54  ;;  %s3696_s23 = sld [smem:[#allocation9 + $0x9]]  ;;  %v885_v51 = vstv %s3634_s30 }
  0xa6   : > { %v781_v58 = vmul.f32 %v3601_v56, %v3584_v53  ;;  %vm701_vm2 = vmor %vm699_vm0, %vm700_vm1  ;;  %vm787_vm4 = vweird.f32 %v3601_v56  ;;  %s3704_s18 = sld [smem:[#allocation9 + $0xd]] }
  0xa7   : > { %v695_v57 = vmul.f32 %v2841_v54, %v694_v55  ;;  %5417 = sst [smem:[#allocation54_spill]] %s3663_s17  ;;  %vm788_vm5 = vmor %vm786_vm3, %vm787_vm4 }
  0xa8   : > { %v782_v61 = vmul.f32 %v3601_v56, %v781_v58  ;;  %s3716_s6 = sld [smem:[#allocation9 + $0x2]] }
  0xa9   : > { %v696_v59 = vmul.f32 0.5, %v695_v57  ;;  %s3719_s27 = sld [smem:[#allocation9 + $0x6]] }
  0xaa   : > { %v783_v4 = vmul.f32 0.5, %v782_v61  ;;  %v892_v61 = vstv %s3637_s7  ;;  %s3725_s26 = sld [smem:[#allocation9 + $0xa]] }
  0xab   : > { %v697_v60 = vsub.f32 1.5, %v696_v59  ;;  %v875_v59 = vstv %s3624_s9  ;;  %s3736_s3 = sld [smem:[#allocation9 + $0xe]] }
  0xac   : > { %s3742_s8 = sld [smem:[#allocation9 + $0x3]] }
  0xad   : > { %v698_v62 = vmul.f32 %v2841_v54, %v697_v60  ;;  %v882_v60 = vstv %s3628_s15  ;;  %s3787_s21 = sld [smem:[#allocation8 + $0x8]] }
  0xae   : > { %s3789_s25 = sld [smem:[#allocation8 + $0xc]] }
  0xaf   : > { %v702_v63 = vsel %vm701_vm2, %v2841_v54, %v698_v62  ;;  %v899_v62 = vstv %s3643_s16  ;;  %s3802_s1 = sld [smem:[#allocation8 + $0x1]] }
  0xb0   : > { %v711_v8 = vrot.slane %v702_v63, 7  ;;  %v720_v9 = vrot.slane %v702_v63, 6  ;;  %v703_v11 = vmul.f32 %v702_v63, %v3539_v15  ;;  %v729_v13 = vrot.slane %v702_v63, 5  ;;  %s3831_s28 = sld [smem:[#allocation8 + $0x9]] }
  0xb1   : > { %v784_v15 = vsub.f32 1.5, %v783_v4  ;;  %v913_v63 = vstv %s3651_s19  ;;  %5418 = sst [smem:[#allocation55_spill]] %s3736_s3 }
  0xb2   : > { %v713_v16 = vmul.f32 %v711_v8, %v3542_v20  ;;  %v722_v17 = vmul.f32 %v720_v9, %v3545_v21  ;;  %v706_v20 = vmul.f32 %v705_v14, %v703_v11  ;;  %v731_v26 = vmul.f32 %v729_v13, %v3548_v22  ;;  %5419 = sst [smem:[#allocation56_spill]] %s3742_s8 }
  0xb3   : > { %v785_v22 = vmul.f32 %v3601_v56, %v784_v15  ;;  %v916_v15 = vstv %s3660_s29  ;;  %s3748_s3 = sld [smem:[#allocation9 + $0x7]] }
  0xb4   : > { %v716_v25 = vmul.f32 %v715_v12, %v713_v16  ;;  %v725_v21 = vmul.f32 %v724_v18, %v722_v17  ;;  %v3673_v36 = vadd.f32 %v708_v24, %v706_v20  ;;  %v734_v38 = vmul.f32 %v733_v29, %v731_v26  ;;  %s3758_s8 = sld [smem:[#allocation9 + $0xb]] }
  0xb5   : > { %v789_v44 = vsel %vm788_vm5, %v3601_v56, %v785_v22  ;;  %5425 = sst [smem:[#allocation48_spill]] %s3787_s21 }
  0xb6   : > { %v3655_v27 = vadd.f32 %v718_v19, %v716_v25  ;;  %v3677_v37 = vadd.f32 %v727_v28, %v725_v21  ;;  %v3708_v52 = vadd.f32 %v736_v34, %v734_v38  ;;  %v811_v53 = vmul.f32 %v810_v40, %v3673_v36  ;;  %5426 = sst [smem:[#allocation61_spill]] %s3789_s25 }
  0xb7   : > { %v794_v56 = vrot.slane %v789_v44, 7  ;;  %v799_v57 = vrot.slane %v789_v44, 6  ;;  %v804_v58 = vrot.slane %v789_v44, 5  ;;  %v835_v4 = vmul.f32 %v834_v43, %v3673_v36  ;;  %5427 = sst [smem:[#allocation62_spill]] %s3802_s1 }
  0xb8   : > { %v814_v39 = vmul.f32 %v813_v30, %v3655_v27  ;;  %v838_v48 = vmul.f32 %v837_v35, %v3655_v27  ;;  %v821_v55 = vmul.f32 %v820_v41, %v3677_v37  ;;  %v845_v9 = vmul.f32 %v844_v45, %v3677_v37  ;;  %s3820_s25 = sld [smem:[#allocation8 + $0x5]] }
  0xb9   : > { %v862_v11 = vmul.f32 %v861_v47, %v3655_v27  ;;  %v828_v17 = vmul.f32 %v827_v42, %v3708_v52  ;;  %v790_v25 = vmul.f32 %v789_v44, %v3551_v23  ;;  %v796_v20 = vmul.f32 %v794_v56, %v3562_v31  ;;  %5420 = sst [smem:[#allocation57_spill]] %s3748_s3 }
  0xba   : > { %v816_v54 = vrot.slane %v814_v39, 1  ;;  %v840_v8 = vrot.slane %v838_v48, 1  ;;  %v823_v16 = vrot.slane %v821_v55, 2  ;;  %v801_v21 = vmul.f32 %v799_v57, %v3565_v32  ;;  %5421 = sst [smem:[#allocation58_spill]] %s3758_s8 }
  0xbb   : > { %v806_v26 = vmul.f32 %v804_v58, %v3568_v33  ;;  %v852_v22 = vmul.f32 %v851_v46, %v3708_v52  ;;  %v859_v38 = vmul.f32 %v858_v49, %v3673_v36  ;;  %v923_v23 = vstv %s3663_s17  ;;  %s3763_s3 = sld [smem:[#allocation9 + $0xf]] }
  0xbc   : > { %v818_v13 = vadd.f32 %v816_v54, %v811_v53  ;;  %v930_v31 = vstv %s3669_s14  ;;  %v842_v32 = vadd.f32 %v840_v8, %v835_v4  ;;  %v847_v33 = vrot.slane %v845_v9, 2  ;;  %s3767_s17 = sld [smem:[#allocation8]] }
  0xbd   : > { %v864_v39 = vrot.slane %v862_v11, 1  ;;  %v869_v44 = vmul.f32 %v868_v50, %v3677_v37  ;;  %v830_v53 = vrot.slane %v828_v17, 3  ;;  %v937_v54 = vstv %s3684_s20  ;;  %s3777_s8 = sld [smem:[#allocation8 + $0x4]] }
  0xbe   : > { %v825_v48 = vadd.f32 %v823_v16, %v818_v13  ;;  %v940_v55 = vstv %s3690_s24  ;;  %v791_v56 = vmul.f32 %v790_v25, %v705_v14  ;;  %v797_v57 = vmul.f32 %v796_v20, %v715_v12  ;;  %5428 = sst [smem:[#allocation63_spill]] %s3820_s25 }
  0xbf   : > { %v802_v58 = vmul.f32 %v801_v21, %v724_v18  ;;  %v807_v4 = vmul.f32 %v806_v26, %v733_v29  ;;  %v876_v8 = vmul.f32 %v875_v59, %v3708_v52  ;;  %v886_v9 = vmul.f32 %v885_v51, %v3655_v27  ;;  %5432 = sst [smem:[#allocation49_spill]] %s3831_s28 }
  0xc0   : > { %v947_v14 = vstv %s3696_s23  ;;  %v954_v12 = vstv %s3704_s18  ;;  %v849_v18 = vadd.f32 %v847_v33, %v842_v32  ;;  %v854_v11 = vrot.slane %v852_v22, 3  ;;  %s3836_s25 = sld [smem:[#allocation8 + $0xd]] }
  0xc1   : > { %v866_v29 = vadd.f32 %v864_v39, %v859_v38  ;;  %v871_v13 = vrot.slane %v869_v44, 2  ;;  %v3791_v16 = vadd.f32 %v830_v53, %v825_v48  ;;  %v893_v17 = vmul.f32 %v892_v61, %v3677_v37  ;;  %s3848_s28 = sld [smem:[#allocation8 + $0x2]] }
  0xc2   : > { %5422 = sst [smem:[#allocation59_spill]] %s3767_s17  ;;  %v3799_v25 = vmul.f32 %v899_v62, %v3708_v52  ;;  %v961_v20 = vstv %s3716_s6  ;;  %v3806_v21 = vadd.f32 %v791_v56, %v708_v24  ;;  %v3810_v26 = vadd.f32 %v797_v57, %v718_v19 }
  0xc3   : > { %5423 = sst [smem:[#allocation60_spill]] %s3777_s8  ;;  %v3814_v22 = vadd.f32 %v802_v58, %v727_v28  ;;  %v3818_v38 = vadd.f32 %v807_v4, %v736_v34  ;;  %v883_v32 = vmul.f32 %v882_v60, %v3673_v36  ;;  %v888_v33 = vrot.slane %v886_v9, 1 }
  0xc4   : > { %v3828_v19 = vmul.f32 %v916_v15, %v3655_v27  ;;  %v964_v24 = vstv %s3719_s27  ;;  %v3833_v28 = vadd.f32 %v854_v11, %v849_v18  ;;  %v873_v34 = vadd.f32 %v871_v13, %v866_v29  ;;  %s3871_s21 = sld [smem:[#allocation8 + $0xa]] }
  0xc5   : > { %v878_v39 = vrot.slane %v876_v8, 3  ;;  %v971_v44 = vstv %s3725_s26  ;;  %v895_v48 = vrot.slane %v893_v17, 2  ;;  %v902_v53 = vrot.slane %v3799_v25, 3  ;;  %s3877_s22 = sld [smem:[#allocation8 + $0xe]] }
  0xc6   : > { %5435 = sst [smem:[#allocation50_spill]] %s3836_s25  ;;  %v3841_v56 = vmul.f32 %v3791_v16, %v3791_v16  ;;  %v3846_v57 = vmul.f32 %v913_v63, %v3673_v36  ;;  %v1008_v58 = vmul.f32 %v810_v40, %v3806_v21  ;;  %v1009_v4 = vmul.f32 %v813_v30, %v3810_v26 }
  0xc7   : > { %5436 = sst [smem:[#allocation51_spill]] %s3848_s28  ;;  %v1014_v8 = vmul.f32 %v820_v41, %v3814_v22  ;;  %v1019_v9 = vmul.f32 %v827_v42, %v3818_v38  ;;  %v890_v18 = vadd.f32 %v888_v33, %v883_v32  ;;  %v919_v11 = vrot.slane %v3828_v19, 1 }
  0xc8   : > { %s3862_s25 = sld [smem:[#allocation8 + $0x6]]  ;;  %v1024_v40 = vmul.f32 %v834_v43, %v3806_v21  ;;  %v1025_v30 = vmul.f32 %v837_v35, %v3810_v26  ;;  %v3873_v41 = vadd.f32 %v878_v39, %v873_v34  ;;  %v906_v42 = vmul.f32 %v3833_v28, %v3833_v28 }
  0xc9   : > { %v1011_v29 = vrot.slane %v1009_v4, 1  ;;  %v1016_v13 = vrot.slane %v1014_v8, 2  ;;  %v1021_v17 = vrot.slane %v1019_v9, 3  ;;  %v1030_v43 = vmul.f32 %v844_v45, %v3814_v22  ;;  %s3885_s1 = sld [smem:[#allocation8 + $0x3]] }
  0xca   : > { %v1027_v32 = vrot.slane %v1025_v30, 1  ;;  %v1035_v35 = vmul.f32 %v851_v46, %v3818_v38  ;;  %v1040_v19 = vmul.f32 %v858_v49, %v3806_v21  ;;  %v1041_v34 = vmul.f32 %v861_v47, %v3810_v26  ;;  %s3896_s0 = sld [smem:[#allocation8 + $0x7]] }
  0xcb   : > { %v1013_v33 = vadd.f32 %v1011_v29, %v1008_v58  ;;  %v1046_v39 = vmul.f32 %v868_v50, %v3814_v22  ;;  %v897_v45 = vadd.f32 %v895_v48, %v890_v18  ;;  %v1032_v46 = vrot.slane %v1030_v43, 2  ;;  %s3898_s10 = sld [smem:[#allocation8 + $0xb]] }
  0xcc   : > { %v1029_v4 = vadd.f32 %v1027_v32, %v1024_v40  ;;  %v1037_v8 = vrot.slane %v1035_v35, 3  ;;  %v1043_v49 = vrot.slane %v1041_v34, 1  ;;  %v1051_v47 = vmul.f32 %v875_v59, %v3818_v38  ;;  %s3903_s12 = sld [smem:[#allocation8 + $0xf]] }
  0xcd   : > { %v1018_v58 = vadd.f32 %v1016_v13, %v1013_v33  ;;  %v1048_v9 = vrot.slane %v1046_v39, 2  ;;  %v1056_v48 = vmul.f32 %v882_v60, %v3806_v21  ;;  %s5442_s13 = sld [smem:[#allocation55_spill]]  ;;  %v1057_v18 = vmul.f32 %v885_v51, %v3810_v26 }
  0xce   : > { %5437 = sst [smem:[#allocation52_spill]] %s3862_s25  ;;  %v1034_v50 = vadd.f32 %v1032_v46, %v1029_v4  ;;  %v1062_v40 = vmul.f32 %v892_v61, %v3814_v22  ;;  %v1045_v59 = vadd.f32 %v1043_v49, %v1040_v19  ;;  %v1053_v29 = vrot.slane %v1051_v47, 3 }
  0xcf   : > { %5438 = sst [smem:[#allocation53_spill]] %s3885_s1  ;;  %v3916_v30 = vadd.f32 %v1021_v17, %v1018_v58  ;;  %v1067_v13 = vmul.f32 %v899_v62, %v3818_v38  ;;  %v924_v60 = vmul.f32 %v923_v23, %v3677_v37  ;;  %v1059_v43 = vrot.slane %v1057_v18, 1 }
  0xd0   : > { %5439 = sst [smem:[#allocation64_spill]] %s3896_s0  ;;  %v1039_v32 = vadd.f32 %v1037_v8, %v1034_v50  ;;  %v1064_v51 = vrot.slane %v1062_v40, 2  ;;  %v3931_v61 = vmul.f32 %v930_v31, %v3708_v52  ;;  %v941_v17 = vmul.f32 %v940_v55, %v3655_v27 }
  0xd1   : > { %s3914_s4 = sld [smem:[#allocation11]]  ;;  %v1050_v62 = vadd.f32 %v1048_v9, %v1045_v59  ;;  %v1061_v33 = vadd.f32 %v1059_v43, %v1056_v48  ;;  %v1069_v19 = vrot.slane %v1067_v13, 3  ;;  %v1072_v34 = vmul.f32 %v3916_v30, %v3916_v30 }
  0xd2   : > { %5441 = sst [smem:[#allocation54_spill]] %s3903_s12  ;;  %v1073_v39 = vmul.f32 %v1039_v32, %v1039_v32  ;;  %v904_v4 = vadd.f32 %v902_v53, %v897_v45  ;;  %v907_v46 = vadd.f32 %v906_v42, %v3841_v56  ;;  %v908_v8 = vmul.f32 %v3873_v41, %v3873_v41 }
  0xd3   : > { %s3921_s9 = sld [smem:[#allocation11 + $0x4]]  ;;  %v978_v35 = vstv %s5442_s13  ;;  %v1055_v58 = vadd.f32 %v1053_v29, %v1050_v62  ;;  %v921_v49 = vadd.f32 %v919_v11, %v3846_v57  ;;  %v926_v9 = vrot.slane %v924_v60, 2 }
  0xd4   : > { %s3926_s30 = sld [smem:[#allocation11 + $0x8]]  ;;  %v965_v47 = vmul.f32 %v964_v24, %v3655_v27  ;;  %v1066_v50 = vadd.f32 %v1064_v51, %v1061_v33  ;;  %v938_v25 = vmul.f32 %v937_v54, %v3673_v36  ;;  %v943_v53 = vrot.slane %v941_v17, 1 }
  0xd5   : > { %s3937_s15 = sld [smem:[#allocation11 + $0xc]]  ;;  %v3966_v57 = vmul.f32 %v947_v14, %v3677_v37  ;;  %v1074_v45 = vadd.f32 %v1073_v39, %v1072_v34  ;;  %v1075_v48 = vmul.f32 %v1055_v58, %v1055_v58  ;;  %v909_v18 = vadd.f32 %v908_v8, %v907_v46 }
  0xd6   : > { %s5447_s16 = sld [smem:[#allocation56_spill]]  ;;  %v1071_v11 = vadd.f32 %v1069_v19, %v1066_v50  ;;  %v910_v40 = vmul.f32 %v904_v4, %v904_v4  ;;  %v1002_v29 = vstv %s3763_s3  ;;  %v3974_v13 = vadd.f32 %v926_v9, %v921_v49 }
  0xd7   : > { %5443 = sst [smem:[#allocation55_spill]] %s3914_s4  ;;  %v933_v60 = vrot.slane %v3931_v61, 3  ;;  %v962_v43 = vmul.f32 %v961_v20, %v3673_v36  ;;  %v967_v51 = vrot.slane %v965_v47, 1  ;;  %v3982_v17 = vadd.f32 %v943_v53, %v938_v25 }
  0xd8   : > { %s5448_s7 = sld [smem:[#allocation57_spill]]  ;;  %v3987_v62 = vmul.f32 %v954_v12, %v3708_v52  ;;  %v3992_v33 = vmul.f32 %v971_v44, %v3677_v37  ;;  %v950_v34 = vrot.slane %v3966_v57, 2  ;;  %v4001_v39 = vmul.f32 %v978_v35, %v3708_v52 }
  0xd9   : > { %5444 = sst [smem:[#allocation65_spill]] %s3921_s9  ;;  %v1076_v46 = vadd.f32 %v1075_v48, %v1074_v45  ;;  %v1077_v8 = vmul.f32 %v1071_v11, %v1071_v11  ;;  %v911_v49 = vadd.f32 %v910_v40, %v909_v18  ;;  %v969_v50 = vadd.f32 %v967_v51, %v962_v43 }
  0xda   : > { %5445 = sst [smem:[#allocation66_spill]] %s3926_s30  ;;  %v1096_v25 = vmul.f32 %v940_v55, %v3810_v26  ;;  %v1143_v53 = vmul.f32 %v3916_v30, %v3791_v16  ;;  %v1144_v45 = vmul.f32 %v1039_v32, %v3833_v28  ;;  %v1146_v48 = vmul.f32 %v1055_v58, %v3873_v41 }
  0xdb   : > { %5446 = sst [smem:[#allocation67_spill]] %s3937_s15  ;;  %v1078_v55 = vadd.f32 %v1077_v8, %v1076_v46  ;;  %v1148_v30 = vmul.f32 %v1071_v11, %v904_v4  ;;  %v1079_v18 = vmul.f32 %v913_v63, %v3806_v21  ;;  %v1095_v41 = vmul.f32 %v937_v54, %v3806_v21 }
  0xdc   : > { %s3941_s5 = sld [smem:[#allocation11 + $0x1]]  ;;  %v985_v56 = vstv %s5447_s16  ;;  %v1145_v28 = vadd.f32 %v1144_v45, %v1143_v53  ;;  %v1101_v4 = vmul.f32 %v947_v14, %v3814_v22  ;;  %v1111_v63 = vmul.f32 %v961_v20, %v3806_v21 }
  0xdd   : > { %s3948_s2 = sld [smem:[#allocation11 + $0x5]]  ;;  %v986_v9 = vmul.f32 %v985_v56, %v3673_v36  ;;  %v974_v36 = vrot.slane %v3992_v33, 2  ;;  %v1127_v11 = vmul.f32 %v985_v56, %v3806_v21  ;;  %v1150_v51 = vadd.f32 %v1078_v55, %v911_v49 }
  0xde   : > { %s5451_s15 = sld [smem:[#allocation58_spill]]  ;;  %v988_v42 = vstv %s5448_s7  ;;  %v1147_v58 = vadd.f32 %v1146_v48, %v1145_v28  ;;  %v1003_v20 = vmul.f32 %v1002_v29, %v3708_v52  ;;  %v1103_v46 = vrot.slane %v1101_v4, 2 }
  0xdf   : > { %s3954_s30 = sld [smem:[#allocation11 + $0x9]]  ;;  %v989_v19 = vmul.f32 %v988_v42, %v3655_v27  ;;  %v1080_v27 = vmul.f32 %v916_v15, %v3810_v26  ;;  %v1112_v15 = vmul.f32 %v964_v24, %v3810_v26  ;;  %v1128_v16 = vmul.f32 %v988_v42, %v3810_v26 }
  0xe0   : > { %s3972_s16 = sld [smem:[#allocation11 + $0x6]]  ;;  %v1085_v24 = vmul.f32 %v923_v23, %v3814_v22  ;;  %v1098_v26 = vrot.slane %v1096_v25, 1  ;;  %v1117_v23 = vmul.f32 %v971_v44, %v3814_v22  ;;  %v1149_v14 = vadd.f32 %v1148_v30, %v1147_v58 }
  0xe1   : > { %s3980_s7 = sld [smem:[#allocation11 + $0xa]]  ;;  %v1082_v40 = vrot.slane %v1080_v27, 1  ;;  %v1114_v42 = vrot.slane %v1112_v15, 1  ;;  %v1130_v54 = vrot.slane %v1128_v16, 1  ;;  %v1090_v44 = vmul.f32 %v930_v31, %v3818_v38 }
  0xe2   : > { %5449 = sst [smem:[#allocation56_spill]] %s3941_s5  ;;  %v1100_v56 = vadd.f32 %v1098_v26, %v1095_v41  ;;  %v1119_v49 = vrot.slane %v1117_v23, 2  ;;  %v1122_v52 = vmul.f32 %v978_v35, %v3818_v38  ;;  %v957_v25 = vrot.slane %v3987_v62, 3 }
  0xe3   : > { %5450 = sst [smem:[#allocation57_spill]] %s3948_s2  ;;  %v1084_v21 = vadd.f32 %v1082_v40, %v1079_v18  ;;  %v1116_v8 = vadd.f32 %v1114_v42, %v1111_v63  ;;  %v976_v53 = vadd.f32 %v974_v36, %v969_v50  ;;  %v981_v45 = vrot.slane %v4001_v39, 3 }
  0xe4   : > { %s3961_s5 = sld [smem:[#allocation11 + $0xd]]  ;;  %v995_v59 = vstv %s5451_s15  ;;  %v1092_v15 = vrot.slane %v1090_v44, 3  ;;  %v1124_v16 = vrot.slane %v1122_v52, 3  ;;  %v4102_v39 = vadd.f32 %v933_v60, %v3974_v13 }
  0xe5   : > { %5452 = sst [smem:[#allocation58_spill]] %s3954_s30  ;;  %v4007_v47 = vmul.f32 %v995_v59, %v3677_v37  ;;  %v991_v37 = vrot.slane %v989_v19, 1  ;;  %v1133_v43 = vmul.f32 %v995_v59, %v3814_v22  ;;  %v1087_v19 = vrot.slane %v1085_v24, 2 }
  0xe6   : > { %s3968_s2 = sld [smem:[#allocation11 + $0x2]]  ;;  %v1106_v22 = vmul.f32 %v954_v12, %v3818_v38  ;;  %v1151_v59 = vmul.f32 2.0, %v1149_v14  ;;  %v952_v12 = vadd.f32 %v950_v34, %v3982_v17  ;;  %v1121_v57 = vadd.f32 %v1119_v49, %v1116_v8 }
  0xe7   : > { %5455 = sst [smem:[#allocation70_spill]] %s3972_s16  ;;  %v998_v32 = vrot.slane %v4007_v47, 2  ;;  %v993_v33 = vadd.f32 %v991_v37, %v986_v9  ;;  %v1132_v9 = vadd.f32 %v1130_v54, %v1127_v11  ;;  %v1135_v31 = vrot.slane %v1133_v43, 2 }
  0xe8   : > { %5456 = sst [smem:[#allocation71_spill]] %s3980_s7  ;;  %v1138_v47 = vmul.f32 %v1002_v29, %v3818_v38  ;;  %v1152_v27 = vsub.f32 %v1150_v51, %v1151_v59  ;;  %v1005_v37 = vrot.slane %v1003_v20, 3  ;;  %v1089_v38 = vadd.f32 %v1087_v19, %v1084_v21 }
  0xe9   : > { %s3995_s15 = sld [smem:[#allocation11 + $0xe]]  ;;  %v1000_v35 = vadd.f32 %v998_v32, %v993_v33  ;;  %v1105_v29 = vadd.f32 %v1103_v46, %v1100_v56  ;;  %v1108_v55 = vrot.slane %v1106_v22, 3  ;;  %v1137_v17 = vadd.f32 %v1135_v31, %v1132_v9 }
  0xea   : > { %5453 = sst [smem:[#allocation68_spill]] %s3961_s5  ;;  %v1153_v48 = vsub.f32 0.0, %v1152_v27  ;;  %v1140_v62 = vrot.slane %v1138_v47, 3  ;;  %v4104_v50 = vadd.f32 %v957_v25, %v952_v12  ;;  %v4108_v28 = vadd.f32 %v981_v45, %v976_v53 }
  0xeb   : > { %s4003_s7 = sld [smem:[#allocation11 + $0x3]]  ;;  %v4110_v30 = vadd.f32 %v1005_v37, %v1000_v35  ;;  %v4112_v32 = vadd.f32 %v1092_v15, %v1089_v38  ;;  %v4114_v61 = vadd.f32 %v1108_v55, %v1105_v29  ;;  %v4118_v13 = vadd.f32 %v1124_v16, %v1121_v57 }
  0xec   : > { %5454 = sst [smem:[#allocation69_spill]] %s3968_s2  ;;  %v1154_v34 = vmul.f32 0.5, %v1153_v48  ;;  %v4120_v60 = vadd.f32 %v1140_v62, %v1137_v17  ;;  %v1175_v18 = vstv %s3767_s17  ;;  %v1178_v40 = vstv %s3777_s8 }
  0xed   : > { %s4027_s29 = sld [smem:[#allocation11 + $0xf]]  ;;  %v1205_v63 = vstv %s3848_s28  ;;  %v1208_v42 = vstv %s3862_s25  ;;  %v1212_v11 = vstv %s3871_s21  ;;  %v1220_v54 = vstv %s3885_s1 }
  0xee   : > { %s4030_s24 = sld [smem:[#allocation12]]  ;;  %v1155_v36 = vmul.f32 1.442695, %v1154_v34  ;;  %v1216_v14 = vstv %s3877_s22  ;;  %v1223_v51 = vstv %s3896_s0  ;;  %v1227_v33 = vstv %s3898_s10 }
  0xef   : > { %5457 = sst [smem:[#allocation72_spill]] %s3995_s15  ;;  %v1231_v19 = vstv %s3903_s12  ;;  %v1235_v44 = vstv %s3914_s4  ;;  %v1238_v21 = vstv %s3921_s9  ;;  %v1257_v31 = vstv %s3954_s30 }
  0xf0   : > { %s4012_s15 = sld [smem:[#allocation11 + $0x7]]  ;;  %2844 = vpow2.f32 %v1155_v36  ;;  %v1265_v47 = vstv %s3968_s2  ;;  %v1261_v12 = vstv %s3961_s5  ;;  %v1268_v25 = vstv %s3972_s16 }
  0xf1   : > { %5458 = sst [smem:[#allocation73_spill]] %s4003_s7 }
  0xf2   : > { %s4020_s7 = sld [smem:[#allocation11 + $0xb]] }
  0xf3   : > { %5461 = sst [smem:[#allocation76_spill]] %s4027_s29 }
  0xf4   : > { %5462 = sst [smem:[#allocation77_spill]] %s4030_s24 }
  0xf5   : > { %s4039_s27 = sld [smem:[#allocation12 + $0x1]] }
  0xf6   : > { %5459 = sst [smem:[#allocation74_spill]] %s4012_s15  ;;  %v2845_v22 = vpop.eup %2844  ;;  %v1283_v37 = vstv %s4012_s15 }
  0xf7   : > { %s4047_s24 = sld [smem:[#allocation12 + $0x2]]  ;;  %v1157_v52 = vadd.f32 1.0, %v2845_v22  ;;  %v1162_v45 = vmul.f32 %v2845_v22, %v4112_v32  ;;  %v1165_v15 = vmul.f32 %v2845_v22, %v4114_v61  ;;  %v1168_v48 = vmul.f32 %v2845_v22, %v4118_v13 }
  0xf8   : > { %5460 = sst [smem:[#allocation75_spill]] %s4020_s7  ;;  %v1689_v38 = vmul.f32 %v2845_v22, %v4102_v39  ;;  %v1692_v29 = vmul.f32 %v2845_v22, %v4104_v50  ;;  %v1171_v55 = vmul.f32 %v2845_v22, %v4120_v60  ;;  %v1695_v16 = vmul.f32 %v2845_v22, %v4108_v28 }
  0xf9   : > { %s4056_s20 = sld [smem:[#allocation12 + $0x3]]  ;;  %2846 = vrcp.f32 %v1157_v52  ;;  %v1698_v57 = vmul.f32 %v2845_v22, %v4110_v30 }
  0xfa   : > { %s4059_s19 = sld [smem:[#allocation8]]  ;;  %v1690_v36 = vadd.f32 %v1689_v38, %v4112_v32  ;;  %v1693_v10 = vadd.f32 %v1692_v29, %v4114_v61  ;;  %v1696_v22 = vadd.f32 %v1695_v16, %v4118_v13  ;;  %v1163_v32 = vadd.f32 %v1162_v45, %v4102_v39 }
  0xfb   : > { %5463 = sst [smem:[#allocation78_spill]] %s4039_s27  ;;  %v1699_v5 = vadd.f32 %v1698_v57, %v4120_v60  ;;  %v1166_v61 = vadd.f32 %v1165_v15, %v4104_v50  ;;  %v1169_v38 = vadd.f32 %v1168_v48, %v4108_v28  ;;  %v1172_v60 = vadd.f32 %v1171_v55, %v4110_v30 }
  0xfc   : > { %s4067_s6 = sld [smem:[#allocation8 + $0x4]] }
  0xfd   : > { %5464 = sst [smem:[#allocation79_spill]] %s4047_s24 }
  0xfe   : > { %s4072_s23 = sld [smem:[#allocation8 + $0x8]] }
  0xff   : > { %5465 = sst [smem:[#allocation80_spill]] %s4056_s20  ;;  %v2847_v13 = vpop.eup %2846 }
 0x100   : > { %5466 = sst [smem:[#allocation81_spill]] %s4059_s19  ;;  %v1702_v43 = vstv %s4059_s19  ;;  %v1159_v50 = vmul.f32 %v2847_v13, %v1157_v52 }
 0x101   : > { %s4077_s26 = sld [smem:[#allocation8 + $0xc]] }
 0x102   : > { %5467 = sst [smem:[#allocation82_spill]] %s4067_s6  ;;  %v1705_v20 = vstv %s4067_s6  ;;  %v1160_v1 = vsub.f32 2.0, %v1159_v50 }
 0x103   : > { %s4082_s14 = sld [smem:[#allocation8 + $0x1]] }
 0x104   : > { %5468 = sst [smem:[#allocation83_spill]] %s4072_s23  ;;  %v1709_v56 = vstv %s4072_s23  ;;  %v1161_v45 = vmul.f32 %v2847_v13, %v1160_v1 }
 0x105   : > { %s4089_s18 = sld [smem:[#allocation8 + $0x5]] }
 0x106   : > { %s4091_s3 = sld [smem:[#allocation8 + $0x9]]  ;;  %v1164_v39 = vmul.f32 %v1163_v32, %v1161_v45  ;;  %v1167_v52 = vmul.f32 %v1166_v61, %v1161_v45  ;;  %v1170_v57 = vmul.f32 %v1169_v38, %v1161_v45  ;;  %v1173_v1 = vmul.f32 %v1172_v60, %v1161_v45 }
 0x107   : > { %5469 = sst [smem:[#allocation84_spill]] %s4077_s26  ;;  %v1713_v17 = vstv %s4077_s26  ;;  %v4234_v13 = vmul.f32 %v1690_v36, %v1161_v45  ;;  %v4236_v15 = vmul.f32 %v1693_v10, %v1161_v45  ;;  %v4238_v55 = vmul.f32 %v1696_v22, %v1161_v45 }
 0x108   : > { %s4093_s11 = sld [smem:[#allocation8 + $0xd]]  ;;  %v4240_v48 = vmul.f32 %v1699_v5, %v1161_v45  ;;  %v1176_v29 = vmul.f32 %v1175_v18, %v1164_v39  ;;  %v1179_v32 = vmul.f32 %v1178_v40, %v1167_v52  ;;  %v1206_v18 = vmul.f32 %v1205_v63, %v1164_v39 }
 0x109   : > { %5470 = sst [smem:[#allocation85_spill]] %s4082_s14  ;;  %v1717_v8 = vstv %s4082_s14  ;;  %v1209_v40 = vmul.f32 %v1208_v42, %v1167_v52  ;;  %v1232_v63 = vmul.f32 %v1231_v19, %v1173_v1 }
 0x10a   : > { %s4095_s13 = sld [smem:[#allocation8 + $0x2]]  ;;  %v1180_v60 = vadd.f32 %v1179_v32, %v1176_v29  ;;  %v1228_v29 = vmul.f32 %v1227_v33, %v1170_v57  ;;  %v1710_v33 = vmul.f32 %v1709_v56, %v4238_v55  ;;  %v1714_v19 = vmul.f32 %v1713_v17, %v4240_v48 }
 0x10b   : > { %5471 = sst [smem:[#allocation86_spill]] %s4089_s18  ;;  %v1720_v49 = vstv %s4089_s18 }
 0x10c   : > { %5472 = sst [smem:[#allocation87_spill]] %s4091_s3 }
 0x10d   : > { %s4097_s20 = sld [smem:[#allocation8 + $0x6]] }
 0x10e   : > { %5473 = sst [smem:[#allocation88_spill]] %s4093_s11 }
 0x10f   : > { %s5476_s3 = sld [smem:[#allocation48_spill]] }
 0x110   : > { %5474 = sst [smem:[#allocation89_spill]] %s4095_s13 }
 0x111   : > { %s5477_s24 = sld [smem:[#allocation62_spill]] }
 0x112   : > { %s5478_s11 = sld [smem:[#allocation63_spill]] }
 0x113   : > { %5475 = sst [smem:[#allocation90_spill]] %s4097_s20 }
 0x114   : > { %s4106_s27 = sld [smem:[#allocation8 + $0xa]] }
 0x115   : > { %s5480_s29 = sld [smem:[#allocation61_spill]]  ;;  %v1182_v24 = vstv %s5476_s3 }
 0x116   : > { %s5481_s13 = sld [smem:[#allocation49_spill]]  ;;  %v1183_v61 = vmul.f32 %v1182_v24, %v1170_v57  ;;  %v1213_v24 = vmul.f32 %v1212_v11, %v1170_v57 }
 0x117   : > { %s4116_s20 = sld [smem:[#allocation8 + $0xe]]  ;;  %v1190_v41 = vstv %s5477_s24 }
 0x118   : > { %s5483_s7 = sld [smem:[#allocation50_spill]]  ;;  %v1193_v26 = vstv %s5478_s11  ;;  %v1191_v10 = vmul.f32 %v1190_v41, %v1164_v39  ;;  %v1217_v41 = vmul.f32 %v1216_v14, %v1173_v1  ;;  %v1184_v45 = vadd.f32 %v1183_v61, %v1180_v60 }
 0x119   : > { %s4135_s17 = sld [smem:[#allocation8 + $0xb]]  ;;  %v1194_v36 = vmul.f32 %v1193_v26, %v1167_v52  ;;  %v1221_v26 = vmul.f32 %v1220_v54, %v1164_v39  ;;  %v1703_v14 = vmul.f32 %v1702_v43, %v4234_v13  ;;  %v1706_v54 = vmul.f32 %v1705_v20, %v4236_v15 }
 0x11a   : > { %5479 = sst [smem:[#allocation91_spill]] %s4106_s27  ;;  %v1718_v20 = vmul.f32 %v1717_v8, %v4234_v13 }
 0x11b   : > { %s4123_s27 = sld [smem:[#allocation8 + $0x3]]  ;;  %v1186_v4 = vstv %s5480_s29  ;;  %v1707_v43 = vadd.f32 %v1706_v54, %v1703_v14 }
 0x11c   : > { %v1197_v58 = vstv %s5481_s13  ;;  %s5486_s8 = sld [smem:[#allocation56_spill]]  ;;  %v1187_v38 = vmul.f32 %v1186_v4, %v1173_v1  ;;  %v1195_v4 = vadd.f32 %v1194_v36, %v1191_v10 }
 0x11d   : > { %5482 = sst [smem:[#allocation61_spill]] %s4116_s20  ;;  %v1198_v22 = vmul.f32 %v1197_v58, %v1170_v57  ;;  %v1224_v58 = vmul.f32 %v1223_v51, %v1167_v52 }
 0x11e   : > { %s4129_s20 = sld [smem:[#allocation8 + $0x7]]  ;;  %v1201_v23 = vstv %s5483_s7  ;;  %v1188_v51 = vadd.f32 %v1187_v38, %v1184_v45 }
 0x11f   : > { %s5487_s3 = sld [smem:[#allocation57_spill]]  ;;  %v1754_v16 = vstv %s4135_s17  ;;  %v1202_v5 = vmul.f32 %v1201_v23, %v1173_v1  ;;  %v1210_v23 = vadd.f32 %v1209_v40, %v1206_v18  ;;  %v1199_v42 = vadd.f32 %v1198_v22, %v1195_v4 }
 0x120   : > { %s4141_s11 = sld [smem:[#allocation8 + $0xf]]  ;;  %v1225_v11 = vadd.f32 %v1224_v58, %v1221_v26  ;;  %v1236_v32 = vmul.f32 %v1235_v44, %v1188_v51  ;;  %v1266_v56 = vmul.f32 %v1265_v47, %v1188_v51 }
 0x121   : > { %5484 = sst [smem:[#allocation49_spill]] %s4123_s27  ;;  %v1214_v39 = vadd.f32 %v1213_v24, %v1210_v23  ;;  %v1203_v57 = vadd.f32 %v1202_v5, %v1199_v42 }
 0x122   : > { %s5488_s24 = sld [smem:[#allocation66_spill]]  ;;  %v1250_v59 = vstv %s5486_s8  ;;  %v1229_v52 = vadd.f32 %v1228_v29, %v1225_v11 }
 0x123   : > { %s4147_s25 = sld [smem:[#allocation11]]  ;;  %v1218_v1 = vadd.f32 %v1217_v41, %v1214_v39  ;;  %v1251_v61 = vmul.f32 %v1250_v59, %v1188_v51  ;;  %v1239_v38 = vmul.f32 %v1238_v21, %v1203_v57  ;;  %v1269_v36 = vmul.f32 %v1268_v25, %v1203_v57 }
 0x124   : > { %5485 = sst [smem:[#allocation50_spill]] %s4129_s20  ;;  %v1233_v17 = vadd.f32 %v1232_v63, %v1229_v52 }
 0x125   : > { %s5489_s28 = sld [smem:[#allocation67_spill]]  ;;  %v1253_v46 = vstv %s5487_s3  ;;  %v1258_v22 = vmul.f32 %v1257_v31, %v1218_v1  ;;  %v1240_v47 = vadd.f32 %v1239_v38, %v1236_v32 }
 0x126   : > { %s5490_s19 = sld [smem:[#allocation71_spill]]  ;;  %v1254_v10 = vmul.f32 %v1253_v46, %v1203_v57  ;;  %v1262_v21 = vmul.f32 %v1261_v12, %v1233_v17  ;;  %v1270_v46 = vadd.f32 %v1269_v36, %v1266_v56  ;;  %v5559_v56 = vrot.slane %v3513_v0, 1 }
 0x127   : > { %s4153_s1 = sld [smem:[#allocation11 + $0x4]] }
 0x128   : > { %s5491_s0 = sld [smem:[#allocation73_spill]]  ;;  %v1242_v9 = vstv %s5488_s24  ;;  %v1255_v60 = vadd.f32 %v1254_v10, %v1251_v61 }
 0x129   : > { %s4159_s6 = sld [smem:[#allocation11 + $0x8]]  ;;  %v1762_v6 = vstv %s4147_s25  ;;  %v1243_v8 = vmul.f32 %v1242_v9, %v1218_v1  ;;  %v1284_v9 = vmul.f32 %v1283_v37, %v1203_v57 }
 0x12a   : > { %s4164_s4 = sld [smem:[#allocation11 + $0xc]]  ;;  %v1259_v18 = vadd.f32 %v1258_v22, %v1255_v60 }
 0x12b   : > { %v1246_v27 = vstv %s5489_s28  ;;  %s4170_s9 = sld [smem:[#allocation11 + $0x1]] }
 0x12c   : > { %v1272_v53 = vstv %s5490_s19  ;;  %s5494_s3 = sld [smem:[#allocation72_spill]]  ;;  %v1247_v5 = vmul.f32 %v1246_v27, %v1233_v17  ;;  %v1711_v27 = vadd.f32 %v1710_v33, %v1707_v43  ;;  %v1263_v4 = vadd.f32 %v1262_v21, %v1259_v18 }
 0x12d   : > { %s5495_s8 = sld [smem:[#allocation75_spill]]  ;;  %v1273_v44 = vmul.f32 %v1272_v53, %v1218_v1  ;;  %v1244_v53 = vadd.f32 %v1243_v8, %v1240_v47  ;;  %v5561_v8 = vrot.slane %v3513_v0, 2 }
 0x12e   : > { %v1280_v35 = vstv %s5491_s0  ;;  %s4175_s18 = sld [smem:[#allocation11 + $0x5]]  ;;  %v4327_v41 = vadd.f32 %v1714_v19, %v1711_v27 }
 0x12f   : > { %5492 = sst [smem:[#allocation92_spill]] %s4159_s6  ;;  %v1281_v59 = vmul.f32 %v1280_v35, %v1188_v51  ;;  %v1274_v40 = vadd.f32 %v1273_v44, %v1270_v46 }
 0x130   : > { %5493 = sst [smem:[#allocation93_spill]] %s4164_s4 }
 0x131   : > { %s5497_s30 = sld [smem:[#allocation76_spill]]  ;;  %v1777_v28 = vstv %s4170_s9  ;;  %v1285_v12 = vadd.f32 %v1284_v9, %v1281_v59 }
 0x132   : > { %s4181_s5 = sld [smem:[#allocation11 + $0x9]]  ;;  %v1276_v62 = vstv %s5494_s3 }
 0x133   : > { %s5499_s15 = sld [smem:[#allocation78_spill]]  ;;  %v1287_v34 = vstv %s5495_s8  ;;  %v1277_v25 = vmul.f32 %v1276_v62, %v1233_v17  ;;  %v1721_v62 = vmul.f32 %v1720_v49, %v4236_v15 }
 0x134   : > { %5496 = sst [smem:[#allocation94_spill]] %s4175_s18  ;;  %v1288_v31 = vmul.f32 %v1287_v34, %v1218_v1  ;;  %v1248_v34 = vadd.f32 %v1247_v5, %v1244_v53 }
 0x135   : > { %s4187_s0 = sld [smem:[#allocation11 + $0xd]]  ;;  %v1278_v58 = vadd.f32 %v1277_v25, %v1274_v40  ;;  %v1722_v23 = vadd.f32 %v1721_v62, %v1718_v20  ;;  %v5565_v25 = vstv %s4141_s11 }
 0x136   : > { %s5502_s24 = sld [smem:[#allocation87_spill]]  ;;  %v1289_v45 = vadd.f32 %v1288_v31, %v1285_v12  ;;  %v1759_v9 = vmul.f32 %v5565_v25, %v4240_v48  ;;  %v5567_v31 = vrot.slane %v3513_v0, 3 }
 0x137   : > { %s5503_s16 = sld [smem:[#allocation88_spill]]  ;;  %v1291_v7 = vstv %s5497_s30 }
 0x138   : > { %s4193_s2 = sld [smem:[#allocation11 + $0x2]]  ;;  %v1292_v35 = vmul.f32 %v1291_v7, %v1233_v17 }
 0x139   : > { %s5505_s26 = sld [smem:[#allocation89_spill]]  ;;  %v5553_v11 = vstv %s5499_s15 }
 0x13a   : > { %s5506_s23 = sld [smem:[#allocation90_spill]]  ;;  %v1300_v14 = vadd.f32 %v5553_v11, %v1263_v4  ;;  %v1293_v19 = vadd.f32 %v1292_v35, %v1289_v45  ;;  %v5568_v35 = vstv %s4153_s1 }
 0x13b   : > { %5500 = sst [smem:[#allocation78_spill]] %s4187_s0 }
 0x13c   : > { %s4199_s3 = sld [smem:[#allocation11 + $0x6]]  ;;  %v5546_v37 = vstv %s5502_s24  ;;  %v4355_v17 = vadd.f32 %v1300_v14, %v5559_v56 }
 0x13d   : > { %s5508_s12 = sld [smem:[#allocation61_spill]]  ;;  %v1725_v24 = vmul.f32 %v5546_v37, %v4238_v55  ;;  %v5548_v7 = vstv %s5503_s16 }
 0x13e   : > { %s4205_s28 = sld [smem:[#allocation11 + $0xa]]  ;;  %v1792_v30 = vstv %s4193_s2  ;;  %v1729_v26 = vmul.f32 %v5548_v7, %v4240_v48 }
 0x13f   : > { %s4211_s30 = sld [smem:[#allocation11 + $0xe]]  ;;  %v5550_v29 = vstv %s5505_s26  ;;  %v1726_v43 = vadd.f32 %v1725_v24, %v1722_v23  ;;  %v1793_v37 = vmul.f32 %v1792_v30, %v4327_v41 }
 0x140   : > { %s5543_s27 = sld [smem:[#allocation77_spill]]  ;;  %v1733_v49 = vmul.f32 %v5550_v29, %v4234_v13  ;;  %v5555_v54 = vstv %s5506_s23 }
 0x141   : > { %s5544_s20 = sld [smem:[#allocation91_spill]]  ;;  %v1736_v51 = vmul.f32 %v5555_v54, %v4236_v15  ;;  %v1730_v47 = vadd.f32 %v1729_v26, %v1726_v43 }
 0x142   : > { %v1795_v2 = vstv %s4199_s3  ;;  %s5545_s21 = sld [smem:[#allocation79_spill]] }
 0x143   : > { %s5547_s22 = sld [smem:[#allocation47_spill]]  ;;  %v5558_v20 = vstv %s5508_s12  ;;  %v1737_v38 = vadd.f32 %v1736_v51, %v1733_v49  ;;  %v1766_v27 = vmul.f32 %v5568_v35, %v1730_v47 }
 0x144   : > { %5509 = sst [smem:[#allocation87_spill]] %s4205_s28  ;;  %v1799_v50 = vstv %s4205_s28  ;;  %v1744_v1 = vmul.f32 %v5558_v20, %v4240_v48 }
 0x145   : > { %5510 = sst [smem:[#allocation88_spill]] %s4211_s30 }
 0x146   : > { %s5549_s0 = sld [smem:[#allocation49_spill]]  ;;  %v5552_v63 = vstv %s5543_s27 }
 0x147   : > { %s5551_s30 = sld [smem:[#allocation80_spill]]  ;;  %v1296_v42 = vadd.f32 %v5552_v63, %v1248_v34  ;;  %v5556_v39 = vstv %s5544_s20 }
 0x148   : > { %s5554_s24 = sld [smem:[#allocation50_spill]]  ;;  %v1740_v33 = vmul.f32 %v5556_v39, %v4238_v55  ;;  %v5557_v57 = vstv %s5545_s21 }
 0x149   : > { %v1304_v52 = vadd.f32 %v5557_v57, %v1278_v58  ;;  %v2884_v32 = vld [vmem:[%s5547_s22] sm:$0xf]  ;;  %s5562_s16 = sld [smem:[#allocation94_spill]] }
 0x14a   : > { %v4351_v61 = vadd.f32 %v2884_v32, %v1296_v42  ;;  %v1741_v46 = vadd.f32 %v1740_v33, %v1737_v38  ;;  %s5566_s12 = sld [smem:[#allocation92_spill]] }
 0x14b   : > { %v4362_v22 = vadd.f32 %v1304_v52, %v5561_v8  ;;  %s4392_s17 = sld [smem:[#allocation11 + $0x3]] }
 0x14c   : > { %v5560_v10 = vstv %s5549_s0  ;;  %v1310_v21 = vadd.f32 %v4355_v17, %v4351_v61  ;;  %v1745_v12 = vadd.f32 %v1744_v1, %v1741_v46  ;;  %s5571_s23 = sld [smem:[#allocation93_spill]] }
 0x14d   : > { %v1748_v36 = vmul.f32 %v5560_v10, %v4234_v13  ;;  %v5563_v44 = vstv %s5551_s30  ;;  %v1755_v13 = vmul.f32 %v1754_v16, %v4238_v55  ;;  %v1778_v16 = vmul.f32 %v1777_v28, %v4327_v41  ;;  %s5572_s25 = sld [smem:[#allocation78_spill]] }
 0x14e   : > { %v1308_v59 = vadd.f32 %v5563_v44, %v1293_v19  ;;  %v5564_v5 = vstv %s5554_s24  ;;  %v1311_v40 = vadd.f32 %v1310_v21, %v4362_v22  ;;  %s5574_s1 = sld [smem:[#allocation88_spill]]  ;;  %v5575_v28 = vstv %s4181_s5 }
 0x14f   : > { %v1751_v60 = vmul.f32 %v5564_v5, %v4236_v15  ;;  %v1763_v15 = vmul.f32 %v1762_v6, %v4327_v41  ;;  %v5570_v55 = vstv %s5562_s16  ;;  %v1796_v6 = vmul.f32 %v1795_v2, %v1730_v47  ;;  %s4404_s9 = sld [smem:[#allocation11 + $0x7]] }
 0x150   : > { %v4379_v53 = vadd.f32 %v1308_v59, %v5567_v31  ;;  %v1781_v48 = vmul.f32 %v5570_v55, %v1730_v47  ;;  %v5573_v34 = vstv %s5566_s12  ;;  %v1785_v26 = vmul.f32 %v5575_v28, %v1745_v12  ;;  %s4408_s2 = sld [smem:[#allocation11 + $0xb]] }
 0x151   : > { %v1752_v18 = vadd.f32 %v1751_v60, %v1748_v36  ;;  %v1767_v62 = vadd.f32 %v1766_v27, %v1763_v15  ;;  %v1770_v4 = vmul.f32 %v5573_v34, %v1745_v12  ;;  %v1797_v45 = vadd.f32 %v1796_v6, %v1793_v37  ;;  %s4410_s26 = sld [smem:[#allocation11 + $0xf]] }
 0x152   : > { %v1312_v24 = vadd.f32 %v1311_v40, %v4379_v53  ;;  %v1782_v7 = vadd.f32 %v1781_v48, %v1778_v16  ;;  %v1800_v23 = vmul.f32 %v1799_v50, %v1745_v12  ;;  %v5576_v2 = vstv %s5571_s23  ;;  %s4418_s5 = sld [smem:[#allocation12]]  ;;  %v2885_v40 = vld [vmem:[%s5547_s22 + $0x4] sm:$0xf] }
 0x153   : > { %v1756_v0 = vadd.f32 %v1755_v13, %v1752_v18  ;;  %v1771_v29 = vadd.f32 %v1770_v4, %v1767_v62  ;;  %v5577_v42 = vstv %s5572_s25  ;;  %v1807_v32 = vstv %s4392_s17  ;;  %s2607_s3 = sld [smem:[#allocation12 + $0x1]] }
 0x154   : > { %v1313_v30 = vmul.f32 0.25, %v1312_v24  ;;  %v1786_v49 = vadd.f32 %v1785_v26, %v1782_v7  ;;  %v1801_v14 = vadd.f32 %v1800_v23, %v1797_v45  ;;  %v5578_v54 = vstv %s5574_s1  ;;  %s4441_s11 = sld [smem:[#allocation12 + $0x2]] }
 0x155   : > { %v1760_v58 = vadd.f32 %v1759_v9, %v1756_v0  ;;  %v1808_v36 = vmul.f32 %v1807_v32, %v4327_v41  ;;  %v1810_v8 = vstv %s4404_s9  ;;  %s4445_s19 = sld [smem:[#allocation12 + $0x3]]  ;;  %v5579_v48 = vrot.slane %v3518_v3, 1 }
 0x156   : > { %v4421_v39 = vsub.f32 %v4351_v61, %v1313_v30  ;;  %v4424_v50 = vsub.f32 %v4355_v17, %v1313_v30  ;;  %v4427_v33 = vsub.f32 %v4362_v22, %v1313_v30  ;;  %v4430_v19 = vsub.f32 %v4379_v53, %v1313_v30  ;;  %s4447_s10 = sld [smem:[#allocation17]] }
 0x157   : > { %v1774_v63 = vmul.f32 %v5576_v2, %v1760_v58  ;;  %v1789_v11 = vmul.f32 %v5577_v42, %v1760_v58  ;;  %v1804_v51 = vmul.f32 %v5578_v54, %v1760_v58  ;;  %v1811_v59 = vmul.f32 %v1810_v8, %v1730_v47  ;;  %s4450_s4 = sld [smem:[#allocation18]] }
 0x158   : > { %v1318_v43 = vmul.f32 %v4421_v39, %v4421_v39  ;;  %v1319_v20 = vmul.f32 %v4424_v50, %v4424_v50  ;;  %v1321_v1 = vmul.f32 %v4427_v33, %v4427_v33  ;;  %v1323_v10 = vmul.f32 %v4430_v19, %v4430_v19  ;;  %s4454_s6 = sld [smem:[#allocation17 + $0x1]] }
 0x159   : > { %v1775_v57 = vadd.f32 %v1774_v63, %v1771_v29  ;;  %v1790_v52 = vadd.f32 %v1789_v11, %v1786_v49  ;;  %v1805_v56 = vadd.f32 %v1804_v51, %v1801_v14  ;;  %v1814_v5 = vstv %s4408_s2  ;;  %s4456_s28 = sld [smem:[#allocation18 + $0x1]] }
 0x15a   : > { %v1320_v38 = vadd.f32 %v1319_v20, %v1318_v43  ;;  %v1815_v60 = vmul.f32 %v1814_v5, %v1745_v12  ;;  %v1818_v21 = vstv %s4410_s26  ;;  %v1822_v46 = vstv %s4418_s5  ;;  %s4458_s18 = sld [smem:[#allocation17 + $0x2]] }
 0x15b   : > { %v1812_v41 = vadd.f32 %v1811_v59, %v1808_v36  ;;  %v1819_v25 = vmul.f32 %v1818_v21, %v1760_v58  ;;  %v1823_v9 = vadd.f32 %v1822_v46, %v1775_v57  ;;  %s4460_s13 = sld [smem:[#allocation18 + $0x2]]  ;;  %v1826_v18 = vstv %s2607_s3 }
 0x15c   : > { %v1322_v44 = vadd.f32 %v1321_v1, %v1320_v38  ;;  %s4462_s14 = sld [smem:[#allocation17 + $0x3]]  ;;  %v1827_v35 = vadd.f32 %v1826_v18, %v1790_v52  ;;  %v1830_v16 = vstv %s4441_s11  ;;  %v1834_v55 = vstv %s4445_s19 }
 0x15d   : > { %v1816_v47 = vadd.f32 %v1815_v60, %v1812_v41  ;;  %s4464_s8 = sld [smem:[#allocation18 + $0x3]]  ;;  %v4467_v12 = vadd.f32 %v2885_v40, %v1823_v9  ;;  %v1831_v62 = vadd.f32 %v1830_v16, %v1805_v56  ;;  %v5580_v6 = vrot.slane %v3518_v3, 2 }
 0x15e   : > { %v1324_v13 = vadd.f32 %v1323_v10, %v1322_v44  ;;  %s4471_s29 = sld [smem:[#allocation20]]  ;;  %v4477_v0 = vadd.f32 %v1827_v35, %v5579_v48  ;;  %v5581_v34 = vrot.slane %v3518_v3, 3  ;;  %v1339_v63 = vstv %s4447_s10 }
 0x15f   : > { %v1820_v27 = vadd.f32 %v1819_v25, %v1816_v47  ;;  %s4473_s7 = sld [smem:[#allocation20 + $0x4]]  ;;  %v4485_v24 = vadd.f32 %v1831_v62, %v5580_v6  ;;  %v1342_v42 = vstv %s4450_s4  ;;  %v1346_v11 = vstv %s4454_s6 }
 0x160   : > { %v1325_v31 = vmul.f32 0.25, %v1324_v13  ;;  %s4479_s27 = sld [smem:[#allocation20 + $0x8]]  ;;  %v1837_v7 = vadd.f32 %v4477_v0, %v4467_v12  ;;  %v1349_v43 = vstv %s4456_s28  ;;  %v1353_v20 = vstv %s4458_s18 }
 0x161   : > { %v1835_v37 = vadd.f32 %v1834_v55, %v1820_v27  ;;  %s4481_s20 = sld [smem:[#allocation20 + $0xc]]  ;;  %v1356_v1 = vstv %s4460_s13 }
 0x162   : > { %v1326_v15 = vadd.f32 1e-05, %v1325_v31  ;;  %s4493_s21 = sld [smem:[#allocation20 + $0x1]]  ;;  %v1838_v28 = vadd.f32 %v1837_v7, %v4485_v24  ;;  %v1360_v32 = vstv %s4462_s14 }
 0x163   : > { %v4489_v4 = vadd.f32 %v1835_v37, %v5581_v34  ;;  %s4495_s22 = sld [smem:[#allocation20 + $0x5]]  ;;  %v1363_v38 = vstv %s4464_s8 }
 0x164   : > { %2848 = vrsqrt.f32 %v1326_v15  ;;  %s4498_s0 = sld [smem:[#allocation20 + $0x9]]  ;;  %vm1333_vm6 = vweird.f32 %v1326_v15  ;;  %v1366_v8 = vstv %s4471_s29 }
 0x165   : > { %s4500_s30 = sld [smem:[#allocation20 + $0xd]]  ;;  %v1839_v3 = vadd.f32 %v1838_v28, %v4489_v4  ;;  %v1369_v44 = vstv %s4473_s7 }
 0x166   : > { %s4503_s24 = sld [smem:[#allocation20 + $0x2]]  ;;  %v1373_v21 = vstv %s4479_s27 }
 0x167   : > { %s4505_s16 = sld [smem:[#allocation20 + $0x6]]  ;;  %v1840_v23 = vmul.f32 0.25, %v1839_v3  ;;  %v1377_v47 = vstv %s4481_s20 }
 0x168   : > { %s4507_s12 = sld [smem:[#allocation20 + $0xa]]  ;;  %v1381_v59 = vstv %s4493_s21 }
 0x169   : > { %s4509_s15 = sld [smem:[#allocation20 + $0xe]]  ;;  %v4512_v29 = vsub.f32 %v4467_v12, %v1840_v23  ;;  %v4515_v49 = vsub.f32 %v4477_v0, %v1840_v23  ;;  %v4518_v2 = vsub.f32 %v4485_v24, %v1840_v23  ;;  %v4526_v14 = vsub.f32 %v4489_v4, %v1840_v23 }
 0x16a   : > { %v2849_v26 = vpop.eup %2848  ;;  %s4523_s17 = sld [smem:[#allocation20 + $0x3]]  ;;  %v1384_v5 = vstv %s4495_s22  ;;  %v1388_v46 = vstv %s4498_s0 }
 0x16b   : > { %v1328_v58 = vmul.f32 %v2849_v26, %v1326_v15  ;;  %vm1334_vm7 = vweird.f32 %v2849_v26  ;;  %s4528_s23 = sld [smem:[#allocation20 + $0x7]]  ;;  %v1845_v51 = vmul.f32 %v4512_v29, %v4512_v29  ;;  %v1846_v57 = vmul.f32 %v4515_v49, %v4515_v49 }
 0x16c   : > { %v1848_v52 = vmul.f32 %v4518_v2, %v4518_v2  ;;  %vm1335_vm8 = vmor %vm1333_vm6, %vm1334_vm7  ;;  %s4542_s25 = sld [smem:[#allocation20 + $0xb]]  ;;  %v1850_v36 = vmul.f32 %v4526_v14, %v4526_v14  ;;  %v1396_v18 = vstv %s4503_s24  ;;  %v1392_v48 = vstv %s4500_s30 }
 0x16d   : > { %v1329_v45 = vmul.f32 %v2849_v26, %v1328_v58  ;;  %s4545_s1 = sld [smem:[#allocation20 + $0xf]]  ;;  %v1847_v10 = vadd.f32 %v1846_v57, %v1845_v51  ;;  %v1399_v15 = vstv %s4505_s16 }
 0x16e   : > { %s4565_s9 = sld [smem:[#allocation21]] }
 0x16f   : > { %v1330_v30 = vmul.f32 0.5, %v1329_v45  ;;  %v1849_v13 = vadd.f32 %v1848_v52, %v1847_v10  ;;  %s4567_s2 = sld [smem:[#allocation21 + $0x1]]  ;;  %v1407_v34 = vstv %s4509_s15 }
 0x170   : > { %v1411_v62 = vstv %s4523_s17  ;;  %s4573_s26 = sld [smem:[#allocation21 + $0x2]] }
 0x171   : > { %v1331_v54 = vsub.f32 1.5, %v1330_v30  ;;  %v1851_v35 = vadd.f32 %v1850_v36, %v1849_v13  ;;  %v1414_v7 = vstv %s4528_s23  ;;  %s4575_s5 = sld [smem:[#allocation21 + $0x3]] }
 0x172   : > { %v1418_v28 = vstv %s4542_s25  ;;  %s4616_s3 = sld [smem:[#allocation23 + $0x1]] }
 0x173   : > { %v1332_v56 = vmul.f32 %v2849_v26, %v1331_v54  ;;  %s4622_s11 = sld [smem:[#allocation23 + $0x5]] }
 0x174   : > { %s4626_s19 = sld [smem:[#allocation23]] }
 0x175   : > { %v1336_v60 = vsel %vm1335_vm8, %v2849_v26, %v1332_v56  ;;  %v1422_v26 = vstv %s4545_s1  ;;  %s4632_s10 = sld [smem:[#allocation23 + $0x4]] }
 0x176   : > { %v1337_v41 = vmul.f32 %v1336_v60, %v4421_v39  ;;  %v1344_v25 = vmul.f32 %v1336_v60, %v4424_v50  ;;  %v1351_v9 = vmul.f32 %v1336_v60, %v4427_v33  ;;  %v1358_v31 = vmul.f32 %v1336_v60, %v4430_v19  ;;  %s4641_s4 = sld [smem:[#allocation23 + $0x8]] }
 0x177   : > { %v1403_v39 = vstv %s4507_s12  ;;  %v1852_v50 = vmul.f32 0.25, %v1851_v35  ;;  %s4649_s6 = sld [smem:[#allocation17]] }
 0x178   : > { %v1340_v27 = vmul.f32 %v1339_v63, %v1337_v41  ;;  %v1347_v40 = vmul.f32 %v1346_v11, %v1344_v25  ;;  %v1354_v16 = vmul.f32 %v1353_v20, %v1351_v9  ;;  %v1361_v55 = vmul.f32 %v1360_v32, %v1358_v31  ;;  %s4655_s28 = sld [smem:[#allocation23 + $0x9]] }
 0x179   : > { %v4577_v23 = vadd.f32 1e-05, %v1852_v50  ;;  %v1512_v25 = vstv %s4573_s26  ;;  %s4660_s18 = sld [smem:[#allocation23 + $0xc]] }
 0x17a   : > { %v1343_v33 = vadd.f32 %v1342_v42, %v1340_v27  ;;  %v1350_v19 = vadd.f32 %v1349_v43, %v1347_v40  ;;  %v1357_v37 = vadd.f32 %v1356_v1, %v1354_v16  ;;  %v1364_v6 = vadd.f32 %v1363_v38, %v1361_v55  ;;  %s4664_s13 = sld [smem:[#allocation23 + $0xd]] }
 0x17b   : > { %2850 = vrsqrt.f32 %v4577_v23  ;;  %s4674_s14 = sld [smem:[#allocation18]]  ;;  %vm1860_vm7 = vweird.f32 %v4577_v23 }
 0x17c   : > { %v1367_v58 = vmul.f32 %v1366_v8, %v1343_v33  ;;  %v1370_v3 = vmul.f32 %v1369_v44, %v1350_v19  ;;  %v1374_v45 = vmul.f32 %v1373_v21, %v1357_v37  ;;  %v1378_v30 = vmul.f32 %v1377_v47, %v1364_v6  ;;  %s4678_s8 = sld [smem:[#allocation23 + $0x2]] }
 0x17d   : > { %v1382_v63 = vmul.f32 %v1381_v59, %v1343_v33  ;;  %v1385_v42 = vmul.f32 %v1384_v5, %v1350_v19  ;;  %v1389_v11 = vmul.f32 %v1388_v46, %v1357_v37  ;;  %v1397_v51 = vmul.f32 %v1396_v18, %v1343_v33  ;;  %s4696_s29 = sld [smem:[#allocation23 + $0x6]] }
 0x17e   : > { %v1371_v54 = vadd.f32 %v1370_v3, %v1367_v58  ;;  %v1400_v57 = vmul.f32 %v1399_v15, %v1350_v19  ;;  %v1404_v52 = vmul.f32 %v1403_v39, %v1357_v37  ;;  %v1393_v20 = vmul.f32 %v1392_v48, %v1364_v6  ;;  %s4713_s7 = sld [smem:[#allocation23 + $0xa]] }
 0x17f   : > { %v1386_v43 = vadd.f32 %v1385_v42, %v1382_v63  ;;  %v1412_v1 = vmul.f32 %v1411_v62, %v1343_v33  ;;  %v1415_v32 = vmul.f32 %v1414_v7, %v1350_v19  ;;  %v1408_v10 = vmul.f32 %v1407_v34, %v1364_v6  ;;  %s4719_s27 = sld [smem:[#allocation23 + $0xe]] }
 0x180   : > { %v1375_v56 = vadd.f32 %v1374_v45, %v1371_v54  ;;  %v1401_v38 = vadd.f32 %v1400_v57, %v1397_v51  ;;  %v1419_v36 = vmul.f32 %v1418_v28, %v1357_v37  ;;  %v1423_v59 = vmul.f32 %v1422_v26, %v1364_v6  ;;  %s4725_s20 = sld [smem:[#allocation23 + $0x3]] }
 0x181   : > { %v1390_v8 = vadd.f32 %v1389_v11, %v1386_v43  ;;  %v1416_v44 = vadd.f32 %v1415_v32, %v1412_v1  ;;  %v1426_v5 = vstv %s4565_s9  ;;  %v1469_v46 = vstv %s4567_s2  ;;  %v4603_v50 = vpop.eup %2850  ;;  %s4738_s21 = sld [smem:[#allocation23 + $0x7]] }
 0x182   : > { %v1379_v60 = vadd.f32 %v1378_v30, %v1375_v56  ;;  %v1405_v21 = vadd.f32 %v1404_v52, %v1401_v38  ;;  %v1555_v47 = vstv %s4575_s5  ;;  %v1855_v30 = vmul.f32 %v4603_v50, %v4577_v23  ;;  %s4758_s22 = sld [smem:[#allocation23 + $0xb]] }
 0x183   : > { %v1394_v13 = vadd.f32 %v1393_v20, %v1390_v8  ;;  %v1420_v41 = vadd.f32 %v1419_v36, %v1416_v44  ;;  %vm1861_vm8 = vweird.f32 %v4603_v50  ;;  %s4772_s0 = sld [smem:[#allocation23 + $0xf]] }
 0x184   : > { %v1409_v9 = vadd.f32 %v1408_v10, %v1405_v21  ;;  %v1427_v31 = vadd.f32 %v1426_v5, %v1379_v60  ;;  %v1856_v32 = vmul.f32 %v4603_v50, %v1855_v30  ;;  %s4780_s30 = sld [smem:[#allocation24]]  ;;  %v1628_v30 = vstv %s4678_s8 }
 0x185   : > { %v1424_v18 = vadd.f32 %v1423_v59, %v1420_v41  ;;  %v4584_v15 = vadd.f32 %v1469_v46, %v1394_v13  ;;  %s4787_s24 = sld [smem:[#allocation24 + $0x1]] }
 0x186   : > { %v4586_v35 = vmul.f32 0.70710677, %v1427_v31  ;;  %v4588_v27 = vadd.f32 %v1512_v25, %v1409_v9  ;;  %v4618_v51 = vmul.f32 0.5, %v1427_v31  ;;  %s4800_s16 = sld [smem:[#allocation24 + $0x2]] }
 0x187   : > { %v4591_v40 = vmul.f32 0.70710677, %v4584_v15  ;;  %v4593_v16 = vadd.f32 %v1555_v47, %v1424_v18  ;;  %s4809_s12 = sld [smem:[#allocation24 + $0x3]] }
 0x188   : > { %v1430_v55 = vand.u32 2147483647, %v4586_v35  ;;  %v4597_v48 = vmul.f32 0.70710677, %v4588_v27  ;;  %s4814_s15 = sld [smem:[#allocation17 + $0x1]] }
 0x189   : > { %v1473_v39 = vand.u32 2147483647, %v4591_v40  ;;  %v4601_v62 = vmul.f32 0.70710677, %v4593_v16  ;;  %s4818_s17 = sld [smem:[#allocation18 + $0x1]] }
 0x18a   : > { %v1431_v33 = vmul.f32 0.3275911, %v1430_v55  ;;  %v1457_v19 = vsub.f32 0.0, %v1430_v55  ;;  %v1516_v37 = vand.u32 2147483647, %v4597_v48  ;;  %s4827_s23 = sld [smem:[#allocation17 + $0x2]] }
 0x18b   : > { %v1474_v6 = vmul.f32 0.3275911, %v1473_v39  ;;  %v1500_v34 = vsub.f32 0.0, %v1473_v39  ;;  %v1559_v7 = vand.u32 2147483647, %v4601_v62  ;;  %s4838_s25 = sld [smem:[#allocation18 + $0x2]] }
 0x18c   : > { %v4607_v28 = vadd.f32 1.0, %v1431_v33  ;;  %v1458_v26 = vmul.f32 %v1457_v19, %v1430_v55  ;;  %v1517_v3 = vmul.f32 0.3275911, %v1516_v37  ;;  %v1543_v45 = vsub.f32 0.0, %v1516_v37  ;;  %s4843_s1 = sld [smem:[#allocation17 + $0x3]] }
 0x18d   : > { %v4609_v58 = vadd.f32 1.0, %v1474_v6  ;;  %v1501_v63 = vmul.f32 %v1500_v34, %v1473_v39  ;;  %v1560_v42 = vmul.f32 0.3275911, %v1559_v7  ;;  %v1586_v1 = vsub.f32 0.0, %v1559_v7  ;;  %s4850_s9 = sld [smem:[#allocation18 + $0x3]] }
 0x18e   : > { %2852 = vrcp.f32 %v4607_v28  ;;  %v1442_v11 = vand.u32 2147483647, %v4607_v28  ;;  %v1459_v54 = vmul.f32 1.442695, %v1458_v26  ;;  %v1444_v57 = vand.u32 2147483648, %v4607_v28  ;;  %s4856_s2 = sld [smem:[#allocation20]] }
 0x18f   : > { %2854 = vrcp.f32 %v4609_v58  ;;  %v1485_v52 = vand.u32 2147483647, %v4609_v58  ;;  %v4624_v43 = vadd.f32 1.0, %v1517_v3  ;;  %v1544_v20 = vmul.f32 %v1543_v45, %v1516_v37  ;;  %s4860_s26 = sld [smem:[#allocation20 + $0x4]] }
 0x190   : > { %2856 = vpow2.f32 %v1459_v54  ;;  %v1487_v56 = vand.u32 2147483648, %v4609_v58  ;;  %v1502_v38 = vmul.f32 1.442695, %v1501_v63  ;;  %v4630_v10 = vadd.f32 1.0, %v1560_v42  ;;  %s4869_s5 = sld [smem:[#allocation20 + $0x8]] }
 0x191   : > { %vm1438_vm9 = vweird.f32 %v4607_v28  ;;  %vm4635_vm10 = vcmp.eq.f32.partialorder %v1442_v11, 8.507059e+37  ;;  %vm1481_vm11 = vweird.f32 %v4609_v58  ;;  %2858 = vrcp.f32 %v4624_v43  ;;  %s4994_s8 = sld [smem:[#allocation21 + $0x1]] }
 0x192   : > { %v1445_v44 = vor.u32 1.1754944e-38, %v1444_v57  ;;  %vm4643_vm12 = vcmp.eq.f32.partialorder %v1485_v52, 8.507059e+37  ;;  %v1528_v5 = vand.u32 2147483647, %v4624_v43  ;;  %2860 = vrcp.f32 %v4630_v10 }
 0x193   : > { %v1530_v46 = vand.u32 2147483648, %v4624_v43  ;;  %v1545_v13 = vmul.f32 1.442695, %v1544_v20  ;;  %v1587_v41 = vmul.f32 %v1586_v1, %v1559_v7  ;;  %v1488_v9 = vor.u32 1.1754944e-38, %v1487_v56 }
 0x194   : > { %v2853_v8 = vpop.eup %2852  ;;  %2862 = vpow2.f32 %v1502_v38  ;;  %v1571_v31 = vand.u32 2147483647, %v4630_v10  ;;  %vm1524_vm14 = vweird.f32 %v4624_v43  ;;  %v1573_v18 = vand.u32 2147483648, %v4630_v10 }
 0x195   : > { %v4651_v60 = vpop.eup %2854  ;;  %v1434_v21 = vmul.f32 %v2853_v8, %v4607_v28  ;;  %vm1439_vm13 = vweird.f32 %v2853_v8  ;;  %vm4669_vm0 = vcmp.eq.f32.partialorder %v1528_v5, 8.507059e+37  ;;  %vm1567_vm1 = vweird.f32 %v4630_v10 }
 0x196   : > { %v1477_v25 = vmul.f32 %v4651_v60, %v4609_v58  ;;  %v4666_v55 = vpop.eup %2856  ;;  %vm1482_vm15 = vweird.f32 %v4651_v60  ;;  %v1531_v6 = vor.u32 1.1754944e-38, %v1530_v46  ;;  %2864 = vpow2.f32 %v1545_v13  ;;  %vm4685_vm2 = vmor %vm1438_vm9, %vm1439_vm13 }
 0x197   : > { %v1435_v47 = vsub.f32 1.0, %v1434_v21  ;;  %v4676_v19 = vpop.eup %2858  ;;  %v1588_v34 = vmul.f32 1.442695, %v1587_v41  ;;  %vm4692_vm3 = vcmp.eq.f32.partialorder %v1571_v31, 8.507059e+37  ;;  %v4698_v63 = vmul.f32 0.5, %v1856_v32  ;;  %vm4707_vm4 = vmor %vm1481_vm11, %vm1482_vm15 }
 0x198   : > { %v1478_v39 = vsub.f32 1.0, %v1477_v25  ;;  %v4680_v7 = vpop.eup %2860  ;;  %v1520_v45 = vmul.f32 %v4676_v19, %v4624_v43  ;;  %v4701_v28 = vmul.f32 0.5, %v4584_v15  ;;  %v1574_v57 = vor.u32 1.1754944e-38, %v1573_v18  ;;  %vm1862_vm11 = vmor %vm1860_vm7, %vm1861_vm8 }
 0x199   : > { %v1436_v37 = vmul.f32 %v2853_v8, %v1435_v47  ;;  %v1563_v54 = vmul.f32 %v4680_v7, %v4630_v10  ;;  %vm1525_vm5 = vweird.f32 %v4676_v19  ;;  %v1866_v58 = vstv %s4649_s6  ;;  %s4878_s6 = sld [smem:[#allocation20 + $0xc]] }
 0x19a   : > { %v1479_v3 = vmul.f32 %v4651_v60, %v1478_v39  ;;  %v4715_v52 = vpop.eup %2862  ;;  %v1521_v15 = vsub.f32 1.0, %v1520_v45  ;;  %vm1568_vm6 = vweird.f32 %v4680_v7  ;;  %2866 = vpow2.f32 %v1588_v34  ;;  %vm4753_vm9 = vmor %vm1524_vm14, %vm1525_vm5 }
 0x19b   : > { %v1437_v42 = vadd.f32 %v2853_v8, %v1436_v37  ;;  %v1564_v32 = vsub.f32 1.0, %v1563_v54  ;;  %v4735_v5 = vmul.f32 0.5, %v4588_v27  ;;  %v1858_v46 = vsub.f32 1.5, %v4698_v63 }
 0x19c   : > { %v1480_v20 = vadd.f32 %v4651_v60, %v1479_v3  ;;  %v4742_v36 = vpop.eup %2864  ;;  %v1613_v41 = vstv %s4616_s3  ;;  %v1869_v25 = vstv %s4674_s14  ;;  %v4776_v31 = vmul.f32 0.5, %v4593_v16  ;;  %s4908_s14 = sld [smem:[#allocation20 + $0x5]] }
 0x19d   : > { %v1441_v1 = vsel %vm4685_vm2, %v2853_v8, %v1437_v42  ;;  %v1522_v8 = vmul.f32 %v4676_v19, %v1521_v15  ;;  %v1565_v21 = vmul.f32 %v4680_v7, %v1564_v32  ;;  %v1598_v18 = vstv %s4626_s19  ;;  %s4941_s3 = sld [smem:[#allocation20 + $0x6]] }
 0x19e   : > { %v4729_v56 = vsel %vm4635_vm10, %v1445_v44, %v1441_v1  ;;  %v1484_v38 = vsel %vm4707_vm4, %v4651_v60, %v1480_v20  ;;  %vm4767_vm10 = vmor %vm1567_vm1, %vm1568_vm6  ;;  %v1601_v37 = vstv %s4632_s10  ;;  %v1605_v34 = vstv %s4641_s4  ;;  %s4950_s19 = sld [smem:[#allocation20 + $0xe]] }
 0x19f   : > { %v1448_v44 = vmul.f32 1.0614054, %v4729_v56  ;;  %v4747_v60 = vsel %vm4643_vm12, %v1488_v9, %v1484_v38  ;;  %v1523_v13 = vadd.f32 %v4676_v19, %v1522_v8  ;;  %v1566_v47 = vadd.f32 %v4680_v7, %v1565_v21  ;;  %s4968_s10 = sld [smem:[#allocation20 + $0x3]] }
 0x1a0   : > { %v1491_v59 = vmul.f32 1.0614054, %v4747_v60  ;;  %v4789_v26 = vpop.eup %2866  ;;  %v1620_v33 = vstv %s4655_s28  ;;  %v1609_v54 = vstv %s4660_s18  ;;  %v1624_v20 = vstv %s4664_s13  ;;  %s4970_s4 = sld [smem:[#allocation20 + $0x7]] }
 0x1a1   : > { %v1449_v9 = vadd.f32 -1.4531521, %v1448_v44  ;;  %v1527_v39 = vsel %vm4753_vm9, %v4676_v19, %v1523_v13  ;;  %v1570_v45 = vsel %vm4767_vm10, %v4680_v7, %v1566_v47  ;;  %v1616_v19 = vstv %s4622_s11  ;;  %s4946_s11 = sld [smem:[#allocation20 + $0xa]] }
 0x1a2   : > { %v1492_v10 = vadd.f32 -1.4531521, %v1491_v59  ;;  %v4794_v3 = vsel %vm4669_vm0, %v1531_v6, %v1527_v39  ;;  %v4806_v11 = vsel %vm4692_vm3, %v1574_v57, %v1570_v45  ;;  %v1631_v57 = vstv %s4696_s29  ;;  %s4976_s28 = sld [smem:[#allocation20 + $0xb]] }
 0x1a3   : > { %v1450_v16 = vmul.f32 %v1449_v9, %v4729_v56  ;;  %v1534_v42 = vmul.f32 1.0614054, %v4794_v3  ;;  %v1577_v7 = vmul.f32 1.0614054, %v4806_v11  ;;  %v1635_v8 = vstv %s4713_s7  ;;  %s4978_s18 = sld [smem:[#allocation20 + $0xf]] }
 0x1a4   : > { %v1493_v63 = vmul.f32 %v1492_v10, %v4747_v60  ;;  %v1639_v44 = vstv %s4719_s27  ;;  %v1643_v59 = vstv %s4725_s20  ;;  %v1646_v13 = vstv %s4738_s21  ;;  %s4984_s13 = sld [smem:[#allocation21]] }
 0x1a5   : > { %v1451_v6 = vadd.f32 1.4214138, %v1450_v16  ;;  %v1535_v1 = vadd.f32 -1.4531521, %v1534_v42  ;;  %v1578_v38 = vadd.f32 -1.4531521, %v1577_v7  ;;  %v1650_v47 = vstv %s4758_s22 }
 0x1a6   : > { %v1494_v15 = vadd.f32 1.4214138, %v1493_v63  ;;  %v1654_v10 = vstv %s4772_s0  ;;  %v1658_v45 = vstv %s4780_s30  ;;  %v1859_v63 = vmul.f32 %v4603_v50, %v1858_v46  ;;  %s4999_s29 = sld [smem:[#allocation21 + $0x2]] }
 0x1a7   : > { %v1452_v32 = vmul.f32 %v1451_v6, %v4729_v56  ;;  %v1536_v21 = vmul.f32 %v1535_v1, %v4794_v3  ;;  %v1579_v9 = vmul.f32 %v1578_v38, %v4806_v11  ;;  %v1662_v7 = vstv %s4787_s24  ;;  %s5008_s7 = sld [smem:[#allocation21 + $0x3]] }
 0x1a8   : > { %v1495_v27 = vmul.f32 %v1494_v15, %v4747_v60  ;;  %vm1463_vm12 = vcmp.lt.f32.partialorder %v4586_v35, 0.0  ;;  %v1863_v46 = vsel %vm1862_vm11, %v4603_v50, %v1859_v63  ;;  %vm1506_vm13 = vcmp.lt.f32.partialorder %v4591_v40, 0.0  ;;  %s5600_s27 = sld [smem:[#allocation46_spill]] }
 0x1a9   : > { %v1453_v43 = vadd.f32 -0.28449672, %v1452_v32  ;;  %v1537_v16 = vadd.f32 1.4214138, %v1536_v21  ;;  %v1580_v6 = vadd.f32 1.4214138, %v1579_v9  ;;  %v1864_v21 = vmul.f32 %v1863_v46, %v4512_v29 }
 0x1aa   : > { %v1496_v39 = vadd.f32 -0.28449672, %v1495_v27  ;;  %v1876_v32 = vstv %s4818_s17  ;;  %vm1549_vm14 = vcmp.lt.f32.partialorder %v4597_v48, 0.0  ;;  %vm1592_vm15 = vcmp.lt.f32.partialorder %v4601_v62, 0.0  ;;  %s4913_s17 = sld [smem:[#allocation20 + $0x9]] }
 0x1ab   : > { %v1454_v42 = vmul.f32 %v1453_v43, %v4729_v56  ;;  %v1538_v1 = vmul.f32 %v1537_v16, %v4794_v3  ;;  %v1581_v27 = vmul.f32 %v1580_v6, %v4806_v11  ;;  %v1873_v43 = vstv %s4814_s15  ;;  %s4885_s15 = sld [smem:[#allocation20 + $0x1]] }
 0x1ac   : > { %v1497_v23 = vmul.f32 %v1496_v39, %v4747_v60  ;;  %v1871_v16 = vmul.f32 %v1863_v46, %v4515_v49  ;;  %v1878_v6 = vmul.f32 %v1863_v46, %v4518_v2  ;;  %vm1682_vm0 = vcmask 1040384   ;;  %s5126_s22 = sld [smem:[#allocation23 + $0x1]] }
 0x1ad   : > { %v1455_v38 = vadd.f32 0.2548296, %v1454_v42  ;;  %v1539_v39 = vadd.f32 -0.28449672, %v1538_v1  ;;  %v1582_v63 = vadd.f32 -0.28449672, %v1581_v27  ;;  %v1867_v42 = vmul.f32 %v1866_v58, %v1864_v21 }
 0x1ae   : > { %v1498_v9 = vadd.f32 0.2548296, %v1497_v23  ;;  %v1874_v23 = vmul.f32 %v1873_v43, %v1871_v16  ;;  %v1880_v1 = vstv %s4827_s23  ;;  %s4917_s23 = sld [smem:[#allocation20 + $0xd]]  ;;  %vm1684_vm1 = vcmask 1041408   ;;  %s5601_s20 = sshll.u32 %s5600_s27, 3 }
 0x1af   : > { %v1456_v50 = vmul.f32 %v1455_v38, %v4729_v56  ;;  %v1540_v15 = vmul.f32 %v1539_v39, %v4794_v3  ;;  %v1583_v56 = vmul.f32 %v1582_v63, %v4806_v11  ;;  %v4876_v58 = vadd.f32 %v1869_v25, %v1867_v42  ;;  %s5025_s21 = scalar_lea.vmem [#allocation26], %s5601_s20  ;;  %s5131_s0 = sld [smem:[#allocation23 + $0x5]] }
 0x1b0   : > { %v1499_v29 = vmul.f32 %v1498_v9, %v4747_v60  ;;  %v1881_v2 = vmul.f32 %v1880_v1, %v1878_v6  ;;  %v4882_v27 = vadd.f32 %v1876_v32, %v1874_v23  ;;  %v1885_v9 = vmul.f32 %v1863_v46, %v4526_v14  ;;  %s5136_s30 = sld [smem:[#allocation23]] }
 0x1b1   : > { %v1461_v49 = vmul.f32 %v4666_v55, %v1456_v50  ;;  %v1541_v38 = vadd.f32 0.2548296, %v1540_v15  ;;  %v1883_v55 = vstv %s4838_s25  ;;  %v1584_v43 = vadd.f32 0.2548296, %v1583_v56  ;;  %s4927_s25 = sld [smem:[#allocation20 + $0x2]] }
 0x1b2   : > { %v1504_v60 = vmul.f32 %v4715_v52, %v1499_v29  ;;  %v4887_v25 = vadd.f32 %v1883_v55, %v1881_v2  ;;  %v1887_v52 = vstv %s4843_s1  ;;  %v1890_v15 = vstv %s4850_s9  ;;  %s5139_s24 = sld [smem:[#allocation23 + $0x4]] }
 0x1b3   : > { %v1462_v21 = vsub.f32 1.0, %v1461_v49  ;;  %v1542_v16 = vmul.f32 %v1541_v38, %v4794_v3  ;;  %v1585_v32 = vmul.f32 %v1584_v43, %v4806_v11  ;;  %v1888_v63 = vmul.f32 %v1887_v52, %v1885_v9  ;;  %s5149_s1 = sld [smem:[#allocation23 + $0x2]] }
 0x1b4   : > { %v1505_v39 = vsub.f32 1.0, %v1504_v60  ;;  %v1893_v42 = vstv %s4856_s2  ;;  %v1896_v1 = vstv %s4860_s26  ;;  %v1904_v43 = vstv %s4878_s6  ;;  %s5152_s9 = sld [smem:[#allocation23 + $0x6]] }
 0x1b5   : > { %v1464_v50 = vsub.f32 0.0, %v1462_v21  ;;  %v1547_v29 = vmul.f32 %v4742_v36, %v1542_v16  ;;  %v1894_v23 = vmul.f32 %v1893_v42, %v4876_v58  ;;  %v1590_v3 = vmul.f32 %v4789_v26, %v1585_v32  ;;  %s5157_s2 = sld [smem:[#allocation23 + $0xa]] }
 0x1b6   : > { %v1507_v6 = vsub.f32 0.0, %v1505_v39  ;;  %v4901_v46 = vadd.f32 %v1890_v15, %v1888_v63  ;;  %v1897_v49 = vmul.f32 %v1896_v1, %v4882_v27  ;;  %v1900_v36 = vstv %s4869_s5  ;;  %s5159_s26 = sld [smem:[#allocation23 + $0x3]] }
 0x1b7   : > { %v1465_v14 = vsel %vm1463_vm12, %v1464_v50, %v1462_v21  ;;  %v1548_v2 = vsub.f32 1.0, %v1547_v29  ;;  %v1591_v38 = vsub.f32 1.0, %v1590_v3  ;;  %v1901_v55 = vmul.f32 %v1900_v36, %v4887_v25  ;;  %s5165_s5 = sld [smem:[#allocation23 + $0x7]] }
 0x1b8   : > { %v1466_v11 = vadd.f32 1.0, %v1465_v14  ;;  %v1508_v56 = vsel %vm1506_vm13, %v1507_v6, %v1505_v39  ;;  %v1898_v35 = vadd.f32 %v1897_v49, %v1894_v23  ;;  %v1908_v40 = vstv %s4885_s15  ;;  %s5175_s6 = sld [smem:[#allocation23 + $0xc]] }
 0x1b9   : > { %v1509_v60 = vadd.f32 1.0, %v1508_v56  ;;  %v1550_v21 = vsub.f32 0.0, %v1548_v2  ;;  %v1593_v39 = vsub.f32 0.0, %v1591_v38  ;;  %v1905_v52 = vmul.f32 %v1904_v43, %v4901_v46  ;;  %s5183_s15 = sld [smem:[#allocation23 + $0xb]] }
 0x1ba   : > { %v1467_v26 = vmul.f32 %v1466_v11, %v4618_v51  ;;  %v1902_v16 = vadd.f32 %v1901_v55, %v1898_v35  ;;  %vm1686_vm2 = vcmask 1042432  }
 0x1bb   : > { %v1510_v9 = vmul.f32 %v1509_v60, %v4701_v28  ;;  %v1551_v51 = vsel %vm1549_vm14, %v1550_v21, %v1548_v2  ;;  %v1594_v63 = vsel %vm1592_vm15, %v1593_v39, %v1591_v38 }
 0x1bc   : > { %v1599_v15 = vmul.f32 %v1598_v18, %v1467_v26  ;;  %v1614_v50 = vmul.f32 %v1613_v41, %v1467_v26  ;;  %v1629_v32 = vmul.f32 %v1628_v30, %v1467_v26  ;;  %v1552_v28 = vadd.f32 1.0, %v1551_v51 }
 0x1bd   : > { %v1602_v42 = vmul.f32 %v1601_v37, %v1510_v9  ;;  %v1617_v6 = vmul.f32 %v1616_v19, %v1510_v9  ;;  %v1595_v29 = vadd.f32 1.0, %v1594_v63  ;;  %v1632_v48 = vmul.f32 %v1631_v57, %v1510_v9 }
 0x1be   : > { %v1644_v41 = vmul.f32 %v1643_v59, %v1467_v26  ;;  %v1647_v18 = vmul.f32 %v1646_v13, %v1510_v9  ;;  %v1553_v62 = vmul.f32 %v1552_v28, %v4735_v5  ;;  %v4944_v30 = vadd.f32 %v1905_v52, %v1902_v16 }
 0x1bf   : > { %v1603_v37 = vadd.f32 %v1602_v42, %v1599_v15  ;;  %v1618_v19 = vadd.f32 %v1617_v6, %v1614_v50  ;;  %v1596_v57 = vmul.f32 %v1595_v29, %v4776_v31  ;;  %v1633_v59 = vadd.f32 %v1632_v48, %v1629_v32 }
 0x1c0   : > { %v1648_v23 = vadd.f32 %v1647_v18, %v1644_v41  ;;  %v1909_v13 = vmul.f32 %v1908_v40, %v4876_v58  ;;  %v1606_v1 = vmul.f32 %v1605_v34, %v1553_v62  ;;  %v1621_v5 = vmul.f32 %v1620_v33, %v1553_v62 }
 0x1c1   : > { %v1636_v14 = vmul.f32 %v1635_v8, %v1553_v62  ;;  %v1651_v3 = vmul.f32 %v1650_v47, %v1553_v62  ;;  %v1610_v49 = vmul.f32 %v1609_v54, %v1596_v57  ;;  %v1625_v31 = vmul.f32 %v1624_v20, %v1596_v57 }
 0x1c2   : > { %v1640_v11 = vmul.f32 %v1639_v44, %v1596_v57  ;;  %v1655_v56 = vmul.f32 %v1654_v10, %v1596_v57  ;;  %v1607_v34 = vadd.f32 %v1606_v1, %v1603_v37  ;;  %v1622_v33 = vadd.f32 %v1621_v5, %v1618_v19 }
 0x1c3   : > { %v1637_v2 = vadd.f32 %v1636_v14, %v1633_v59  ;;  %v1652_v8 = vadd.f32 %v1651_v3, %v1648_v23  ;;  %v1911_v54 = vstv %s4908_s14  ;;  %v1915_v47 = vstv %s4913_s17  ;;  %s5188_s14 = sld [smem:[#allocation23 + $0xd]] }
 0x1c4   : > { %v1919_v20 = vstv %s4917_s23  ;;  %v1923_v44 = vstv %s4927_s25  ;;  %v1611_v10 = vadd.f32 %v1610_v49, %v1607_v34  ;;  %v1626_v36 = vadd.f32 %v1625_v31, %v1622_v33  ;;  %s5193_s17 = sld [smem:[#allocation23 + $0xe]] }
 0x1c5   : > { %v1641_v60 = vadd.f32 %v1640_v11, %v1637_v2  ;;  %v1656_v38 = vadd.f32 %v1655_v56, %v1652_v8  ;;  %v1912_v35 = vmul.f32 %v1911_v54, %v4882_v27  ;;  %v1916_v55 = vmul.f32 %v1915_v47, %v4887_v25  ;;  %s5196_s23 = sld [smem:[#allocation23 + $0xf]] }
 0x1c6   : > { %v1920_v26 = vmul.f32 %v1919_v20, %v4901_v46  ;;  %v1924_v21 = vmul.f32 %v1923_v44, %v4876_v58  ;;  %v1659_v43 = vadd.f32 %v1658_v45, %v1611_v10  ;;  %v1663_v40 = vadd.f32 %v1662_v7, %v1626_v36  ;;  %s5201_s25 = sld [smem:[#allocation24]] }
 0x1c7   : > { %v5598_v9 = vstv %s4800_s16  ;;  %v5599_v16 = vstv %s4809_s12  ;;  %v1913_v51 = vadd.f32 %v1912_v35, %v1909_v13  ;;  %v1926_v15 = vstv %s4941_s3  ;;  %s5142_s16 = sld [smem:[#allocation23 + $0x8]] }
 0x1c8   : > { %v1667_v39 = vadd.f32 %v5598_v9, %v1641_v60  ;;  %v1671_v52 = vadd.f32 %v5599_v16, %v1656_v38  ;;  %v1930_v50 = vstv %s4946_s11  ;;  %v1934_v32 = vstv %s4950_s19  ;;  %s5147_s12 = sld [smem:[#allocation23 + $0x9]] }
 0x1c9   : > { %v1660_v28 = vadd.f32 %v1659_v43, %v4351_v61  ;;  %v1664_v45 = vadd.f32 %v1663_v40, %v4355_v17  ;;  %v1917_v42 = vadd.f32 %v1916_v55, %v1913_v51  ;;  %v1927_v6 = vmul.f32 %v1926_v15, %v4882_v27  ;;  %s5205_s3 = sld [smem:[#allocation24 + $0x1]] }
 0x1ca   : > { %v1668_v7 = vadd.f32 %v1667_v39, %v4362_v22  ;;  %v1672_v63 = vadd.f32 %v1671_v52, %v4379_v53  ;;  %v1931_v29 = vmul.f32 %v1930_v50, %v4887_v25  ;;  %v1935_v48 = vmul.f32 %v1934_v32, %v4901_v46  ;;  %s5207_s11 = sld [smem:[#allocation24 + $0x2]] }
 0x1cb   : > { %v1674_v41 = vrot.slane %v1664_v45, 7  ;;  %v1938_v17 = vstv %s4968_s10  ;;  %v1921_v22 = vadd.f32 %v1920_v26, %v1917_v42  ;;  %v1928_v53 = vadd.f32 %v1927_v6, %v1924_v21  ;;  %s5209_s19 = sld [smem:[#allocation24 + $0x3]] }
 0x1cc   : > { %v1677_v61 = vrot.slane %v1668_v7, 6  ;;  %v1680_v18 = vrot.slane %v1672_v63, 5  ;;  %v1939_v62 = vmul.f32 %v1938_v17, %v4876_v58  ;;  %v1941_v37 = vstv %s4970_s4  ;;  %s5614_s10 = sld [smem:[#allocation41_spill]] }
 0x1cd   : > { %v1683_v19 = vsel %vm1682_vm0, %v1660_v28, %v1674_v41  ;;  %v1942_v57 = vmul.f32 %v1941_v37, %v4882_v27  ;;  %v1945_v59 = vstv %s4976_s28  ;;  %v1949_v23 = vstv %s4978_s18 }
 0x1ce   : > { %v1685_v13 = vsel %vm1684_vm1, %v1683_v19, %v1677_v61  ;;  %v1932_v1 = vadd.f32 %v1931_v29, %v1928_v53  ;;  %v1946_v5 = vmul.f32 %v1945_v59, %v4887_v25  ;;  %v1950_v14 = vmul.f32 %v1949_v23, %v4901_v46 }
 0x1cf   : > { %v1687_v3 = vsel %vm1686_vm2, %v1685_v13, %v1680_v18  ;;  %v1943_v49 = vadd.f32 %v1942_v57, %v1939_v62  ;;  %v1953_v58 = vstv %s4984_s13  ;;  %v1996_v31 = vstv %s4994_s8  ;;  %s5615_s13 = sld [smem:[#allocation109_spill]] }
 0x1d0   : > { %1688 = vst [vmem:[%s5025_s21] sm:$0xf] %v1687_v3  ;;  %v1936_v27 = vadd.f32 %v1935_v48, %v1932_v1  ;;  %v5029_v11 = vadd.f32 %v1953_v58, %v4944_v30  ;;  %v5031_v56 = vadd.f32 %v1996_v31, %v1921_v22  ;;  %v2039_v25 = vstv %s4999_s29  ;;  %s2226_s29 = sshll.u32 %s5025_s21, 4  ;;  %s2227_s29 = int_to_ptr.vmem [resolvable:$true] %s2226_s29 }
 0x1d1   : > { %v1947_v34 = vadd.f32 %v1946_v5, %v1943_v49  ;;  %v2082_v8 = vstv %s5008_s7 }
 0x1d2   : > { %v5035_v46 = vmul.f32 0.70710677, %v5029_v11  ;;  %v5038_v33 = vmul.f32 0.70710677, %v5031_v56  ;;  %v5040_v2 = vadd.f32 %v2039_v25, %v1936_v27  ;;  %s2654_s4 = sshll.u32 %s5614_s10, 2 }
 0x1d3   : > { %v1951_v54 = vadd.f32 %v1950_v14, %v1947_v34 }
 0x1d4   : > { %v1957_v47 = vand.u32 2147483647, %v5035_v46  ;;  %v5045_v20 = vand.u32 2147483647, %v5038_v33  ;;  %v5048_v30 = vmul.f32 0.70710677, %v5040_v2 }
 0x1d5   : > { %v5050_v44 = vadd.f32 %v2082_v8, %v1951_v54  ;;  %s2225_s8 = scalar_lea.hbm %s5615_s13, %s2654_s4 }
 0x1d6   : > { %v1958_v10 = vmul.f32 0.3275911, %v1957_v47  ;;  %v2001_v36 = vmul.f32 0.3275911, %v5045_v20  ;;  %v5054_v60 = vand.u32 2147483647, %v5048_v30 }
 0x1d7   : > { %v5057_v38 = vmul.f32 0.70710677, %v5050_v44  ;;  %v1984_v51 = vsub.f32 0.0, %v1957_v47  ;;  %v2027_v29 = vsub.f32 0.0, %v5045_v20  ;;  %s2228_s20 = sshll.u32 %s2225_s8, 4  ;;  %s2229_s20 = int_to_ptr.hbm [resolvable:$true] %s2228_s20 }
 0x1d8   : > { %v1959_v35 = vadd.f32 1.0, %v1958_v10  ;;  %v2002_v55 = vadd.f32 1.0, %v2001_v36  ;;  %v2044_v26 = vmul.f32 0.3275911, %v5054_v60 }
 0x1d9   : > { %v5061_v21 = vand.u32 2147483647, %v5057_v38  ;;  %v1985_v17 = vmul.f32 %v1984_v51, %v1957_v47 }
 0x1da   : > { %2868 = vrcp.f32 %v1959_v35  ;;  %v2045_v43 = vadd.f32 1.0, %v2044_v26  ;;  %vm1965_vm3 = vweird.f32 %v1959_v35  ;;  %v1969_v15 = vand.u32 2147483647, %v1959_v35 }
 0x1db   : > { %2870 = vrcp.f32 %v2002_v55  ;;  %v2087_v40 = vmul.f32 0.3275911, %v5061_v21  ;;  %v1971_v50 = vand.u32 2147483648, %v1959_v35  ;;  %v2012_v28 = vand.u32 2147483647, %v2002_v55 }
 0x1dc   : > { %2872 = vrcp.f32 %v2045_v43  ;;  %v2014_v7 = vand.u32 2147483648, %v2002_v55  ;;  %vm2008_vm5 = vweird.f32 %v2002_v55  ;;  %v2055_v48 = vand.u32 2147483647, %v2045_v43 }
 0x1dd   : > { %v5064_v39 = vadd.f32 1.0, %v2087_v40  ;;  %v2057_v41 = vand.u32 2147483648, %v2045_v43  ;;  %v1972_v18 = vor.u32 1.1754944e-38, %v1971_v50  ;;  %vm1970_vm8 = vcmp.eq.f32.partialorder %v1969_v15, 8.507059e+37 }
 0x1de   : > { %vm5077_vm10 = vcmp.eq.f32.partialorder %v2012_v28, 8.507059e+37  ;;  %v2015_v57 = vor.u32 1.1754944e-38, %v2014_v7  ;;  %vm2051_vm11 = vweird.f32 %v2045_v43  ;;  %vm5083_vm13 = vcmp.eq.f32.partialorder %v2055_v48, 8.507059e+37 }
 0x1df   : > { %2874 = vrcp.f32 %v5064_v39  ;;  %v2058_v14 = vor.u32 1.1754944e-38, %v2057_v41  ;;  %vm2094_vm14 = vweird.f32 %v5064_v39  ;;  %v2098_v8 = vand.u32 2147483647, %v5064_v39 }
 0x1e0   : > { %v2869_v9 = vpop.eup %2868  ;;  %v2100_v54 = vand.u32 2147483648, %v5064_v39  ;;  %v2070_v26 = vsub.f32 0.0, %v5054_v60 }
 0x1e1   : > { %v2871_v16 = vpop.eup %2870  ;;  %v1961_v52 = vmul.f32 %v2869_v9, %v1959_v35  ;;  %vm1966_vm4 = vweird.f32 %v2869_v9 }
 0x1e2   : > { %v2004_v32 = vmul.f32 %v2871_v16, %v2002_v55  ;;  %vm2009_vm6 = vweird.f32 %v2871_v16  ;;  %v2873_v42 = vpop.eup %2872  ;;  %vm5069_vm7 = vmor %vm1965_vm3, %vm1966_vm4  ;;  %v2028_v55 = vmul.f32 %v2027_v29, %v5045_v20  ;;  %v2101_v20 = vor.u32 1.1754944e-38, %v2100_v54 }
 0x1e3   : > { %v1962_v45 = vsub.f32 1.0, %v1961_v52  ;;  %v2047_v53 = vmul.f32 %v2873_v42, %v2045_v43  ;;  %vm5073_vm9 = vmor %vm2008_vm5, %vm2009_vm6  ;;  %vm2052_vm12 = vweird.f32 %v2873_v42  ;;  %v1986_v52 = vmul.f32 1.442695, %v1985_v17 }
 0x1e4   : > { %v2005_v63 = vsub.f32 1.0, %v2004_v32  ;;  %vm5098_vm15 = vmor %vm2051_vm11, %vm2052_vm12  ;;  %vm2099_vm5 = vcmp.eq.f32.partialorder %v2098_v8, 8.507059e+37  ;;  %v2029_v7 = vmul.f32 1.442695, %v2028_v55  ;;  %vm1990_vm6 = vcmp.lt.f32.partialorder %v5035_v46, 0.0 }
 0x1e5   : > { %v1963_v6 = vmul.f32 %v2869_v9, %v1962_v45  ;;  %v2048_v23 = vsub.f32 1.0, %v2047_v53  ;;  %v2875_v13 = vpop.eup %2874  ;;  %2876 = vpow2.f32 %v1986_v52  ;;  %v5172_v52 = vmul.f32 0.5, %v5050_v44 }
 0x1e6   : > { %v2006_v22 = vmul.f32 %v2871_v16, %v2005_v63  ;;  %v2090_v31 = vmul.f32 %v2875_v13, %v5064_v39  ;;  %vm2095_vm3 = vweird.f32 %v2875_v13  ;;  %v2071_v63 = vmul.f32 %v2070_v26, %v5054_v60 }
 0x1e7   : > { %v1964_v62 = vadd.f32 %v2869_v9, %v1963_v6  ;;  %v2049_v58 = vmul.f32 %v2873_v42, %v2048_v23  ;;  %vm5116_vm4 = vmor %vm2094_vm14, %vm2095_vm3  ;;  %2878 = vpow2.f32 %v2029_v7  ;;  %v2155_v44 = vstv %s5149_s1 }
 0x1e8   : > { %v2007_v59 = vadd.f32 %v2871_v16, %v2006_v22  ;;  %v2091_v36 = vsub.f32 1.0, %v2090_v31  ;;  %v2072_v22 = vmul.f32 1.442695, %v2071_v63 }
 0x1e9   : > { %v1968_v1 = vsel %vm5069_vm7, %v2869_v9, %v1964_v62  ;;  %v2050_v10 = vadd.f32 %v2873_v42, %v2049_v58  ;;  %vm2033_vm7 = vcmp.lt.f32.partialorder %v5038_v33, 0.0 }
 0x1ea   : > { %v5088_v3 = vsel %vm1970_vm8, %v1972_v18, %v1968_v1  ;;  %v2011_v49 = vsel %vm5073_vm9, %v2871_v16, %v2007_v59  ;;  %v2092_v9 = vmul.f32 %v2875_v13, %v2091_v36  ;;  %2880 = vpow2.f32 %v2072_v22 }
 0x1eb   : > { %v1975_v27 = vmul.f32 1.0614054, %v5088_v3  ;;  %v5096_v25 = vsel %vm5077_vm10, %v2015_v57, %v2011_v49  ;;  %v2054_v40 = vsel %vm5098_vm15, %v2873_v42, %v2050_v10  ;;  %v2113_v42 = vsub.f32 0.0, %v5061_v21  ;;  %v2877_v5 = vpop.eup %2876 }
 0x1ec   : > { %v2018_v47 = vmul.f32 1.0614054, %v5096_v25  ;;  %v5112_v51 = vsel %vm5083_vm13, %v2058_v14, %v2054_v40  ;;  %v2093_v28 = vadd.f32 %v2875_v13, %v2092_v9  ;;  %v1955_v10 = vmul.f32 0.5, %v5029_v11 }
 0x1ed   : > { %v1976_v35 = vadd.f32 -1.4531521, %v1975_v27  ;;  %v2061_v32 = vmul.f32 1.0614054, %v5112_v51  ;;  %v2114_v53 = vmul.f32 %v2113_v42, %v5061_v21  ;;  %v2879_v31 = vpop.eup %2878  ;;  %v2041_v40 = vmul.f32 0.5, %v5040_v2 }
 0x1ee   : > { %v2019_v43 = vadd.f32 -1.4531521, %v2018_v47  ;;  %v2097_v39 = vsel %vm5116_vm4, %v2875_v13, %v2093_v28  ;;  %vm2076_vm8 = vcmp.lt.f32.partialorder %v5048_v30, 0.0  ;;  %vm2119_vm9 = vcmp.lt.f32.partialorder %v5057_v38, 0.0 }
 0x1ef   : > { %v1977_v16 = vmul.f32 %v1976_v35, %v5088_v3  ;;  %v2062_v29 = vadd.f32 -1.4531521, %v2061_v32  ;;  %v5129_v41 = vsel %vm2099_vm5, %v2101_v20, %v2097_v39  ;;  %v2115_v21 = vmul.f32 1.442695, %v2114_v53 }
 0x1f0   : > { %v2020_v50 = vmul.f32 %v2019_v43, %v5096_v25  ;;  %v2104_v18 = vmul.f32 1.0614054, %v5129_v41  ;;  %v2140_v2 = vstv %s5126_s22  ;;  %v2125_v32 = vstv %s5136_s30  ;;  %s2215_s22 = scalar_lea.sflag [#allocation4], %s5600_s27 }
 0x1f1   : > { %v1978_v45 = vadd.f32 1.4214138, %v1977_v16  ;;  %v2063_v60 = vmul.f32 %v2062_v29, %v5112_v51  ;;  %2882 = vpow2.f32 %v2115_v21  ;;  %v2143_v28 = vstv %s5131_s0  ;;  %s3125_s0 = sshra.s32 %s2229_s20, 4  ;;  %s3126_s0 = int_to_ptr.hbm [resolvable:$true] %s3125_s0 }
 0x1f2   : > { %v2021_v6 = vadd.f32 1.4214138, %v2020_v50  ;;  %v2105_v19 = vadd.f32 -1.4531521, %v2104_v18  ;;  %v2132_v29 = vstv %s5142_s16  ;;  %v2147_v39 = vstv %s5147_s12  ;;  %s3127_s30 = scalar_lea.hbm %s3126_s0, 8  ;;  %s3131_s12 = scalar_lea.hbm %s5615_s13, 16 }
 0x1f3   : > { %v1979_v48 = vmul.f32 %v1978_v45, %v5088_v3  ;;  %v2064_v37 = vadd.f32 1.4214138, %v2063_v60  ;;  %v2158_v18 = vstv %s5152_s9  ;;  %v2170_v22 = vstv %s5159_s26  ;;  %p3128_p1 = scmp.ne.s32.totalorder %s3126_s0, %s3127_s30  ;;  %p3132_p13 = scmp.lt.s32.totalorder %s3126_s0, %s5615_s13 }
 0x1f4   : > { %v2022_v61 = vmul.f32 %v2021_v6, %v5096_v25  ;;  %v2106_v13 = vmul.f32 %v2105_v19, %v5129_v41  ;;  %v2128_v6 = vstv %s5139_s24  ;;  %v2173_v53 = vstv %s5165_s5  ;;  %p3133_p7 = scmp.lt.s32.totalorder %s3131_s12, %s3127_s30 }
 0x1f5   : > { %v1980_v17 = vadd.f32 -0.28449672, %v1979_v48  ;;  %v2065_v23 = vmul.f32 %v2064_v37, %v5112_v51  ;;  %p3129_p3 = pnand %p3128_p1, %p3435_p0 }
 0x1f6   : > { %v2023_v62 = vadd.f32 -0.28449672, %v2022_v61  ;;  %v2107_v58 = vadd.f32 1.4214138, %v2106_v13  ;;  %p3134_p8 = por %p3133_p7, %p3132_p13 }
 0x1f7   : > { %v1981_v57 = vmul.f32 %v1980_v17, %v5088_v3  ;;  %v2066_v49 = vadd.f32 -0.28449672, %v2065_v23  ;;  %v2162_v17 = vstv %s5157_s2  ;;  %p3130_p4 = pneg %p3129_p3 }
 0x1f8   : > { %v2024_v59 = vmul.f32 %v2023_v62, %v5096_v25  ;;  %v2108_v54 = vmul.f32 %v2107_v58, %v5129_v41 }
 0x1f9   : > { %v1982_v1 = vadd.f32 0.2548296, %v1981_v57  ;;  %v2067_v8 = vmul.f32 %v2066_v49, %v5112_v51  ;;  %p3135_p9 = pnand %p3134_p8, %p3130_p4 }
 0x1fa   : > { %v2025_v14 = vadd.f32 0.2548296, %v2024_v59  ;;  %v2109_v55 = vadd.f32 -0.28449672, %v2108_v54 }
 0x1fb   : > { %v1983_v27 = vmul.f32 %v1982_v1, %v5088_v3  ;;  %v2068_v35 = vadd.f32 0.2548296, %v2067_v8  ;;  %v2881_v3 = vpop.eup %2880 }
 0x1fc   : > { %v2026_v34 = vmul.f32 %v2025_v14, %v5096_v25  ;;  %v1998_v25 = vmul.f32 0.5, %v5031_v56  ;;  %v2110_v9 = vmul.f32 %v2109_v55, %v5129_v41  ;;  %v2151_v55 = vstv %s5188_s14 }
 0x1fd   : > { %v1988_v47 = vmul.f32 %v2877_v5, %v1983_v27  ;;  %v2069_v11 = vmul.f32 %v2068_v35, %v5112_v51  ;;  %v2883_v51 = vpop.eup %2882 }
 0x1fe   : > { %v2031_v36 = vmul.f32 %v2879_v31, %v2026_v34  ;;  %v2111_v20 = vadd.f32 0.2548296, %v2110_v9  ;;  %v2177_v31 = vstv %s5183_s15  ;;  %v2136_v34 = vstv %s5175_s6 }
 0x1ff   : > { %v1989_v26 = vsub.f32 1.0, %v1988_v47  ;;  %v2074_v15 = vmul.f32 %v2881_v3, %v2069_v11  ;;  %v2166_v3 = vstv %s5193_s17 }
 0x200   : > { %v2032_v43 = vsub.f32 1.0, %v2031_v36  ;;  %v2112_v42 = vmul.f32 %v2111_v20, %v5129_v41 }
 0x201   : > { %v1991_v16 = vsub.f32 0.0, %v1989_v26  ;;  %v2075_v63 = vsub.f32 1.0, %v2074_v15 }
 0x202   : > { %v2034_v56 = vsub.f32 0.0, %v2032_v43  ;;  %v2117_v60 = vmul.f32 %v2883_v51, %v2112_v42  ;;  %v2189_v51 = vstv %s5205_s3 }
 0x203   : > { %v1992_v50 = vsel %vm1990_vm6, %v1991_v16, %v1989_v26  ;;  %v2077_v61 = vsub.f32 0.0, %v2075_v63 }
 0x204   : > { %v1993_v45 = vadd.f32 1.0, %v1992_v50  ;;  %v2035_v7 = vsel %vm2033_vm7, %v2034_v56, %v2032_v43  ;;  %v2118_v62 = vsub.f32 1.0, %v2117_v60  ;;  %v2193_v50 = vstv %s5207_s11 }
 0x205   : > { %v2036_v46 = vadd.f32 1.0, %v2035_v7  ;;  %v2078_v41 = vsel %vm2076_vm8, %v2077_v61, %v2075_v63 }
 0x206   : > { %v1994_v48 = vmul.f32 %v1993_v45, %v1955_v10  ;;  %v2079_v57 = vadd.f32 1.0, %v2078_v41  ;;  %v2120_v1 = vsub.f32 0.0, %v2118_v62 }
 0x207   : > { %v2037_v33 = vmul.f32 %v2036_v46, %v1998_v25  ;;  %v2181_v25 = vstv %s5196_s23 }
 0x208   : > { %v2126_v37 = vmul.f32 %v2125_v32, %v1994_v48  ;;  %v2141_v19 = vmul.f32 %v2140_v2, %v1994_v48  ;;  %v2156_v13 = vmul.f32 %v2155_v44, %v1994_v48  ;;  %v2171_v5 = vmul.f32 %v2170_v22, %v1994_v48 }
 0x209   : > { %v2129_v59 = vmul.f32 %v2128_v6, %v2037_v33  ;;  %v2144_v23 = vmul.f32 %v2143_v28, %v2037_v33  ;;  %v2159_v21 = vmul.f32 %v2158_v18, %v2037_v33  ;;  %v2174_v30 = vmul.f32 %v2173_v53, %v2037_v33 }
 0x20a   : > { %v2080_v14 = vmul.f32 %v2079_v57, %v2041_v40  ;;  %v2121_v27 = vsel %vm2119_vm9, %v2120_v1, %v2118_v62  ;;  %v2185_v2 = vstv %s5201_s25  ;;  %v2197_v32 = vstv %s5209_s19 }
 0x20b   : > { %v2130_v49 = vadd.f32 %v2129_v59, %v2126_v37  ;;  %v2145_v58 = vadd.f32 %v2144_v23, %v2141_v19  ;;  %v2160_v8 = vadd.f32 %v2159_v21, %v2156_v13  ;;  %v2175_v54 = vadd.f32 %v2174_v30, %v2171_v5 }
 0x20c   : > { %v2122_v47 = vadd.f32 1.0, %v2121_v27  ;;  %v2133_v10 = vmul.f32 %v2132_v29, %v2080_v14  ;;  %v2148_v36 = vmul.f32 %v2147_v39, %v2080_v14  ;;  %v2163_v35 = vmul.f32 %v2162_v17, %v2080_v14 }
 0x20d   : > { %v2178_v26 = vmul.f32 %v2177_v31, %v2080_v14 }
 0x20e   : > { %v2123_v43 = vmul.f32 %v2122_v47, %v5172_v52  ;;  %v2134_v38 = vadd.f32 %v2133_v10, %v2130_v49  ;;  %v2149_v40 = vadd.f32 %v2148_v36, %v2145_v58  ;;  %v2164_v11 = vadd.f32 %v2163_v35, %v2160_v8 }
 0x20f   : > { %v2179_v9 = vadd.f32 %v2178_v26, %v2175_v54 }
 0x210   : > { %v2137_v16 = vmul.f32 %v2136_v34, %v2123_v43  ;;  %v2152_v56 = vmul.f32 %v2151_v55, %v2123_v43  ;;  %v2167_v15 = vmul.f32 %v2166_v3, %v2123_v43  ;;  %v2182_v20 = vmul.f32 %v2181_v25, %v2123_v43 }
 0x212   : > { %v2138_v28 = vadd.f32 %v2137_v16, %v2134_v38  ;;  %v2153_v44 = vadd.f32 %v2152_v56, %v2149_v40  ;;  %v2168_v45 = vadd.f32 %v2167_v15, %v2164_v11  ;;  %v2183_v7 = vadd.f32 %v2182_v20, %v2179_v9 }
 0x214   : > { %v2186_v63 = vadd.f32 %v2185_v2, %v2138_v28  ;;  %v2190_v52 = vadd.f32 %v2189_v51, %v2153_v44  ;;  %v2194_v42 = vadd.f32 %v2193_v50, %v2168_v45  ;;  %v2198_v46 = vadd.f32 %v2197_v32, %v2183_v7 }
 0x216   : > { %v2187_v6 = vadd.f32 %v2186_v63, %v4467_v12  ;;  %v2191_v29 = vadd.f32 %v2190_v52, %v4477_v0  ;;  %v2195_v39 = vadd.f32 %v2194_v42, %v4485_v24  ;;  %v2199_v48 = vadd.f32 %v2198_v46, %v4489_v4 }
 0x218   : > { %v2201_v61 = vrot.slane %v2191_v29, 7  ;;  %v2204_v60 = vrot.slane %v2195_v39, 6  ;;  %v2207_v18 = vrot.slane %v2199_v48, 5 }
 0x21a   : > { %v2209_v33 = vsel %vm1682_vm0, %v2187_v6, %v2201_v61 }
 0x21b   : > { %v2210_v17 = vsel %vm1684_vm1, %v2209_v33, %v2204_v60 }
 0x21c   : > { %v2211_v12 = vsel %vm1686_vm2, %v2210_v17, %v2207_v18 }
 0x21d   : > { %2652 = vst [vmem:[%s5025_s21 + $0x4] sm:$0xf] %v2211_v12 }
 0x21e   : > { %3138 = shalt.err (!%p3135_p9)
}
 0x21f   : > { %s3227_s27 = smov 64   ;;  %s3228_s21 = smov 128  }
 0x220   : > { %s3229_s2 = smov 4  }
 0x221   : > { %2711 = dma.vmem_to_hbm [thread:$0]  (%p3435_p0), %s2227_s29, 128, %s2229_s20, %s2215_s22, %s3227_s27, %s3228_s21, %s3229_s2  }
 0x222 PF: > { %s5617_s26 = sld [smem:[#allocation37_spill]] }
 0x223   : > { %s5619_s6 = sld [smem:[#allocation40_spill]] }
 0x228   : > { %s2243_s15 = sand.u32 1, %s5617_s26  }
 0x229   : > { %p5620_p10 = scmp.ge.s32.totalorder %s5619_s6, 2  ;;  %s2244_s14 = scalar_lea.sflag [#allocation4], %s2243_s15 }
 0x22b   : > { %p2758_p11 = pnand %p5620_p10, %p3441_p6 }
 0x22d   : > { %p2759_p12 = pneg %p2758_p11 }
 0x22f   : > { %3192 = dma.done.wait (%p2759_p12), %s2244_s14, 128  }
 0x230   : > { %3194 = vsyncadd (%p2759_p12), %s2244_s14, 4294967168  ;;  %s5621_s16 = sld [smem:[#allocation42_spill]] }
 0x231   : > { %s5622_s29 = sld [smem:[#allocation38_spill]] }
 0x232   : > { %s5623_s30 = sld [smem:[#allocation39_spill]] }
 0x233   : > { %s5624_s15 = sld [smem:[#allocation43_spill]] }
 0x236   : > { %p35_p2 = scmp.ge.s32.totalorder %s5621_s16, 4  }
 0x238   :  { %37 = sbr.rel (!%p35_p2) target bundleno = 29 (0x1d), region = 177 }
 0x23d   :  { %2250 = vsyncpa [#allocation3], 1 }
 0x23e   :  { %2252 = vsyncpa [#allocation3 + $0x1], 1 }
 0x23f   :  { %2253 = vsyncpa [#allocation4], 1 }
 0x240   :  { %2255 = vsyncpa [#allocation4 + $0x1], 1 }
 0x241   :  { %2256 = vsyncpa [#allocation5], 1 }
 0x242   :  { %2258 = vsyncpa [#allocation5 + $0x1], 1 }
 0x243   :  { %2259 = vsyncpa [#allocation6], 1 }
 0x244   :  { %2261 = vsyncpa [#allocation6 + $0x1], 1 }
 0x245   :  { %2262 = vsyncpa [#allocation10], 1 }
 0x246   :  { %2263 = vsyncpa [#allocation13], 1 }
 0x247   :  { %2264 = vsyncpa [#allocation16], 1 }
 0x248   :  { %2265 = vsyncpa [#allocation19], 1 }
 0x249   :  { %2266 = vsyncpa [#allocation22], 1 }
 0x24a   :  { %2267 = vsyncpa [#allocation25], 1 }

</bundles_post_ra>
